<compile_context>
chip_gen: v7x
topology: tpu7x:2x2x1
jax: 0.10.0
libtpu: 0.0.40
codegen_flags: <defaults>
</compile_context>

<pallas_src>
import functools
import math

import jax
import jax.numpy as jnp
from jax import lax
from jax.experimental import pallas as pl
from jax.experimental.pallas import tpu as pltpu

LSTM_LAYERS = 3
_MIB = 1024 * 1024


# ----------------------------------------------------------------------------
# Hardware-adaptive knobs (safe fallbacks everywhere).
# ----------------------------------------------------------------------------
@functools.lru_cache(maxsize=None)
def _vmem_limit_bytes():
    """Use most of physical VMEM (v5e/v6e: 128 MiB -> ~112 MiB, v7x: 64 -> 48),
    leaving headroom for Mosaic-internal scratch."""
    try:
        cap = int(pltpu.get_tpu_info().vmem_capacity_bytes)
        return max(32 * _MIB, cap - 16 * _MIB)
    except Exception:
        return 64 * _MIB


@functools.lru_cache(maxsize=None)
def _buffered_one_ok():
    """Probe whether pipeline_mode=pl.Buffered(1) (single-buffering a
    constant-index block) is supported by this Pallas build."""
    try:
        def k(x_ref, o_ref):
            o_ref[...] = x_ref[...] + 1.0

        f = pl.pallas_call(
            k,
            out_shape=jax.ShapeDtypeStruct((16, 128), jnp.float32),
            grid=(2,),
            in_specs=[pl.BlockSpec((8, 128), lambda i: (0, 0),
                                   pipeline_mode=pl.Buffered(1))],
            out_specs=pl.BlockSpec((8, 128), lambda i: (i, 0)),
        )
        jax.block_until_ready(f(jnp.zeros((8, 128), jnp.float32)))
        return True
    except Exception:
        return False


def _spec(block_shape, index_map, *, single_buffer=False):
    """BlockSpec helper: single-buffer constant-index blocks when supported."""
    if single_buffer and _buffered_one_ok():
        return pl.BlockSpec(block_shape, index_map,
                            pipeline_mode=pl.Buffered(1))
    return pl.BlockSpec(block_shape, index_map)


def _round_up(x, m):
    return ((x + m - 1) // m) * m


def _tile_and_pad(dim, preferred, align):
    """Pick a tile (multiple of `align`, <= max(preferred, align)) plus the
    padded extent (multiple of the tile).  Prefers an aligned divisor of `dim`;
    otherwise pads — never falls back to a full-extent (VMEM-busting) block."""
    if dim <= preferred:
        t = _round_up(dim, align)
        return t, t
    pref = max(align, (preferred // align) * align)
    t = pref
    while t >= align:
        if dim % t == 0:
            return t, dim
        t -= align
    return pref, _round_up(dim, pref)


# ----------------------------------------------------------------------------
# Shared matmul + bias kernel body: bf16 operands, f32 MXU accumulation,
# cast on store (bf16 outputs keep stores lane-dense & halve HBM writeback).
# ----------------------------------------------------------------------------
def _matmul_bias_kernel(x_ref, w_ref, b_ref, o_ref):
    acc = jnp.dot(x_ref[...], w_ref[...], preferred_element_type=jnp.float32)
    o_ref[...] = (acc + b_ref[...]).astype(o_ref.dtype)


def matmul_bias(x_bf16, w_bf16, b_f32, *, tm_pref=256, tn_pref=512,
                out_dtype=jnp.bfloat16):
    """x:(M,K) bf16, w:(K,N) bf16, b:(1,N) f32 -> (M,N) out_dtype.
    Tiled over (M,N), both axes 'parallel' (megacore).  M / N are zero-padded
    when no aligned divisor exists, then sliced back."""
    M, K = x_bf16.shape
    N = w_bf16.shape[1]
    tm, M_pad = _tile_and_pad(M, tm_pref, 8)
    tn, N_pad = _tile_and_pad(N, tn_pref, 128)
    if M_pad != M:
        x_bf16 = jnp.pad(x_bf16, ((0, M_pad - M), (0, 0)))
    if N_pad != N:
        w_bf16 = jnp.pad(w_bf16, ((0, 0), (0, N_pad - N)))
        b_f32 = jnp.pad(b_f32, ((0, 0), (0, N_pad - N)))
    out = pl.pallas_call(
        _matmul_bias_kernel,
        out_shape=jax.ShapeDtypeStruct((M_pad, N_pad), out_dtype),
        grid=(M_pad // tm, N_pad // tn),
        in_specs=[pl.BlockSpec((tm, K), lambda i, j: (i, 0)),
                  pl.BlockSpec((K, tn), lambda i, j: (0, j)),
                  pl.BlockSpec((1, tn), lambda i, j: (0, j))],
        out_specs=pl.BlockSpec((tm, tn), lambda i, j: (i, j)),
        compiler_params=pltpu.CompilerParams(
            dimension_semantics=("parallel", "parallel"),
            vmem_limit_bytes=_vmem_limit_bytes()),
    )(x_bf16, w_bf16, b_f32)
    if M_pad != M or N_pad != N:
        out = out[:M, :N]
    return out


def matmul_bias_weight_stream(x_bf16, w_bf16, b_f32, *, tn_pref=1024,
                              out_dtype=jnp.bfloat16):
    """Scoring matmul: the activation block stays resident (full M, single
    buffer, constant index) while the big (K, N) vocab weight is streamed from
    HBM exactly once, block-by-block along N.  Grid over N only."""
    M, K = x_bf16.shape
    N = w_bf16.shape[1]
    tn, N_pad = _tile_and_pad(N, tn_pref, 128)
    if N_pad != N:
        w_bf16 = jnp.pad(w_bf16, ((0, 0), (0, N_pad - N)))
        b_f32 = jnp.pad(b_f32, ((0, 0), (0, N_pad - N)))
    out = pl.pallas_call(
        _matmul_bias_kernel,
        out_shape=jax.ShapeDtypeStruct((M, N_pad), out_dtype),
        grid=(N_pad // tn,),
        in_specs=[_spec((M, K), lambda j: (0, 0), single_buffer=True),
                  pl.BlockSpec((K, tn), lambda j: (0, j)),
                  pl.BlockSpec((1, tn), lambda j: (0, j))],
        out_specs=pl.BlockSpec((M, tn), lambda j: (0, j)),
        compiler_params=pltpu.CompilerParams(
            dimension_semantics=("parallel",),
            vmem_limit_bytes=_vmem_limit_bytes()),
    )(x_bf16, w_bf16, b_f32)
    return out[:, :N] if N_pad != N else out


# ----------------------------------------------------------------------------
# Recurrent LSTM kernel.
#   grid = (batch_splits, timestep_chunks):
#     * leading axis "parallel"  -> megacore split over batch halves (v7x),
#     * trailing axis "arbitrary" -> serial recurrence over chunks of K steps.
#   gx already contains x @ W_ih + (b_ih + b_hh) (bf16); per step we only add
#   h @ W_hh (bf16 operands, f32 acc) and run gate nonlinearities in f32.
#   W_hh is the only resident weight (single-buffered when supported).
# ----------------------------------------------------------------------------
def _lstm_recurrent_kernel(gx_ref, h0_ref, c0_ref, whh_ref,
                           y_ref, hT_ref, cT_ref, h_s, c_s):
    t = pl.program_id(1)

    @pl.when(t == 0)
    def _():
        h_s[...] = h0_ref[...]
        c_s[...] = c0_ref[...]

    H = h_s.shape[-1]            # multiple of 128 -> lane-aligned gate slices
    K = gx_ref.shape[0]
    w_hh = whh_ref[...]          # bf16, resident across all timesteps

    def step(s, carry):
        h, c = carry
        gates = (gx_ref[s].astype(jnp.float32)
                 + jnp.dot(h.astype(jnp.bfloat16), w_hh,
                           preferred_element_type=jnp.float32))
        i_g = jax.nn.sigmoid(gates[:, 0 * H:1 * H])
        f_g = jax.nn.sigmoid(gates[:, 1 * H:2 * H])
        g_g = jnp.tanh(gates[:, 2 * H:3 * H])
        o_g = jax.nn.sigmoid(gates[:, 3 * H:4 * H])
        c_new = f_g * c + i_g * g_g
        h_new = o_g * jnp.tanh(c_new)
        y_ref[s] = h_new.astype(y_ref.dtype)
        return (h_new, c_new)

    # Unroll capped at 8: the recurrence is serial anyway, and full unroll of
    # big chunks just bloats the basic block / vreg pressure.
    h_fin, c_fin = lax.fori_loop(0, K, step, (h_s[...], c_s[...]),
                                 unroll=min(K, 8))
    h_s[...] = h_fin
    c_s[...] = c_fin

    # Final (h, c) stored only once, at the last timestep chunk.
    @pl.when(t == pl.num_programs(1) - 1)
    def _():
        hT_ref[...] = h_fin
        cT_ref[...] = c_fin


def lstm_recurrent(gx_bf16, h0, c0, w_hh_bf16, *, chunk=16):
    """gx: (T, B, 4H) bf16 (pre-projected gates + bias); h0/c0: (B, H) f32;
    w_hh: (H, 4H) bf16.  Returns y (T, B, H) bf16, hT (B, H) f32, cT f32."""
    T, B, G = gx_bf16.shape
    H = h0.shape[-1]
    assert G == 4 * H
    assert H % 128 == 0, (
        "hidden size must be padded to a multiple of 128 *per gate segment* "
        "(e.g. 1150 -> 1152 with zeroed pad columns in W_ih/W_hh/bias)")
    # Timestep chunk that divides T (amortizes per-grid-step overhead).
    K = min(chunk, T)
    while K > 1 and T % K != 0:
        K -= 1
    # Batch split across megacore TensorCores when halves stay sublane-aligned.
    n_b = 2 if B % 16 == 0 else 1
    Bb = B // n_b
    return pl.pallas_call(
        _lstm_recurrent_kernel,
        out_shape=(jax.ShapeDtypeStruct((T, B, H), jnp.bfloat16),
                   jax.ShapeDtypeStruct((B, H), jnp.float32),
                   jax.ShapeDtypeStruct((B, H), jnp.float32)),
        grid=(n_b, T // K),
        in_specs=[pl.BlockSpec((K, Bb, G), lambda b, t: (t, b, 0)),
                  pl.BlockSpec((Bb, H), lambda b, t: (b, 0)),
                  pl.BlockSpec((Bb, H), lambda b, t: (b, 0)),
                  # Constant-index W_hh: single-buffered when supported.
                  _spec((H, G), lambda b, t: (0, 0), single_buffer=True)],
        out_specs=(pl.BlockSpec((K, Bb, H), lambda b, t: (t, b, 0)),
                   pl.BlockSpec((Bb, H), lambda b, t: (b, 0)),
                   pl.BlockSpec((Bb, H), lambda b, t: (b, 0))),
        scratch_shapes=[pltpu.VMEM((Bb, H), jnp.float32),
                        pltpu.VMEM((Bb, H), jnp.float32)],
        compiler_params=pltpu.CompilerParams(
            dimension_semantics=("parallel", "arbitrary"),
            vmem_limit_bytes=_vmem_limit_bytes()),
    )(gx_bf16, h0, c0, w_hh_bf16)


# ----------------------------------------------------------------------------
# Parameter construction (deterministic; mirrors LanguageModel.__init__).
# Matmul weights + embedding table in bf16 (f32-accumulated in-kernel);
# biases / recurrent state in f32.
# ----------------------------------------------------------------------------
def init_params(key, vocab_size, embed_hidden, hidden_size):
    assert hidden_size % 128 == 0, (
        "pad hidden_size per gate segment to a multiple of 128 "
        "(real model: 1150 -> 1152) before building params")
    keys = jax.random.split(key, 2 + 4 * LSTM_LAYERS)
    params = {}
    params["embedding"] = jax.random.uniform(
        keys[0], (vocab_size, embed_hidden), jnp.float32, -0.1, 0.1
    ).astype(jnp.bfloat16)

    lstm = []
    k = 1.0 / math.sqrt(hidden_size)
    for l in range(LSTM_LAYERS):
        d_in = embed_hidden if l == 0 else hidden_size
        kw = keys[2 + 4 * l: 2 + 4 * (l + 1)]
        w_ih = jax.random.uniform(kw[0], (d_in, 4 * hidden_size),
                                  jnp.float32, -k, k)
        w_hh = jax.random.uniform(kw[1], (hidden_size, 4 * hidden_size),
                                  jnp.float32, -k, k)
        b_ih = jax.random.uniform(kw[2], (4 * hidden_size,), jnp.float32, -k, k)
        b_hh = jax.random.uniform(kw[3], (4 * hidden_size,), jnp.float32, -k, k)
        lstm.append((w_ih.astype(jnp.bfloat16),
                     w_hh.astype(jnp.bfloat16),
                     (b_ih + b_hh).reshape(1, 4 * hidden_size)))
    params["lstm"] = lstm

    # scoring: weight uniform(-0.1, 0.1), bias zeros.
    w_score = jax.random.uniform(keys[1], (vocab_size, hidden_size),
                                 jnp.float32, -0.1, 0.1)
    params["w_score"] = w_score.T.astype(jnp.bfloat16)        # (H, V) bf16
    params["b_score"] = jnp.zeros((1, vocab_size), jnp.float32)
    return params


# ----------------------------------------------------------------------------
# Forward pass == LanguageModel.forward (eval mode).
# ----------------------------------------------------------------------------
@jax.jit
def language_model_forward(params, x_ids, h0):
    # Embedding gather kept in plain JAX (bf16 table, bf16 output).
    embed = jnp.take(params["embedding"], x_ids, axis=0)       # (T, B, E) bf16
    T, B, _ = embed.shape

    # TODO(synk): EmbeddingDropout / LockedDropout / Dropout / WeightDrop are
    # train-time only; identity here (eval-mode forward).
    cur = embed
    cur_h, cur_c = h0, h0            # cur_hidden = (hidden, hidden)
    hidden = []
    for l in range(LSTM_LAYERS):
        w_ih, w_hh, b = params["lstm"][l]
        d_in = cur.shape[-1]
        # Hoisted input projection: one tiled bf16 matmul over all T*B rows,
        # bias folded in, output emitted in bf16 (halves gx HBM round trip).
        # TODO(synk): optionally fuse this into the recurrent kernel to skip
        # the gx HBM round trip entirely (measure vs. megacore projection).
        gx = matmul_bias(cur.reshape(T * B, d_in), w_ih, b,
                         tm_pref=256, tn_pref=512, out_dtype=jnp.bfloat16)
        gx = gx.reshape(T, B, -1)                              # (T, B, 4H) bf16
        y, hT, cT = lstm_recurrent(gx, cur_h, cur_c, w_hh, chunk=16)
        hidden.append((hT[None], cT[None]))    # (1, B, H) like torch h_n/c_n
        # net_run() feeds the *final* (h, c) of layer l as init of layer l+1.
        cur_h, cur_c = hT, cT
        cur = y                                # bf16, feeds next layer directly

    rnn_final_layer = cur
    final_drop = cur                  # Dropout(p=0.1) identity in eval

    H = cur.shape[-1]
    V = params["w_score"].shape[1]
    # Scoring: vocab weight streamed from HBM exactly once, bf16 logits.
    logits = matmul_bias_weight_stream(cur.reshape(T * B, H),
                                       params["w_score"], params["b_score"],
                                       tn_pref=1024, out_dtype=jnp.bfloat16)
    result = logits.reshape(-1, B, V)                          # .view(-1, B, V)
    return result, hidden, rnn_final_layer, final_drop


if __name__ == "__main__":
    # Small shapes consistent with the module (scaled down from vocab~33k,
    # E=H=1150, B=80).  B is a multiple of 16 so the megacore batch split
    # path of the recurrent kernel is exercised.
    VOCAB = 256
    EMBED_HIDDEN = 128
    HIDDEN = 128
    T = 8      # sequence length
    B = 16     # batch size

    # Warm up hardware probes outside the jit trace.
    _vmem_limit_bytes()
    _buffered_one_ok()

    root = jax.random.PRNGKey(0)
    k_param, k_ids, k_hid = jax.random.split(root, 3)

    params = init_params(k_param, VOCAB, EMBED_HIDDEN, HIDDEN)
    x_ids = jax.random.randint(k_ids, (T, B), 0, VOCAB, dtype=jnp.int32)
    # init_hidden_weights: randn(1, B, H)/sqrt(H), deterministic here.
    h0 = (jax.random.normal(k_hid, (1, B, HIDDEN), jnp.float32)
          / math.sqrt(HIDDEN))[0]                              # (B, H)

    result, hidden, rnn_final_layer, final_drop = language_model_forward(
        params, x_ids, h0)
    jax.block_until_ready(result)
    jax.block_until_ready(rnn_final_layer)

    assert result.shape == (T, B, VOCAB)
    assert rnn_final_layer.shape == (T, B, HIDDEN)
    assert len(hidden) == LSTM_LAYERS
    assert hidden[0][0].shape == (1, B, HIDDEN)
    assert bool(jnp.all(jnp.isfinite(result.astype(jnp.float32))))
    print("KERNEL_OK")
</pallas_src>

<mosaic_0001>
module attributes {stable_mosaic.version = 11 : i64} {
  func.func @k(%arg0: i32, %arg1: memref<8x128xf32, #tpu.memory_space<vmem>>, %arg2: memref<8x128xf32, #tpu.memory_space<vmem>>) attributes {dimension_semantics = [#tpu.dimension_semantics<arbitrary>], iteration_bounds = array<i64: 2>, scalar_prefetch = 0 : i64, scratch_operands = 0 : i64, tpu.core_type = #tpu.core_type<tc>, window_params = [{pipeline_mode = #tpu.pipeline_mode<synchronous>, transform_indices = @transform_0, window_bounds = array<i64: 8, 128>}, {transform_indices = @transform_1, window_bounds = array<i64: 8, 128>}]} {
    %c0 = arith.constant 0 : index
    %c0_0 = arith.constant 0 : index
    %0 = vector.load %arg1[%c0, %c0_0] : memref<8x128xf32, #tpu.memory_space<vmem>>, vector<8x128xf32>
    %cst = arith.constant 1.000000e+00 : f32
    %1 = vector.broadcast %cst : f32 to vector<8x128xf32>
    %2 = arith.addf %0, %1 : vector<8x128xf32>
    %c0_1 = arith.constant 0 : index
    %c0_2 = arith.constant 0 : index
    %3 = vector.load %arg2[%c0_1, %c0_2] : memref<8x128xf32, #tpu.memory_space<vmem>>, vector<8x128xf32>
    tpu.vector_store %arg2[%c0_1, %c0_2], %2 {strides = array<i32>} : memref<8x128xf32, #tpu.memory_space<vmem>>, vector<8x128xf32>,
    return
  }
  func.func @transform_0(%arg0: i32) -> (i32, i32) {
    %c0_i32 = arith.constant 0 : i32
    %c0_i32_0 = arith.constant 0 : i32
    %c0_i32_1 = arith.constant 0 : i32
    return %c0_i32, %c0_i32_0 : i32, i32
  }
  func.func @transform_1(%arg0: i32) -> (i32, i32) {
    %c0_i32 = arith.constant 0 : i32
    %c0_i32_0 = arith.constant 0 : i32
    return %arg0, %c0_i32 : i32, i32
  }
}

module attributes {stable_mosaic.version = 11 : i64} {
  func.func @_lstm_recurrent_kernel(%arg0: i32, %arg1: i32, %arg2: memref<8x8x512xbf16, #tpu.memory_space<vmem>>, %arg3: memref<8x128xf32, #tpu.memory_space<vmem>>, %arg4: memref<8x128xf32, #tpu.memory_space<vmem>>, %arg5: memref<128x512xbf16, #tpu.memory_space<vmem>>, %arg6: memref<8x8x128xbf16, #tpu.memory_space<vmem>>, %arg7: memref<8x128xf32, #tpu.memory_space<vmem>>, %arg8: memref<8x128xf32, #tpu.memory_space<vmem>>, %arg9: memref<8x128xf32, #tpu.memory_space<vmem>>, %arg10: memref<8x128xf32, #tpu.memory_space<vmem>>) attributes {dimension_semantics = [#tpu.dimension_semantics<parallel>, #tpu.dimension_semantics<arbitrary>], iteration_bounds = array<i64: 2, 1>, scalar_prefetch = 0 : i64, scratch_operands = 2 : i64, tpu.core_type = #tpu.core_type<tc>, window_params = [{transform_indices = @transform_0, window_bounds = array<i64: 8, 8, 512>}, {transform_indices = @transform_1, window_bounds = array<i64: 8, 128>}, {transform_indices = @transform_2, window_bounds = array<i64: 8, 128>}, {pipeline_mode = #tpu.pipeline_mode<synchronous>, transform_indices = @transform_3, window_bounds = array<i64: 128, 512>}, {transform_indices = @transform_4, window_bounds = array<i64: 8, 8, 128>}, {transform_indices = @transform_5, window_bounds = array<i64: 8, 128>}, {transform_indices = @transform_6, window_bounds = array<i64: 8, 128>}]} {
    %c0_i32 = arith.constant 0 : i32
    %0 = arith.cmpi eq, %arg1, %c0_i32 : i32
    %1 = arith.extui %0 : i1 to i32
    %c0_i32_0 = arith.constant 0 : i32
    %2 = arith.cmpi ne, %1, %c0_i32_0 : i32
    scf.if %2 {
      %c0_76 = arith.constant 0 : index
      %c0_77 = arith.constant 0 : index
      %307 = vector.load %arg3[%c0_76, %c0_77] : memref<8x128xf32, #tpu.memory_space<vmem>>, vector<8x128xf32>
      %c0_78 = arith.constant 0 : index
      %c0_79 = arith.constant 0 : index
      %308 = vector.load %arg9[%c0_78, %c0_79] : memref<8x128xf32, #tpu.memory_space<vmem>>, vector<8x128xf32>
      tpu.vector_store %arg9[%c0_78, %c0_79], %307 {strides = array<i32>} : memref<8x128xf32, #tpu.memory_space<vmem>>, vector<8x128xf32>,
      %c0_80 = arith.constant 0 : index
      %c0_81 = arith.constant 0 : index
      %309 = vector.load %arg4[%c0_80, %c0_81] : memref<8x128xf32, #tpu.memory_space<vmem>>, vector<8x128xf32>
      %c0_82 = arith.constant 0 : index
      %c0_83 = arith.constant 0 : index
      %310 = vector.load %arg10[%c0_82, %c0_83] : memref<8x128xf32, #tpu.memory_space<vmem>>, vector<8x128xf32>
      tpu.vector_store %arg10[%c0_82, %c0_83], %309 {strides = array<i32>} : memref<8x128xf32, #tpu.memory_space<vmem>>, vector<8x128xf32>,
    } else {
    }
    %c0 = arith.constant 0 : index
    %c0_1 = arith.constant 0 : index
    %3 = vector.load %arg5[%c0, %c0_1] : memref<128x512xbf16, #tpu.memory_space<vmem>>, vector<128x512xbf16>
    %c0_2 = arith.constant 0 : index
    %c0_3 = arith.constant 0 : index
    %4 = vector.load %arg9[%c0_2, %c0_3] : memref<8x128xf32, #tpu.memory_space<vmem>>, vector<8x128xf32>
    %c0_4 = arith.constant 0 : index
    %c0_5 = arith.constant 0 : index
    %5 = vector.load %arg10[%c0_4, %c0_5] : memref<8x128xf32, #tpu.memory_space<vmem>>, vector<8x128xf32>
    %c0_i32_6 = arith.constant 0 : i32
    %6 = arith.index_cast %c0_i32_6 : i32 to index
    %c0_7 = arith.constant 0 : index
    %c0_8 = arith.constant 0 : index
    %7 = vector.load %arg2[%6, %c0_7, %c0_8] : memref<8x8x512xbf16, #tpu.memory_space<vmem>>, vector<1x8x512xbf16>
    %8 = vector.shape_cast %7 : vector<1x8x512xbf16> to vector<8x512xbf16>
    %9 = arith.extf %8 : vector<8x512xbf16> to vector<8x512xf32>
    %10 = arith.truncf %4 : vector<8x128xf32> to vector<8x128xbf16>
    %cst = arith.constant dense<0.000000e+00> : vector<8x512xf32>
    %11 = tpu.matmul %10, %3, %cst {dimension_numbers = #tpu.dot_dimension_numbers<[1], [0], [0], [1], [0, 0, 1, 1], [], []>} : vector<8x128xbf16>, vector<128x512xbf16>, vector<8x512xf32> -> vector<8x512xf32>
    %12 = arith.addf %9, %11 : vector<8x512xf32>
    %13 = vector.extract_strided_slice %12 {offsets = [0, 0], sizes = [8, 128], strides = [1, 1]} : vector<8x512xf32> to vector<8x128xf32>
    %14 = arith.negf %13 : vector<8x128xf32>
    %15 = math.exp %14 : vector<8x128xf32>
    %cst_9 = arith.constant 1.000000e+00 : f32
    %16 = vector.broadcast %cst_9 : f32 to vector<8x128xf32>
    %17 = arith.addf %16, %15 : vector<8x128xf32>
    %18 = arith.divf %16, %17 : vector<8x128xf32>
    %19 = vector.extract_strided_slice %12 {offsets = [0, 128], sizes = [8, 128], strides = [1, 1]} : vector<8x512xf32> to vector<8x128xf32>
    %20 = arith.negf %19 : vector<8x128xf32>
    %21 = math.exp %20 : vector<8x128xf32>
    %cst_10 = arith.constant 1.000000e+00 : f32
    %22 = vector.broadcast %cst_10 : f32 to vector<8x128xf32>
    %23 = arith.addf %22, %21 : vector<8x128xf32>
    %24 = arith.divf %22, %23 : vector<8x128xf32>
    %25 = vector.extract_strided_slice %12 {offsets = [0, 256], sizes = [8, 128], strides = [1, 1]} : vector<8x512xf32> to vector<8x128xf32>
    %26 = math.tanh %25 : vector<8x128xf32>
    %27 = vector.extract_strided_slice %12 {offsets = [0, 384], sizes = [8, 128], strides = [1, 1]} : vector<8x512xf32> to vector<8x128xf32>
    %28 = arith.negf %27 : vector<8x128xf32>
    %29 = math.exp %28 : vector<8x128xf32>
    %cst_11 = arith.constant 1.000000e+00 : f32
    %30 = vector.broadcast %cst_11 : f32 to vector<8x128xf32>
    %31 = arith.addf %30, %29 : vector<8x128xf32>
    %32 = arith.divf %30, %31 : vector<8x128xf32>
    %33 = arith.mulf %24, %5 : vector<8x128xf32>
    %34 = arith.mulf %18, %26 : vector<8x128xf32>
    %35 = arith.addf %33, %34 : vector<8x128xf32>
    %36 = math.tanh %35 : vector<8x128xf32>
    %37 = arith.mulf %32, %36 : vector<8x128xf32>
    %38 = arith.truncf %37 : vector<8x128xf32> to vector<8x128xbf16>
    %39 = arith.index_cast %c0_i32_6 : i32 to index
    %c0_12 = arith.constant 0 : index
    %c0_13 = arith.constant 0 : index
    %40 = vector.load %arg6[%39, %c0_12, %c0_13] : memref<8x8x128xbf16, #tpu.memory_space<vmem>>, vector<1x8x128xbf16>
    %41 = vector.shape_cast %40 : vector<1x8x128xbf16> to vector<8x128xbf16>
    %42 = vector.shape_cast %38 : vector<8x128xbf16> to vector<1x8x128xbf16>
    tpu.vector_store %arg6[%39, %c0_12, %c0_13], %42 {strides = array<i32>} : memref<8x8x128xbf16, #tpu.memory_space<vmem>>, vector<1x8x128xbf16>,
    %c1_i32 = arith.constant 1 : i32
    %43 = arith.index_cast %c1_i32 : i32 to index
    %c0_14 = arith.constant 0 : index
    %c0_15 = arith.constant 0 : index
    %44 = vector.load %arg2[%43, %c0_14, %c0_15] : memref<8x8x512xbf16, #tpu.memory_space<vmem>>, vector<1x8x512xbf16>
    %45 = vector.shape_cast %44 : vector<1x8x512xbf16> to vector<8x512xbf16>
    %46 = arith.extf %45 : vector<8x512xbf16> to vector<8x512xf32>
    %47 = arith.truncf %37 : vector<8x128xf32> to vector<8x128xbf16>
    %cst_16 = arith.constant dense<0.000000e+00> : vector<8x512xf32>
    %48 = tpu.matmul %47, %3, %cst_16 {dimension_numbers = #tpu.dot_dimension_numbers<[1], [0], [0], [1], [0, 0, 1, 1], [], []>} : vector<8x128xbf16>, vector<128x512xbf16>, vector<8x512xf32> -> vector<8x512xf32>
    %49 = arith.addf %46, %48 : vector<8x512xf32>
    %50 = vector.extract_strided_slice %49 {offsets = [0, 0], sizes = [8, 128], strides = [1, 1]} : vector<8x512xf32> to vector<8x128xf32>
    %51 = arith.negf %50 : vector<8x128xf32>
    %52 = math.exp %51 : vector<8x128xf32>
    %cst_17 = arith.constant 1.000000e+00 : f32
    %53 = vector.broadcast %cst_17 : f32 to vector<8x128xf32>
    %54 = arith.addf %53, %52 : vector<8x128xf32>
    %55 = arith.divf %53, %54 : vector<8x128xf32>
    %56 = vector.extract_strided_slice %49 {offsets = [0, 128], sizes = [8, 128], strides = [1, 1]} : vector<8x512xf32> to vector<8x128xf32>
    %57 = arith.negf %56 : vector<8x128xf32>
    %58 = math.exp %57 : vector<8x128xf32>
    %cst_18 = arith.constant 1.000000e+00 : f32
    %59 = vector.broadcast %cst_18 : f32 to vector<8x128xf32>
    %60 = arith.addf %59, %58 : vector<8x128xf32>
    %61 = arith.divf %59, %60 : vector<8x128xf32>
    %62 = vector.extract_strided_slice %49 {offsets = [0, 256], sizes = [8, 128], strides = [1, 1]} : vector<8x512xf32> to vector<8x128xf32>
    %63 = math.tanh %62 : vector<8x128xf32>
    %64 = vector.extract_strided_slice %49 {offsets = [0, 384], sizes = [8, 128], strides = [1, 1]} : vector<8x512xf32> to vector<8x128xf32>
    %65 = arith.negf %64 : vector<8x128xf32>
    %66 = math.exp %65 : vector<8x128xf32>
    %cst_19 = arith.constant 1.000000e+00 : f32
    %67 = vector.broadcast %cst_19 : f32 to vector<8x128xf32>
    %68 = arith.addf %67, %66 : vector<8x128xf32>
    %69 = arith.divf %67, %68 : vector<8x128xf32>
    %70 = arith.mulf %61, %35 : vector<8x128xf32>
    %71 = arith.mulf %55, %63 : vector<8x128xf32>
    %72 = arith.addf %70, %71 : vector<8x128xf32>
    %73 = math.tanh %72 : vector<8x128xf32>
    %74 = arith.mulf %69, %73 : vector<8x128xf32>
    %75 = arith.truncf %74 : vector<8x128xf32> to vector<8x128xbf16>
    %76 = arith.index_cast %c1_i32 : i32 to index
    %c0_20 = arith.constant 0 : index
    %c0_21 = arith.constant 0 : index
    %77 = vector.load %arg6[%76, %c0_20, %c0_21] : memref<8x8x128xbf16, #tpu.memory_space<vmem>>, vector<1x8x128xbf16>
    %78 = vector.shape_cast %77 : vector<1x8x128xbf16> to vector<8x128xbf16>
    %79 = vector.shape_cast %75 : vector<8x128xbf16> to vector<1x8x128xbf16>
    tpu.vector_store %arg6[%76, %c0_20, %c0_21], %79 {strides = array<i32>} : memref<8x8x128xbf16, #tpu.memory_space<vmem>>, vector<1x8x128xbf16>,
    %c2_i32 = arith.constant 2 : i32
    %80 = arith.index_cast %c2_i32 : i32 to index
    %c0_22 = arith.constant 0 : index
    %c0_23 = arith.constant 0 : index
    %81 = vector.load %arg2[%80, %c0_22, %c0_23] : memref<8x8x512xbf16, #tpu.memory_space<vmem>>, vector<1x8x512xbf16>
    %82 = vector.shape_cast %81 : vector<1x8x512xbf16> to vector<8x512xbf16>
    %83 = arith.extf %82 : vector<8x512xbf16> to vector<8x512xf32>
    %84 = arith.truncf %74 : vector<8x128xf32> to vector<8x128xbf16>
    %cst_24 = arith.constant dense<0.000000e+00> : vector<8x512xf32>
    %85 = tpu.matmul %84, %3, %cst_24 {dimension_numbers = #tpu.dot_dimension_numbers<[1], [0], [0], [1], [0, 0, 1, 1], [], []>} : vector<8x128xbf16>, vector<128x512xbf16>, vector<8x512xf32> -> vector<8x512xf32>
    %86 = arith.addf %83, %85 : vector<8x512xf32>
    %87 = vector.extract_strided_slice %86 {offsets = [0, 0], sizes = [8, 128], strides = [1, 1]} : vector<8x512xf32> to vector<8x128xf32>
    %88 = arith.negf %87 : vector<8x128xf32>
    %89 = math.exp %88 : vector<8x128xf32>
    %cst_25 = arith.constant 1.000000e+00 : f32
    %90 = vector.broadcast %cst_25 : f32 to vector<8x128xf32>
    %91 = arith.addf %90, %89 : vector<8x128xf32>
    %92 = arith.divf %90, %91 : vector<8x128xf32>
    %93 = vector.extract_strided_slice %86 {offsets = [0, 128], sizes = [8, 128], strides = [1, 1]} : vector<8x512xf32> to vector<8x128xf32>
    %94 = arith.negf %93 : vector<8x128xf32>
    %95 = math.exp %94 : vector<8x128xf32>
    %cst_26 = arith.constant 1.000000e+00 : f32
    %96 = vector.broadcast %cst_26 : f32 to vector<8x128xf32>
    %97 = arith.addf %96, %95 : vector<8x128xf32>
    %98 = arith.divf %96, %97 : vector<8x128xf32>
    %99 = vector.extract_strided_slice %86 {offsets = [0, 256], sizes = [8, 128], strides = [1, 1]} : vector<8x512xf32> to vector<8x128xf32>
    %100 = math.tanh %99 : vector<8x128xf32>
    %101 = vector.extract_strided_slice %86 {offsets = [0, 384], sizes = [8, 128], strides = [1, 1]} : vector<8x512xf32> to vector<8x128xf32>
    %102 = arith.negf %101 : vector<8x128xf32>
    %103 = math.exp %102 : vector<8x128xf32>
    %cst_27 = arith.constant 1.000000e+00 : f32
    %104 = vector.broadcast %cst_27 : f32 to vector<8x128xf32>
    %105 = arith.addf %104, %103 : vector<8x128xf32>
    %106 = arith.divf %104, %105 : vector<8x128xf32>
    %107 = arith.mulf %98, %72 : vector<8x128xf32>
    %108 = arith.mulf %92, %100 : vector<8x128xf32>
    %109 = arith.addf %107, %108 : vector<8x128xf32>
    %110 = math.tanh %109 : vector<8x128xf32>
    %111 = arith.mulf %106, %110 : vector<8x128xf32>
    %112 = arith.truncf %111 : vector<8x128xf32> to vector<8x128xbf16>
    %113 = arith.index_cast %c2_i32 : i32 to index
    %c0_28 = arith.constant 0 : index
    %c0_29 = arith.constant 0 : index
    %114 = vector.load %arg6[%113, %c0_28, %c0_29] : memref<8x8x128xbf16, #tpu.memory_space<vmem>>, vector<1x8x128xbf16>
    %115 = vector.shape_cast %114 : vector<1x8x128xbf16> to vector<8x128xbf16>
    %116 = vector.shape_cast %112 : vector<8x128xbf16> to vector<1x8x128xbf16>
    tpu.vector_store %arg6[%113, %c0_28, %c0_29], %116 {strides = array<i32>} : memref<8x8x128xbf16, #tpu.memory_space<vmem>>, vector<1x8x128xbf16>,
    %c3_i32 = arith.constant 3 : i32
    %117 = arith.index_cast %c3_i32 : i32 to index
    %c0_30 = arith.constant 0 : index
    %c0_31 = arith.constant 0 : index
    %118 = vector.load %arg2[%117, %c0_30, %c0_31] : memref<8x8x512xbf16, #tpu.memory_space<vmem>>, vector<1x8x512xbf16>
    %119 = vector.shape_cast %118 : vector<1x8x512xbf16> to vector<8x512xbf16>
    %120 = arith.extf %119 : vector<8x512xbf16> to vector<8x512xf32>
    %121 = arith.truncf %111 : vector<8x128xf32> to vector<8x128xbf16>
    %cst_32 = arith.constant dense<0.000000e+00> : vector<8x512xf32>
    %122 = tpu.matmul %121, %3, %cst_32 {dimension_numbers = #tpu.dot_dimension_numbers<[1], [0], [0], [1], [0, 0, 1, 1], [], []>} : vector<8x128xbf16>, vector<128x512xbf16>, vector<8x512xf32> -> vector<8x512xf32>
    %123 = arith.addf %120, %122 : vector<8x512xf32>
    %124 = vector.extract_strided_slice %123 {offsets = [0, 0], sizes = [8, 128], strides = [1, 1]} : vector<8x512xf32> to vector<8x128xf32>
    %125 = arith.negf %124 : vector<8x128xf32>
    %126 = math.exp %125 : vector<8x128xf32>
    %cst_33 = arith.constant 1.000000e+00 : f32
    %127 = vector.broadcast %cst_33 : f32 to vector<8x128xf32>
    %128 = arith.addf %127, %126 : vector<8x128xf32>
    %129 = arith.divf %127, %128 : vector<8x128xf32>
    %130 = vector.extract_strided_slice %123 {offsets = [0, 128], sizes = [8, 128], strides = [1, 1]} : vector<8x512xf32> to vector<8x128xf32>
    %131 = arith.negf %130 : vector<8x128xf32>
    %132 = math.exp %131 : vector<8x128xf32>
    %cst_34 = arith.constant 1.000000e+00 : f32
    %133 = vector.broadcast %cst_34 : f32 to vector<8x128xf32>
    %134 = arith.addf %133, %132 : vector<8x128xf32>
    %135 = arith.divf %133, %134 : vector<8x128xf32>
    %136 = vector.extract_strided_slice %123 {offsets = [0, 256], sizes = [8, 128], strides = [1, 1]} : vector<8x512xf32> to vector<8x128xf32>
    %137 = math.tanh %136 : vector<8x128xf32>
    %138 = vector.extract_strided_slice %123 {offsets = [0, 384], sizes = [8, 128], strides = [1, 1]} : vector<8x512xf32> to vector<8x128xf32>
    %139 = arith.negf %138 : vector<8x128xf32>
    %140 = math.exp %139 : vector<8x128xf32>
    %cst_35 = arith.constant 1.000000e+00 : f32
    %141 = vector.broadcast %cst_35 : f32 to vector<8x128xf32>
    %142 = arith.addf %141, %140 : vector<8x128xf32>
    %143 = arith.divf %141, %142 : vector<8x128xf32>
    %144 = arith.mulf %135, %109 : vector<8x128xf32>
    %145 = arith.mulf %129, %137 : vector<8x128xf32>
    %146 = arith.addf %144, %145 : vector<8x128xf32>
    %147 = math.tanh %146 : vector<8x128xf32>
    %148 = arith.mulf %143, %147 : vector<8x128xf32>
    %149 = arith.truncf %148 : vector<8x128xf32> to vector<8x128xbf16>
    %150 = arith.index_cast %c3_i32 : i32 to index
    %c0_36 = arith.constant 0 : index
    %c0_37 = arith.constant 0 : index
    %151 = vector.load %arg6[%150, %c0_36, %c0_37] : memref<8x8x128xbf16, #tpu.memory_space<vmem>>, vector<1x8x128xbf16>
    %152 = vector.shape_cast %151 : vector<1x8x128xbf16> to vector<8x128xbf16>
    %153 = vector.shape_cast %149 : vector<8x128xbf16> to vector<1x8x128xbf16>
    tpu.vector_store %arg6[%150, %c0_36, %c0_37], %153 {strides = array<i32>} : memref<8x8x128xbf16, #tpu.memory_space<vmem>>, vector<1x8x128xbf16>,
    %c4_i32 = arith.constant 4 : i32
    %154 = arith.index_cast %c4_i32 : i32 to index
    %c0_38 = arith.constant 0 : index
    %c0_39 = arith.constant 0 : index
    %155 = vector.load %arg2[%154, %c0_38, %c0_39] : memref<8x8x512xbf16, #tpu.memory_space<vmem>>, vector<1x8x512xbf16>
    %156 = vector.shape_cast %155 : vector<1x8x512xbf16> to vector<8x512xbf16>
    %157 = arith.extf %156 : vector<8x512xbf16> to vector<8x512xf32>
    %158 = arith.truncf %148 : vector<8x128xf32> to vector<8x128xbf16>
    %cst_40 = arith.constant dense<0.000000e+00> : vector<8x512xf32>
    %159 = tpu.matmul %158, %3, %cst_40 {dimension_numbers = #tpu.dot_dimension_numbers<[1], [0], [0], [1], [0, 0, 1, 1], [], []>} : vector<8x128xbf16>, vector<128x512xbf16>, vector<8x512xf32> -> vector<8x512xf32>
    %160 = arith.addf %157, %159 : vector<8x512xf32>
    %161 = vector.extract_strided_slice %160 {offsets = [0, 0], sizes = [8, 128], strides = [1, 1]} : vector<8x512xf32> to vector<8x128xf32>
    %162 = arith.negf %161 : vector<8x128xf32>
    %163 = math.exp %162 : vector<8x128xf32>
    %cst_41 = arith.constant 1.000000e+00 : f32
    %164 = vector.broadcast %cst_41 : f32 to vector<8x128xf32>
    %165 = arith.addf %164, %163 : vector<8x128xf32>
    %166 = arith.divf %164, %165 : vector<8x128xf32>
    %167 = vector.extract_strided_slice %160 {offsets = [0, 128], sizes = [8, 128], strides = [1, 1]} : vector<8x512xf32> to vector<8x128xf32>
    %168 = arith.negf %167 : vector<8x128xf32>
    %169 = math.exp %168 : vector<8x128xf32>
    %cst_42 = arith.constant 1.000000e+00 : f32
    %170 = vector.broadcast %cst_42 : f32 to vector<8x128xf32>
    %171 = arith.addf %170, %169 : vector<8x128xf32>
    %172 = arith.divf %170, %171 : vector<8x128xf32>
    %173 = vector.extract_strided_slice %160 {offsets = [0, 256], sizes = [8, 128], strides = [1, 1]} : vector<8x512xf32> to vector<8x128xf32>
    %174 = math.tanh %173 : vector<8x128xf32>
    %175 = vector.extract_strided_slice %160 {offsets = [0, 384], sizes = [8, 128], strides = [1, 1]} : vector<8x512xf32> to vector<8x128xf32>
    %176 = arith.negf %175 : vector<8x128xf32>
    %177 = math.exp %176 : vector<8x128xf32>
    %cst_43 = arith.constant 1.000000e+00 : f32
    %178 = vector.broadcast %cst_43 : f32 to vector<8x128xf32>
    %179 = arith.addf %178, %177 : vector<8x128xf32>
    %180 = arith.divf %178, %179 : vector<8x128xf32>
    %181 = arith.mulf %172, %146 : vector<8x128xf32>
    %182 = arith.mulf %166, %174 : vector<8x128xf32>
    %183 = arith.addf %181, %182 : vector<8x128xf32>
    %184 = math.tanh %183 : vector<8x128xf32>
    %185 = arith.mulf %180, %184 : vector<8x128xf32>
    %186 = arith.truncf %185 : vector<8x128xf32> to vector<8x128xbf16>
    %187 = arith.index_cast %c4_i32 : i32 to index
    %c0_44 = arith.constant 0 : index
    %c0_45 = arith.constant 0 : index
    %188 = vector.load %arg6[%187, %c0_44, %c0_45] : memref<8x8x128xbf16, #tpu.memory_space<vmem>>, vector<1x8x128xbf16>
    %189 = vector.shape_cast %188 : vector<1x8x128xbf16> to vector<8x128xbf16>
    %190 = vector.shape_cast %186 : vector<8x128xbf16> to vector<1x8x128xbf16>
    tpu.vector_store %arg6[%187, %c0_44, %c0_45], %190 {strides = array<i32>} : memref<8x8x128xbf16, #tpu.memory_space<vmem>>, vector<1x8x128xbf16>,
    %c5_i32 = arith.constant 5 : i32
    %191 = arith.index_cast %c5_i32 : i32 to index
    %c0_46 = arith.constant 0 : index
    %c0_47 = arith.constant 0 : index
    %192 = vector.load %arg2[%191, %c0_46, %c0_47] : memref<8x8x512xbf16, #tpu.memory_space<vmem>>, vector<1x8x512xbf16>
    %193 = vector.shape_cast %192 : vector<1x8x512xbf16> to vector<8x512xbf16>
    %194 = arith.extf %193 : vector<8x512xbf16> to vector<8x512xf32>
    %195 = arith.truncf %185 : vector<8x128xf32> to vector<8x128xbf16>
    %cst_48 = arith.constant dense<0.000000e+00> : vector<8x512xf32>
    %196 = tpu.matmul %195, %3, %cst_48 {dimension_numbers = #tpu.dot_dimension_numbers<[1], [0], [0], [1], [0, 0, 1, 1], [], []>} : vector<8x128xbf16>, vector<128x512xbf16>, vector<8x512xf32> -> vector<8x512xf32>
    %197 = arith.addf %194, %196 : vector<8x512xf32>
    %198 = vector.extract_strided_slice %197 {offsets = [0, 0], sizes = [8, 128], strides = [1, 1]} : vector<8x512xf32> to vector<8x128xf32>
    %199 = arith.negf %198 : vector<8x128xf32>
    %200 = math.exp %199 : vector<8x128xf32>
    %cst_49 = arith.constant 1.000000e+00 : f32
    %201 = vector.broadcast %cst_49 : f32 to vector<8x128xf32>
    %202 = arith.addf %201, %200 : vector<8x128xf32>
    %203 = arith.divf %201, %202 : vector<8x128xf32>
    %204 = vector.extract_strided_slice %197 {offsets = [0, 128], sizes = [8, 128], strides = [1, 1]} : vector<8x512xf32> to vector<8x128xf32>
    %205 = arith.negf %204 : vector<8x128xf32>
    %206 = math.exp %205 : vector<8x128xf32>
    %cst_50 = arith.constant 1.000000e+00 : f32
    %207 = vector.broadcast %cst_50 : f32 to vector<8x128xf32>
    %208 = arith.addf %207, %206 : vector<8x128xf32>
    %209 = arith.divf %207, %208 : vector<8x128xf32>
    %210 = vector.extract_strided_slice %197 {offsets = [0, 256], sizes = [8, 128], strides = [1, 1]} : vector<8x512xf32> to vector<8x128xf32>
    %211 = math.tanh %210 : vector<8x128xf32>
    %212 = vector.extract_strided_slice %197 {offsets = [0, 384], sizes = [8, 128], strides = [1, 1]} : vector<8x512xf32> to vector<8x128xf32>
    %213 = arith.negf %212 : vector<8x128xf32>
    %214 = math.exp %213 : vector<8x128xf32>
    %cst_51 = arith.constant 1.000000e+00 : f32
    %215 = vector.broadcast %cst_51 : f32 to vector<8x128xf32>
    %216 = arith.addf %215, %214 : vector<8x128xf32>
    %217 = arith.divf %215, %216 : vector<8x128xf32>
    %218 = arith.mulf %209, %183 : vector<8x128xf32>
    %219 = arith.mulf %203, %211 : vector<8x128xf32>
    %220 = arith.addf %218, %219 : vector<8x128xf32>
    %221 = math.tanh %220 : vector<8x128xf32>
    %222 = arith.mulf %217, %221 : vector<8x128xf32>
    %223 = arith.truncf %222 : vector<8x128xf32> to vector<8x128xbf16>
    %224 = arith.index_cast %c5_i32 : i32 to index
    %c0_52 = arith.constant 0 : index
    %c0_53 = arith.constant 0 : index
    %225 = vector.load %arg6[%224, %c0_52, %c0_53] : memref<8x8x128xbf16, #tpu.memory_space<vmem>>, vector<1x8x128xbf16>
    %226 = vector.shape_cast %225 : vector<1x8x128xbf16> to vector<8x128xbf16>
    %227 = vector.shape_cast %223 : vector<8x128xbf16> to vector<1x8x128xbf16>
    tpu.vector_store %arg6[%224, %c0_52, %c0_53], %227 {strides = array<i32>} : memref<8x8x128xbf16, #tpu.memory_space<vmem>>, vector<1x8x128xbf16>,
    %c6_i32 = arith.constant 6 : i32
    %228 = arith.index_cast %c6_i32 : i32 to index
    %c0_54 = arith.constant 0 : index
    %c0_55 = arith.constant 0 : index
    %229 = vector.load %arg2[%228, %c0_54, %c0_55] : memref<8x8x512xbf16, #tpu.memory_space<vmem>>, vector<1x8x512xbf16>
    %230 = vector.shape_cast %229 : vector<1x8x512xbf16> to vector<8x512xbf16>
    %231 = arith.extf %230 : vector<8x512xbf16> to vector<8x512xf32>
    %232 = arith.truncf %222 : vector<8x128xf32> to vector<8x128xbf16>
    %cst_56 = arith.constant dense<0.000000e+00> : vector<8x512xf32>
    %233 = tpu.matmul %232, %3, %cst_56 {dimension_numbers = #tpu.dot_dimension_numbers<[1], [0], [0], [1], [0, 0, 1, 1], [], []>} : vector<8x128xbf16>, vector<128x512xbf16>, vector<8x512xf32> -> vector<8x512xf32>
    %234 = arith.addf %231, %233 : vector<8x512xf32>
    %235 = vector.extract_strided_slice %234 {offsets = [0, 0], sizes = [8, 128], strides = [1, 1]} : vector<8x512xf32> to vector<8x128xf32>
    %236 = arith.negf %235 : vector<8x128xf32>
    %237 = math.exp %236 : vector<8x128xf32>
    %cst_57 = arith.constant 1.000000e+00 : f32
    %238 = vector.broadcast %cst_57 : f32 to vector<8x128xf32>
    %239 = arith.addf %238, %237 : vector<8x128xf32>
    %240 = arith.divf %238, %239 : vector<8x128xf32>
    %241 = vector.extract_strided_slice %234 {offsets = [0, 128], sizes = [8, 128], strides = [1, 1]} : vector<8x512xf32> to vector<8x128xf32>
    %242 = arith.negf %241 : vector<8x128xf32>
    %243 = math.exp %242 : vector<8x128xf32>
    %cst_58 = arith.constant 1.000000e+00 : f32
    %244 = vector.broadcast %cst_58 : f32 to vector<8x128xf32>
    %245 = arith.addf %244, %243 : vector<8x128xf32>
    %246 = arith.divf %244, %245 : vector<8x128xf32>
    %247 = vector.extract_strided_slice %234 {offsets = [0, 256], sizes = [8, 128], strides = [1, 1]} : vector<8x512xf32> to vector<8x128xf32>
    %248 = math.tanh %247 : vector<8x128xf32>
    %249 = vector.extract_strided_slice %234 {offsets = [0, 384], sizes = [8, 128], strides = [1, 1]} : vector<8x512xf32> to vector<8x128xf32>
    %250 = arith.negf %249 : vector<8x128xf32>
    %251 = math.exp %250 : vector<8x128xf32>
    %cst_59 = arith.constant 1.000000e+00 : f32
    %252 = vector.broadcast %cst_59 : f32 to vector<8x128xf32>
    %253 = arith.addf %252, %251 : vector<8x128xf32>
    %254 = arith.divf %252, %253 : vector<8x128xf32>
    %255 = arith.mulf %246, %220 : vector<8x128xf32>
    %256 = arith.mulf %240, %248 : vector<8x128xf32>
    %257 = arith.addf %255, %256 : vector<8x128xf32>
    %258 = math.tanh %257 : vector<8x128xf32>
    %259 = arith.mulf %254, %258 : vector<8x128xf32>
    %260 = arith.truncf %259 : vector<8x128xf32> to vector<8x128xbf16>
    %261 = arith.index_cast %c6_i32 : i32 to index
    %c0_60 = arith.constant 0 : index
    %c0_61 = arith.constant 0 : index
    %262 = vector.load %arg6[%261, %c0_60, %c0_61] : memref<8x8x128xbf16, #tpu.memory_space<vmem>>, vector<1x8x128xbf16>
    %263 = vector.shape_cast %262 : vector<1x8x128xbf16> to vector<8x128xbf16>
    %264 = vector.shape_cast %260 : vector<8x128xbf16> to vector<1x8x128xbf16>
    tpu.vector_store %arg6[%261, %c0_60, %c0_61], %264 {strides = array<i32>} : memref<8x8x128xbf16, #tpu.memory_space<vmem>>, vector<1x8x128xbf16>,
    %c7_i32 = arith.constant 7 : i32
    %265 = arith.index_cast %c7_i32 : i32 to index
    %c0_62 = arith.constant 0 : index
    %c0_63 = arith.constant 0 : index
    %266 = vector.load %arg2[%265, %c0_62, %c0_63] : memref<8x8x512xbf16, #tpu.memory_space<vmem>>, vector<1x8x512xbf16>
    %267 = vector.shape_cast %266 : vector<1x8x512xbf16> to vector<8x512xbf16>
    %268 = arith.extf %267 : vector<8x512xbf16> to vector<8x512xf32>
    %269 = arith.truncf %259 : vector<8x128xf32> to vector<8x128xbf16>
    %cst_64 = arith.constant dense<0.000000e+00> : vector<8x512xf32>
    %270 = tpu.matmul %269, %3, %cst_64 {dimension_numbers = #tpu.dot_dimension_numbers<[1], [0], [0], [1], [0, 0, 1, 1], [], []>} : vector<8x128xbf16>, vector<128x512xbf16>, vector<8x512xf32> -> vector<8x512xf32>
    %271 = arith.addf %268, %270 : vector<8x512xf32>
    %272 = vector.extract_strided_slice %271 {offsets = [0, 0], sizes = [8, 128], strides = [1, 1]} : vector<8x512xf32> to vector<8x128xf32>
    %273 = arith.negf %272 : vector<8x128xf32>
    %274 = math.exp %273 : vector<8x128xf32>
    %cst_65 = arith.constant 1.000000e+00 : f32
    %275 = vector.broadcast %cst_65 : f32 to vector<8x128xf32>
    %276 = arith.addf %275, %274 : vector<8x128xf32>
    %277 = arith.divf %275, %276 : vector<8x128xf32>
    %278 = vector.extract_strided_slice %271 {offsets = [0, 128], sizes = [8, 128], strides = [1, 1]} : vector<8x512xf32> to vector<8x128xf32>
    %279 = arith.negf %278 : vector<8x128xf32>
    %280 = math.exp %279 : vector<8x128xf32>
    %cst_66 = arith.constant 1.000000e+00 : f32
    %281 = vector.broadcast %cst_66 : f32 to vector<8x128xf32>
    %282 = arith.addf %281, %280 : vector<8x128xf32>
    %283 = arith.divf %281, %282 : vector<8x128xf32>
    %284 = vector.extract_strided_slice %271 {offsets = [0, 256], sizes = [8, 128], strides = [1, 1]} : vector<8x512xf32> to vector<8x128xf32>
    %285 = math.tanh %284 : vector<8x128xf32>
    %286 = vector.extract_strided_slice %271 {offsets = [0, 384], sizes = [8, 128], strides = [1, 1]} : vector<8x512xf32> to vector<8x128xf32>
    %287 = arith.negf %286 : vector<8x128xf32>
    %288 = math.exp %287 : vector<8x128xf32>
    %cst_67 = arith.constant 1.000000e+00 : f32
    %289 = vector.broadcast %cst_67 : f32 to vector<8x128xf32>
    %290 = arith.addf %289, %288 : vector<8x128xf32>
    %291 = arith.divf %289, %290 : vector<8x128xf32>
    %292 = arith.mulf %283, %257 : vector<8x128xf32>
    %293 = arith.mulf %277, %285 : vector<8x128xf32>
    %294 = arith.addf %292, %293 : vector<8x128xf32>
    %295 = math.tanh %294 : vector<8x128xf32>
    %296 = arith.mulf %291, %295 : vector<8x128xf32>
    %297 = arith.truncf %296 : vector<8x128xf32> to vector<8x128xbf16>
    %298 = arith.index_cast %c7_i32 : i32 to index
    %c0_68 = arith.constant 0 : index
    %c0_69 = arith.constant 0 : index
    %299 = vector.load %arg6[%298, %c0_68, %c0_69] : memref<8x8x128xbf16, #tpu.memory_space<vmem>>, vector<1x8x128xbf16>
    %300 = vector.shape_cast %299 : vector<1x8x128xbf16> to vector<8x128xbf16>
    %301 = vector.shape_cast %297 : vector<8x128xbf16> to vector<1x8x128xbf16>
    tpu.vector_store %arg6[%298, %c0_68, %c0_69], %301 {strides = array<i32>} : memref<8x8x128xbf16, #tpu.memory_space<vmem>>, vector<1x8x128xbf16>,
    %c8_i32 = arith.constant 8 : i32
    %c0_70 = arith.constant 0 : index
    %c0_71 = arith.constant 0 : index
    %302 = vector.load %arg9[%c0_70, %c0_71] : memref<8x128xf32, #tpu.memory_space<vmem>>, vector<8x128xf32>
    tpu.vector_store %arg9[%c0_70, %c0_71], %296 {strides = array<i32>} : memref<8x128xf32, #tpu.memory_space<vmem>>, vector<8x128xf32>,
    %c0_72 = arith.constant 0 : index
    %c0_73 = arith.constant 0 : index
    %303 = vector.load %arg10[%c0_72, %c0_73] : memref<8x128xf32, #tpu.memory_space<vmem>>, vector<8x128xf32>
    tpu.vector_store %arg10[%c0_72, %c0_73], %294 {strides = array<i32>} : memref<8x128xf32, #tpu.memory_space<vmem>>, vector<8x128xf32>,
    %c0_i32_74 = arith.constant 0 : i32
    %304 = arith.cmpi eq, %arg1, %c0_i32_74 : i32
    %305 = arith.extui %304 : i1 to i32
    %c0_i32_75 = arith.constant 0 : i32
    %306 = arith.cmpi ne, %305, %c0_i32_75 : i32
    scf.if %306 {
      %c0_76 = arith.constant 0 : index
      %c0_77 = arith.constant 0 : index
      %307 = vector.load %arg7[%c0_76, %c0_77] : memref<8x128xf32, #tpu.memory_space<vmem>>, vector<8x128xf32>
      tpu.vector_store %arg7[%c0_76, %c0_77], %296 {strides = array<i32>} : memref<8x128xf32, #tpu.memory_space<vmem>>, vector<8x128xf32>,
      %c0_78 = arith.constant 0 : index
      %c0_79 = arith.constant 0 : index
      %308 = vector.load %arg8[%c0_78, %c0_79] : memref<8x128xf32, #tpu.memory_space<vmem>>, vector<8x128xf32>
      tpu.vector_store %arg8[%c0_78, %c0_79], %294 {strides = array<i32>} : memref<8x128xf32, #tpu.memory_space<vmem>>, vector<8x128xf32>,
    } else {
    }
    return
  }
  func.func @transform_0(%arg0: i32, %arg1: i32) -> (i32, i32, i32) {
    %c0_i32 = arith.constant 0 : i32
    %c0_i32_0 = arith.constant 0 : i32
    return %arg1, %arg0, %c0_i32 : i32, i32, i32
  }
  func.func @transform_1(%arg0: i32, %arg1: i32) -> (i32, i32) {
    %c0_i32 = arith.constant 0 : i32
    %c0_i32_0 = arith.constant 0 : i32
    return %arg0, %c0_i32 : i32, i32
  }
  func.func @transform_2(%arg0: i32, %arg1: i32) -> (i32, i32) {
    %c0_i32 = arith.constant 0 : i32
    %c0_i32_0 = arith.constant 0 : i32
    return %arg0, %c0_i32 : i32, i32
  }
  func.func @transform_3(%arg0: i32, %arg1: i32) -> (i32, i32) {
    %c0_i32 = arith.constant 0 : i32
    %c0_i32_0 = arith.constant 0 : i32
    %c0_i32_1 = arith.constant 0 : i32
    return %c0_i32, %c0_i32_0 : i32, i32
  }
  func.func @transform_4(%arg0: i32, %arg1: i32) -> (i32, i32, i32) {
    %c0_i32 = arith.constant 0 : i32
    %c0_i32_0 = arith.constant 0 : i32
    return %arg1, %arg0, %c0_i32 : i32, i32, i32
  }
  func.func @transform_5(%arg0: i32, %arg1: i32) -> (i32, i32) {
    %c0_i32 = arith.constant 0 : i32
    %c0_i32_0 = arith.constant 0 : i32
    return %arg0, %c0_i32 : i32, i32
  }
  func.func @transform_6(%arg0: i32, %arg1: i32) -> (i32, i32) {
    %c0_i32 = arith.constant 0 : i32
    %c0_i32_0 = arith.constant 0 : i32
    return %arg0, %c0_i32 : i32, i32
  }
}

module attributes {stable_mosaic.version = 11 : i64} {
  func.func @_matmul_bias_kernel(%arg0: i32, %arg1: i32, %arg2: memref<128x128xbf16, #tpu.memory_space<vmem>>, %arg3: memref<128x512xbf16, #tpu.memory_space<vmem>>, %arg4: memref<1x512xf32, #tpu.memory_space<vmem>>, %arg5: memref<128x512xbf16, #tpu.memory_space<vmem>>) attributes {dimension_semantics = [#tpu.dimension_semantics<parallel>, #tpu.dimension_semantics<parallel>], iteration_bounds = array<i64: 1, 1>, scalar_prefetch = 0 : i64, scratch_operands = 0 : i64, tpu.core_type = #tpu.core_type<tc>, window_params = [{transform_indices = @transform_0, window_bounds = array<i64: 128, 128>}, {transform_indices = @transform_1, window_bounds = array<i64: 128, 512>}, {transform_indices = @transform_2, window_bounds = array<i64: 1, 512>}, {transform_indices = @transform_3, window_bounds = array<i64: 128, 512>}]} {
    %c0 = arith.constant 0 : index
    %c0_0 = arith.constant 0 : index
    %0 = vector.load %arg2[%c0, %c0_0] : memref<128x128xbf16, #tpu.memory_space<vmem>>, vector<128x128xbf16>
    %c0_1 = arith.constant 0 : index
    %c0_2 = arith.constant 0 : index
    %1 = vector.load %arg3[%c0_1, %c0_2] : memref<128x512xbf16, #tpu.memory_space<vmem>>, vector<128x512xbf16>
    %cst = arith.constant dense<0.000000e+00> : vector<128x512xf32>
    %2 = tpu.matmul %0, %1, %cst {dimension_numbers = #tpu.dot_dimension_numbers<[1], [0], [0], [1], [0, 0, 1, 1], [], []>} : vector<128x128xbf16>, vector<128x512xbf16>, vector<128x512xf32> -> vector<128x512xf32>
    %c0_3 = arith.constant 0 : index
    %c0_4 = arith.constant 0 : index
    %3 = vector.load %arg4[%c0_3, %c0_4] : memref<1x512xf32, #tpu.memory_space<vmem>>, vector<1x512xf32>
    %4 = vector.broadcast %3 : vector<1x512xf32> to vector<128x512xf32>
    %5 = arith.addf %2, %4 : vector<128x512xf32>
    %6 = arith.truncf %5 : vector<128x512xf32> to vector<128x512xbf16>
    %c0_5 = arith.constant 0 : index
    %c0_6 = arith.constant 0 : index
    %7 = vector.load %arg5[%c0_5, %c0_6] : memref<128x512xbf16, #tpu.memory_space<vmem>>, vector<128x512xbf16>
    tpu.vector_store %arg5[%c0_5, %c0_6], %6 {strides = array<i32>} : memref<128x512xbf16, #tpu.memory_space<vmem>>, vector<128x512xbf16>,
    return
  }
  func.func @transform_0(%arg0: i32, %arg1: i32) -> (i32, i32) {
    %c0_i32 = arith.constant 0 : i32
    %c0_i32_0 = arith.constant 0 : i32
    return %arg0, %c0_i32 : i32, i32
  }
  func.func @transform_1(%arg0: i32, %arg1: i32) -> (i32, i32) {
    %c0_i32 = arith.constant 0 : i32
    %c0_i32_0 = arith.constant 0 : i32
    return %c0_i32, %arg1 : i32, i32
  }
  func.func @transform_2(%arg0: i32, %arg1: i32) -> (i32, i32) {
    %c0_i32 = arith.constant 0 : i32
    %c0_i32_0 = arith.constant 0 : i32
    return %c0_i32, %arg1 : i32, i32
  }
  func.func @transform_3(%arg0: i32, %arg1: i32) -> (i32, i32) {
    %c0_i32 = arith.constant 0 : i32
    return %arg0, %arg1 : i32, i32
  }
}

module attributes {stable_mosaic.version = 11 : i64} {
  func.func @_matmul_bias_kernel(%arg0: i32, %arg1: memref<128x128xbf16, #tpu.memory_space<vmem>>, %arg2: memref<128x256xbf16, #tpu.memory_space<vmem>>, %arg3: memref<1x256xf32, #tpu.memory_space<vmem>>, %arg4: memref<128x256xbf16, #tpu.memory_space<vmem>>) attributes {dimension_semantics = [#tpu.dimension_semantics<parallel>], iteration_bounds = array<i64: 1>, scalar_prefetch = 0 : i64, scratch_operands = 0 : i64, tpu.core_type = #tpu.core_type<tc>, window_params = [{pipeline_mode = #tpu.pipeline_mode<synchronous>, transform_indices = @transform_0, window_bounds = array<i64: 128, 128>}, {transform_indices = @transform_1, window_bounds = array<i64: 128, 256>}, {transform_indices = @transform_2, window_bounds = array<i64: 1, 256>}, {transform_indices = @transform_3, window_bounds = array<i64: 128, 256>}]} {
    %c0 = arith.constant 0 : index
    %c0_0 = arith.constant 0 : index
    %0 = vector.load %arg1[%c0, %c0_0] : memref<128x128xbf16, #tpu.memory_space<vmem>>, vector<128x128xbf16>
    %c0_1 = arith.constant 0 : index
    %c0_2 = arith.constant 0 : index
    %1 = vector.load %arg2[%c0_1, %c0_2] : memref<128x256xbf16, #tpu.memory_space<vmem>>, vector<128x256xbf16>
    %cst = arith.constant dense<0.000000e+00> : vector<128x256xf32>
    %2 = tpu.matmul %0, %1, %cst {dimension_numbers = #tpu.dot_dimension_numbers<[1], [0], [0], [1], [0, 0, 1, 1], [], []>} : vector<128x128xbf16>, vector<128x256xbf16>, vector<128x256xf32> -> vector<128x256xf32>
    %c0_3 = arith.constant 0 : index
    %c0_4 = arith.constant 0 : index
    %3 = vector.load %arg3[%c0_3, %c0_4] : memref<1x256xf32, #tpu.memory_space<vmem>>, vector<1x256xf32>
    %4 = vector.broadcast %3 : vector<1x256xf32> to vector<128x256xf32>
    %5 = arith.addf %2, %4 : vector<128x256xf32>
    %6 = arith.truncf %5 : vector<128x256xf32> to vector<128x256xbf16>
    %c0_5 = arith.constant 0 : index
    %c0_6 = arith.constant 0 : index
    %7 = vector.load %arg4[%c0_5, %c0_6] : memref<128x256xbf16, #tpu.memory_space<vmem>>, vector<128x256xbf16>
    tpu.vector_store %arg4[%c0_5, %c0_6], %6 {strides = array<i32>} : memref<128x256xbf16, #tpu.memory_space<vmem>>, vector<128x256xbf16>,
    return
  }
  func.func @transform_0(%arg0: i32) -> (i32, i32) {
    %c0_i32 = arith.constant 0 : i32
    %c0_i32_0 = arith.constant 0 : i32
    %c0_i32_1 = arith.constant 0 : i32
    return %c0_i32, %c0_i32_0 : i32, i32
  }
  func.func @transform_1(%arg0: i32) -> (i32, i32) {
    %c0_i32 = arith.constant 0 : i32
    %c0_i32_0 = arith.constant 0 : i32
    return %c0_i32, %arg0 : i32, i32
  }
  func.func @transform_2(%arg0: i32) -> (i32, i32) {
    %c0_i32 = arith.constant 0 : i32
    %c0_i32_0 = arith.constant 0 : i32
    return %c0_i32, %arg0 : i32, i32
  }
  func.func @transform_3(%arg0: i32) -> (i32, i32) {
    %c0_i32 = arith.constant 0 : i32
    %c0_i32_0 = arith.constant 0 : i32
    return %c0_i32, %arg0 : i32, i32
  }
}

</mosaic_0001>

<bundles_post_ra>
// kernel: tpu_custom_call.1
= control target key start
LH: loop header
LB: loop body
LE: loop exit
PB: predicated region body
PF: predicated region fallthrough
CT: control target
= control target key end

     0   :  { %6 = vsyncpa [#allocation3], 0  ;;  %s482_s0 = inlined_call_operand.hbm [shape: f32[8,128], index: 0, kind: input, shape index: {}]   ;;  %s483_s1 = inlined_call_operand.hbm [shape: f32[16,128], index: 1, kind: output, shape index: {}]  }
   0x1   :  { %7 = vsyncpa [#allocation4], 0 }
   0x2   :  { %9 = vsyncpa [#allocation4 + $0x1], 0  ;;  %s352_s6 = smov 0   ;;  %s354_s7 = smov 0  }
   0x3   :  { %s356_s8 = smov 0   ;;  %s358_s9 = smov 0  }
   0x4 LB: > { %s373_s10 = sadd.s32 4294967295, %s338_s9   ;;  %s184_s11 = sadd.s32 4294967294, %s338_s9   ;;  %s338_s9 = sphi %s358_s9, %s499_s9   ;;  %s334_s8 = sphi %s356_s8, %s498_s8   ;;  %s330_s7 = sphi %s354_s7, %s497_s7   ;;  %s326_s6 = sphi %s352_s6, %s496_s6  }
   0x5   : > { %s377_s12 = sadd.s32 1, %s338_s9   ;;  %s43_s13 = sadd.s32 1, %s334_s8 }
   0x6   : > { %s40_s14 = ssub.s32 %s338_s9, %s377_s12  ;;  %p53_p0 = scmp.ne.s32.totalorder %s334_s8, %s330_s7 }
   0x7   : > { %p41_p1 = scmp.eq.s32.totalorder %s40_s14, 0  ;;  %p54_p2 = scmp.eq.s32.totalorder %s373_s10, 1 }
   0x8   : > { %p59_p3 = scmp.ne.s32.totalorder %s330_s7, %s326_s6  ;;  %p60_p4 = scmp.eq.s32.totalorder %s184_s11, 1 }
   0x9   : > { %s388_s15 = scalar_select %p41_p1, %s334_s8, %s43_s13  }
   0xa   : > { %p390_p5 = por %p54_p2, %p53_p0  ;;  %p394_p6 = por %p60_p4, %p59_p3 }
   0xb   : > { %p185_p7 = scmp.ge.s32.totalorder %s338_s9, 1  ;;  %p67_p8 = scmp.lt.s32.totalorder %s338_s9, 3 }
   0xc   : > { %s487_s16 = scalar_select %p390_p5, 1, 0 }
   0xd   : > { %s488_s17 = scalar_select %p394_p6, 1, 0 }
   0xe   : > { %p484_p9 = scmp.eq.s32.totalorder %s373_s10, 0  ;;  %p401_p10 = pnand %p185_p7, %p67_p8 }
   0xf   : > { %s340_s19 = smov [#allocation2]   ;;  %s244_s24 = scalar_lea.hbm %s482_s0, 128 }
  0x10   : > { %s489_s18 = scalar_select %p401_p10, 1, 0 }
  0x11   : > { %s80_s20 = sshll.u32 %s340_s19, 4  ;;  %p200_p11 = pneg %p401_p10  ;;  %s81_s20 = int_to_ptr.vmem [resolvable:$true] %s80_s20 }
  0x12   : > { %p245_p13 = scmp.ne.s32.totalorder %s482_s0, %s244_s24  ;;  %p251_p3 = scmp.lt.u32.totalorder %s244_s24, %s482_s0 }
  0x13   : > { %p409_p12 = pnand %p484_p9, %p200_p11 }
  0x15   : > { %p246_p0 = pneg %p409_p12 }
  0x17   : > { %p247_p1 = pnand %p246_p0, %p245_p13 }
  0x19   : > { %p248_p2 = pneg %p247_p1 }
  0x1b   : > { %p253_p4 = pnand %p251_p3, %p248_p2 }
  0x1d   : > { %256 = shalt.err (!%p253_p4)
}
  0x1e   : > { %s257_s29 = scalar_lea.vmem %s81_s20, 128  ;;  %p265_p9 = scmp.lt.s32.totalorder %s81_s20, %s81_s20 }
  0x1f   : > { %p258_p7 = scmp.ne.s32.totalorder %s81_s20, %s257_s29  ;;  %p266_p6 = scmp.lt.s32.totalorder %s257_s29, %s257_s29 }
  0x21   : > { %p260_p8 = pnand %p258_p7, %p246_p0  ;;  %p267_p5 = por %p266_p6, %p265_p9 }
  0x23   : > { %p261_p11 = pneg %p260_p8 }
  0x25   : > { %p268_p10 = pnand %p267_p5, %p261_p11 }
  0x27   : > { %271 = shalt.err (!%p268_p10)
}
  0x28   : > { %203 = dma.hbm_to_vmem [thread:$0]  (!%p409_p12), %s482_s0, 128, %s81_s20, [#allocation3]  }
  0x29   : > { %p491_p13 = scmp.ne.s32.totalorder %s489_s18, 0 }
  0x2a   : > { %p492_p1 = scmp.eq.s32.totalorder (!%p491_p13), %s373_s10, 0 }
  0x2b   : > { %93 = sbr.rel (%p491_p13) target bundleno = 77 (0x4d), region = 24 }
  0x32   : > { %317 = dma.done.wait (%p492_p1), [#allocation3], 128   ;;  %p493_p0 = pmov %p492_p1 }
  0x33   : > { %s105_s3 = sand.u32 1, %s330_s7   ;;  %s191_s13 = sshll.u32 %s373_s10, 7  ;;  %v108_v0 = vld [vmem:[#allocation2] sm:$0xff] }
  0x34   : > { %319 = vsyncadd (%p493_p0), [#allocation3], 4294967168  ;;  %s189_s4 = sshll.u32 %s105_s3, 3  ;;  %v109_v1 = vadd.f32 1.0, %v108_v0  ;;  %s442_s19 = scalar_lea.hbm %s483_s1, %s191_s13 }
  0x35   : > { %s107_s5 = scalar_lea.vmem [#allocation5], %s189_s4  ;;  %s112_s20 = scalar_lea.sflag [#allocation4], %s105_s3 }
  0x36   : > { %s125_s11 = sshll.u32 %s107_s5, 4  ;;  %110 = vst [vmem:[%s107_s5] sm:$0xff] %v109_v1  ;;  %p494_p6 = scmp.ne.s32.totalorder %s487_s16, 0  ;;  %s437_s11 = int_to_ptr.vmem [resolvable:$true] %s125_s11 }
  0x37   : > { %s272_s21 = scalar_lea.vmem %s437_s11, 128  ;;  %s341_s10 = smov [#allocation5]  }
  0x38   : > { %p273_p5 = scmp.ne.s32.totalorder %s437_s11, %s272_s21  ;;  %s276_s22 = sshll.u32 %s341_s10, 4  ;;  %s277_s22 = int_to_ptr.vmem [resolvable:$false] %s276_s22 }
  0x39   : > { %s278_s23 = scalar_lea.vmem %s277_s22, 256  ;;  %p279_p12 = scmp.lt.s32.totalorder %s437_s11, %s277_s22 }
  0x3a   : > { %p274_p9 = pnand %p273_p5, %p494_p6  ;;  %p280_p2 = scmp.lt.s32.totalorder %s278_s23, %s272_s21 }
  0x3c   : > { %p275_p10 = pneg %p274_p9  ;;  %p281_p3 = por %p280_p2, %p279_p12 }
  0x3e   : > { %p282_p4 = pnand %p281_p3, %p275_p10 }
  0x40   : > { %285 = shalt.err (!%p282_p4)
}
  0x41   : > { %s286_s24 = scalar_lea.hbm %s442_s19, 128  ;;  %s290_s27 = scalar_lea.hbm %s483_s1, 256 }
  0x42   : > { %p287_p7 = scmp.ne.s32.totalorder %s442_s19, %s286_s24  ;;  %p291_p13 = scmp.lt.u32.totalorder %s442_s19, %s483_s1 }
  0x43   : > { %p292_p1 = scmp.lt.u32.totalorder %s290_s27, %s286_s24  ;;  %p294_p5 = scmp.lt.u32.totalorder %s286_s24, %s442_s19 }
  0x44   : > { %p288_p8 = pnand %p287_p7, %p494_p6 }
  0x45   : > { %p293_p0 = por %p292_p1, %p291_p13 }
  0x46   : > { %p289_p11 = pneg %p288_p8 }
  0x47   : > { %p295_p9 = por %p294_p5, %p293_p0 }
  0x49   : > { %p296_p10 = pnand %p295_p9, %p289_p11 }
  0x4b   : > { %299 = shalt.err (!%p296_p10)
}
  0x4c   : > { %198 = dma.vmem_to_hbm [thread:$0]  (%p494_p6), %s437_s11, 128, %s442_s19, %s112_s20  }
  0x4d PF: > { %p210_p12 = scmp.ge.s32.totalorder %s338_s9, 2  ;;  %s137_s30 = sand.u32 1, %s326_s6  }
  0x4e   : > { %p495_p2 = scmp.ne.s32.totalorder %s488_s17, 0  ;;  %s138_s2 = scalar_lea.sflag [#allocation4], %s137_s30 }
  0x50   : > { %p205_p3 = pnand %p210_p12, %p495_p2 }
  0x52   : > { %321 = dma.done.wait (!%p205_p3), %s138_s2, 128  }
  0x53   : > { %323 = vsyncadd (!%p205_p3), %s138_s2, 4294967168  ;;  %p12_p4 = scmp.ge.s32.totalorder %s377_s12, 4   ;;  %s496_s6 = smov %s330_s7 }
  0x54   : > { %s497_s7 = smov %s334_s8  ;;  %s498_s8 = smov %s388_s15 }
  0x55   : > { %s499_s9 = smov %s377_s12  ;;  %14 = sbr.rel (!%p12_p4) target bundleno = 4 (0x4), region = 61 }
  0x5c   :  { %143 = vsyncpa [#allocation3], 1 }
  0x5d   :  { %145 = vsyncpa [#allocation3 + $0x1], 1 }
  0x5e   :  { %146 = vsyncpa [#allocation4], 1 }
  0x5f   :  { %148 = vsyncpa [#allocation4 + $0x1], 1 }

// kernel: language_model_forward.13
= control target key start
LH: loop header
LB: loop body
LE: loop exit
PB: predicated region body
PF: predicated region fallthrough
CT: control target
= control target key end

     0   :  { %8 = vsyncpa [#allocation3], 0  ;;  %s804_s0 = inlined_call_operand.hbm [shape: bf16[128,128], index: 0, kind: input, shape index: {}]   ;;  %s805_s1 = inlined_call_operand.hbm [shape: bf16[128,256], index: 1, kind: input, shape index: {}]   ;;  %s806_s2 = inlined_call_operand.hbm [shape: f32[1,256], index: 2, kind: input, shape index: {}]   ;;  %s807_s3 = inlined_call_operand.hbm [shape: bf16[128,256], index: 3, kind: output, shape index: {}]  }
   0x1   :  { %9 = vsyncpa [#allocation6], 0 }
   0x2   :  { %10 = vsyncpa [#allocation4], 0  ;;  %s677_s12 = smov [#allocation5]   ;;  %s583_s16 = scalar_lea.hbm %s805_s1, 2048 }
   0x3   :  { %s28_s13 = sshll.u32 %s677_s12, 4  ;;  %p584_p0 = scmp.ne.s32.totalorder %s805_s1, %s583_s16  ;;  %s29_s13 = int_to_ptr.vmem [resolvable:$true] %s28_s13 }
   0x4   :  { %p587_p1 = scmp.lt.u32.totalorder %s583_s16, %s805_s1 }
   0x6   :  { %p589_p2 = pnand %p587_p1, %p584_p0 }
   0x8   :  { %592 = shalt.err (!%p589_p2)
}
   0x9   :  { %s593_s21 = scalar_lea.vmem %s29_s13, 2048  ;;  %p598_p4 = scmp.lt.s32.totalorder %s29_s13, %s29_s13 }
   0xa   :  { %p594_p3 = scmp.ne.s32.totalorder %s29_s13, %s593_s21  ;;  %p599_p5 = scmp.lt.s32.totalorder %s593_s21, %s593_s21 }
   0xc   :  { %p600_p6 = por %p599_p5, %p598_p4 }
   0xe   :  { %p601_p7 = pnand %p600_p6, %p594_p3 }
  0x10   :  { %604 = shalt.err (!%p601_p7)
}
  0x11   :  { %s678_s22 = smov 128   ;;  %s679_s23 = smov 8  }
  0x12   :  { %34 = dma.hbm_to_vmem [thread:$0]  %s805_s1, 2048, %s29_s13, [#allocation6], %s678_s22, %s678_s22, %s679_s23  }
  0x13   :  { %s680_s26 = smov [#allocation2]   ;;  %s605_s30 = scalar_lea.hbm %s804_s0, 1024 }
  0x14   :  { %s16_s27 = sshll.u32 %s680_s26, 4  ;;  %p606_p8 = scmp.ne.s32.totalorder %s804_s0, %s605_s30  ;;  %s17_s27 = int_to_ptr.vmem [resolvable:$true] %s16_s27 }
  0x15   :  { %p609_p9 = scmp.lt.u32.totalorder %s605_s30, %s804_s0 }
  0x17   :  { %p611_p10 = pnand %p609_p9, %p606_p8 }
  0x19   :  { %614 = shalt.err (!%p611_p10)
}
  0x1a   :  { %s615_s8 = scalar_lea.vmem %s17_s27, 1024  ;;  %p620_p12 = scmp.lt.s32.totalorder %s17_s27, %s17_s27 }
  0x1b   :  { %p616_p11 = scmp.ne.s32.totalorder %s17_s27, %s615_s8  ;;  %p621_p13 = scmp.lt.s32.totalorder %s615_s8, %s615_s8 }
  0x1d   :  { %p622_p0 = por %p621_p13, %p620_p12 }
  0x1f   :  { %p623_p1 = pnand %p622_p0, %p616_p11 }
  0x21   :  { %626 = shalt.err (!%p623_p1)
}
  0x22   :  { %s681_s1 = smov 64   ;;  %s682_s9 = smov 4  }
  0x23   :  { %22 = dma.hbm_to_vmem [thread:$0]  %s804_s0, 1024, %s17_s27, [#allocation3], %s681_s1, %s681_s1, %s682_s9  }
  0x24   :  { %s683_s12 = smov [#allocation7]   ;;  %s627_s16 = scalar_lea.hbm %s806_s2, 32 }
  0x25   :  { %s41_s13 = sshll.u32 %s683_s12, 4  ;;  %p628_p2 = scmp.ne.s32.totalorder %s806_s2, %s627_s16  ;;  %s42_s13 = int_to_ptr.vmem [resolvable:$true] %s41_s13 }
  0x26   :  { %p631_p3 = scmp.lt.u32.totalorder %s627_s16, %s806_s2 }
  0x28   :  { %p633_p4 = pnand %p631_p3, %p628_p2 }
  0x2a   :  { %636 = shalt.err (!%p633_p4)
}
  0x2b   :  { %s637_s21 = scalar_lea.vmem %s42_s13, 32  ;;  %p642_p6 = scmp.lt.s32.totalorder %s42_s13, %s42_s13 }
  0x2c   :  { %p638_p5 = scmp.ne.s32.totalorder %s42_s13, %s637_s21  ;;  %p643_p7 = scmp.lt.s32.totalorder %s637_s21, %s637_s21 }
  0x2e   :  { %p644_p8 = por %p643_p7, %p642_p6 }
  0x30   :  { %p645_p9 = pnand %p644_p8, %p638_p5 }
  0x32   :  { %648 = shalt.err (!%p645_p9)
}
  0x33   :  { %44 = dma.hbm_to_vmem [thread:$0]  %s806_s2, 32, %s42_s13, [#allocation6]  }
  0x34   :  { %671 = dma.done.wait [#allocation3], 1024  }
  0x35   :  { %672 = vsyncadd [#allocation3], 4294966272 }
  0x36   :  { %673 = dma.done.wait [#allocation6], 2080  }
  0x37   :  { %674 = vsyncadd [#allocation6], 4294965216  ;;  %v684_v0 = vmov 0   ;;  %v551_v1 = vld [vmem:[#allocation5 + $0x4] ss:$8 sps:$4 sm:$0xff]   ;;  %v579_v21 = vld [vmem:[#allocation2 + $0x10] sm:$0xff]   ;;  %v89_v25 = vlaneseq }
  0x38   :  { %259 = vmatprep.mubr.bf16.mxu0 %v684_v0  ;;  %299 = vmatprep.mubr.bf16.mxu1 %v684_v0  ;;  %v553_v2 = vld [vmem:[#allocation5] ss:$8 sps:$4 sm:$0xff]   ;;  %v554_v3 = vld [vmem:[#allocation5 + $0x14] ss:$8 sps:$4 sm:$0xff]   ;;  %v556_v4 = vld [vmem:[#allocation5 + $0x10] ss:$8 sps:$4 sm:$0xff]  }
  0x39   :  { %227 = vmatprep.subr.bf16.mxu0 %v551_v1  ;;  %526 = vmatprep.subr.bf16.mxu1 %v551_v1  ;;  %v557_v5 = vld [vmem:[#allocation5 + $0x24] ss:$8 sps:$4 sm:$0xff]   ;;  %v559_v6 = vld [vmem:[#allocation5 + $0x20] ss:$8 sps:$4 sm:$0xff]   ;;  %v560_v7 = vld [vmem:[#allocation5 + $0x34] ss:$8 sps:$4 sm:$0xff]  }
  0x3a   :  { %228 = vmatpush1.bf16.msra.mxu0 %v553_v2  ;;  %534 = vmatpush1.bf16.msra.mxu1 %v553_v2  ;;  %v562_v8 = vld [vmem:[#allocation5 + $0x30] ss:$8 sps:$4 sm:$0xff]   ;;  %v563_v9 = vld [vmem:[#allocation5 + $0x44] ss:$8 sps:$4 sm:$0xff]   ;;  %v565_v10 = vld [vmem:[#allocation5 + $0x40] ss:$8 sps:$4 sm:$0xff]  }
  0x3b   :  { %229 = vmatprep.subr.bf16.mxu0 %v554_v3  ;;  %527 = vmatprep.subr.bf16.mxu1 %v554_v3  ;;  %v566_v11 = vld [vmem:[#allocation5 + $0x54] ss:$8 sps:$4 sm:$0xff]   ;;  %v568_v12 = vld [vmem:[#allocation5 + $0x50] ss:$8 sps:$4 sm:$0xff]   ;;  %v569_v13 = vld [vmem:[#allocation5 + $0x64] ss:$8 sps:$4 sm:$0xff]  }
  0x3c   :  { %v571_v14 = vld [vmem:[#allocation5 + $0x60] ss:$8 sps:$4 sm:$0xff]   ;;  %v572_v15 = vld [vmem:[#allocation5 + $0x74] ss:$8 sps:$4 sm:$0xff]   ;;  %v574_v16 = vld [vmem:[#allocation5 + $0x70] ss:$8 sps:$4 sm:$0xff]  }
  0x3d   :  { %v575_v17 = vld [vmem:[#allocation2] sm:$0xff]   ;;  %v577_v19 = vld [vmem:[#allocation2 + $0x8] sm:$0xff]   ;;  %v580_v22 = vld [vmem:[#allocation2 + $0x30] sm:$0xff]   ;;  %v90_v26 = vshrl.u32 %v89_v25, 7  ;;  %s685_s2 = smov [#allocation8]  }
  0x3e   :  { %230 = vmatpush1.bf16.msra.mxu0 %v556_v4  ;;  %535 = vmatpush1.bf16.msra.mxu1 %v556_v4  ;;  %v576_v18 = vld [vmem:[#allocation2 + $0x20] sm:$0xff]   ;;  %v578_v20 = vld [vmem:[#allocation2 + $0x28] sm:$0xff]   ;;  %v581_v23 = vld [vmem:[#allocation2 + $0x18] sm:$0xff]   ;;  %s457_s25 = sshll.u32 %s685_s2, 4  ;;  %s458_s25 = int_to_ptr.vmem [resolvable:$true] %s457_s25 }
  0x3f   :  { %231 = vmatprep.subr.bf16.mxu0 %v557_v5  ;;  %528 = vmatprep.subr.bf16.mxu1 %v557_v5  ;;  %v582_v24 = vld [vmem:[#allocation2 + $0x38] sm:$0xff]   ;;  %v91_v27 = vsub.s32 0, %v90_v26  ;;  %v87_v28 = vld [vmem:[#allocation7] sm:$0x3]  ;;  %v95_v29 = vsub.s32 1, %v90_v26  ;;  %s649_s26 = scalar_lea.vmem %s458_s25, 2048  ;;  %p654_p11 = scmp.lt.s32.totalorder %s458_s25, %s458_s25 }
  0x40   :  { %p650_p10 = scmp.ne.s32.totalorder %s458_s25, %s649_s26  ;;  %p655_p12 = scmp.lt.s32.totalorder %s649_s26, %s649_s26 }
  0x41   :  { %v753_v30 = vrot.slane %v87_v28, %v91_v27  ;;  %v755_v31 = vrot.slane %v87_v28, %v95_v29 }
  0x42   :  { %232 = vmatpush1.bf16.msra.mxu0 %v559_v6  ;;  %536 = vmatpush1.bf16.msra.mxu1 %v559_v6  ;;  %p656_p13 = por %p655_p12, %p654_p11 }
  0x43   :  { %233 = vmatprep.subr.bf16.mxu0 %v560_v7  ;;  %529 = vmatprep.subr.bf16.mxu1 %v560_v7 }
  0x44   :  { %p657_p0 = pnand %p656_p13, %p650_p10 }
  0x46   :  { %234 = vmatpush1.bf16.msra.mxu0 %v562_v8  ;;  %537 = vmatpush1.bf16.msra.mxu1 %v562_v8 }
  0x47   :  { %235 = vmatprep.subr.bf16.mxu0 %v563_v9  ;;  %530 = vmatprep.subr.bf16.mxu1 %v563_v9 }
  0x4a   :  { %236 = vmatpush1.bf16.msra.mxu0 %v565_v10  ;;  %538 = vmatpush1.bf16.msra.mxu1 %v565_v10 }
  0x4b   :  { %237 = vmatprep.subr.bf16.mxu0 %v566_v11  ;;  %531 = vmatprep.subr.bf16.mxu1 %v566_v11 }
  0x4e   :  { %238 = vmatpush1.bf16.msra.mxu0 %v568_v12  ;;  %539 = vmatpush1.bf16.msra.mxu1 %v568_v12 }
  0x4f   :  { %239 = vmatprep.subr.bf16.mxu0 %v569_v13  ;;  %532 = vmatprep.subr.bf16.mxu1 %v569_v13 }
  0x52   :  { %240 = vmatpush1.bf16.msra.mxu0 %v571_v14  ;;  %540 = vmatpush1.bf16.msra.mxu1 %v571_v14 }
  0x53   :  { %241 = vmatprep.subr.bf16.mxu0 %v572_v15  ;;  %533 = vmatprep.subr.bf16.mxu1 %v572_v15 }
  0x56   :  { %242 = vmatpush1.bf16.msra.mxu0 %v574_v16  ;;  %541 = vmatpush1.bf16.msra.mxu1 %v574_v16 }
  0x59   :  { %260 = vmatmul.mubr.bf16.vlgmr.msra.gmra.mrb[0].mxu0 %v575_v17  ;;  %300 = vmatmul.mubr.bf16.vlgmr.msra.gmra.mrb[0].mxu1 %v576_v18 }
  0x5a   :  { %269 = vmatprep.mubr.bf16.mxu0 %v684_v0  ;;  %309 = vmatprep.mubr.bf16.mxu1 %v684_v0 }
  0x61   :  { %270 = vmatmul.mubr.bf16.gmra.mrb[4].mxu0 %v577_v19  ;;  %310 = vmatmul.mubr.bf16.gmra.mrb[4].mxu1 %v578_v20 }
  0x62   :  { %279 = vmatprep.mubr.bf16.mxu0 %v684_v0  ;;  %319 = vmatprep.mubr.bf16.mxu1 %v684_v0 }
  0x69   :  { %280 = vmatmul.mubr.bf16.gmra.mrb[8].mxu0 %v579_v21  ;;  %320 = vmatmul.mubr.bf16.gmra.mrb[8].mxu1 %v580_v22 }
  0x6a   :  { %289 = vmatprep.mubr.bf16.mxu0 %v684_v0  ;;  %329 = vmatprep.mubr.bf16.mxu1 %v684_v0 }
  0x71   :  { %290 = vmatmul.mubr.bf16.gmra.mrb[12].mxu0 %v581_v23  ;;  %330 = vmatmul.mubr.bf16.gmra.mrb[12].mxu1 %v582_v24 }
 0x12c   :  { %v261_v32 = vpop.f32.mrb[0].mxu0  ;;  %v301_v33 = vpop.f32.mrb[0].mxu1 }
 0x12d   :  { %v262_v34 = vadd.f32 %v261_v32, %v753_v30  ;;  %v302_v35 = vadd.f32 %v301_v33, %v753_v30  ;;  %v263_v36 = vpop.f32.mrb[1].mxu0  ;;  %v303_v37 = vpop.f32.mrb[1].mxu1 }
 0x12e   :  { %v264_v38 = vadd.f32 %v263_v36, %v755_v31  ;;  %v304_v39 = vadd.f32 %v303_v37, %v755_v31  ;;  %v265_v40 = vpop.f32.mrb[2].mxu0  ;;  %v305_v41 = vpop.f32.mrb[2].mxu1 }
 0x12f   :  { %v266_v42 = vadd.f32 %v265_v40, %v753_v30  ;;  %v306_v43 = vadd.f32 %v305_v41, %v753_v30  ;;  %v267_v44 = vpop.f32.mrb[3].mxu0  ;;  %v307_v45 = vpop.f32.mrb[3].mxu1 }
 0x130   :  { %v510_v46 = vpack.c.bf16 %v264_v38, %v262_v34  ;;  %v518_v47 = vpack.c.bf16 %v304_v39, %v302_v35  ;;  %v268_v48 = vadd.f32 %v267_v44, %v755_v31  ;;  %v308_v49 = vadd.f32 %v307_v45, %v755_v31 }
 0x132   :  { %436 = vst [vmem:[#allocation8] sm:$0xff] %v510_v46  ;;  %444 = vst [vmem:[#allocation8 + $0x40] sm:$0xff] %v518_v47  ;;  %v511_v50 = vpack.c.bf16 %v268_v48, %v266_v42  ;;  %v519_v51 = vpack.c.bf16 %v308_v49, %v306_v43 }
 0x134   :  { %437 = vst [vmem:[#allocation8 + $0x8] sm:$0xff] %v511_v50  ;;  %445 = vst [vmem:[#allocation8 + $0x48] sm:$0xff] %v519_v51  ;;  %v271_v52 = vpop.f32.mrb[4].mxu0  ;;  %v311_v53 = vpop.f32.mrb[4].mxu1 }
 0x135   :  { %v272_v54 = vadd.f32 %v271_v52, %v753_v30  ;;  %v312_v55 = vadd.f32 %v311_v53, %v753_v30  ;;  %v273_v56 = vpop.f32.mrb[5].mxu0  ;;  %v313_v57 = vpop.f32.mrb[5].mxu1 }
 0x136   :  { %v274_v58 = vadd.f32 %v273_v56, %v755_v31  ;;  %v314_v59 = vadd.f32 %v313_v57, %v755_v31  ;;  %v275_v60 = vpop.f32.mrb[6].mxu0  ;;  %v315_v61 = vpop.f32.mrb[6].mxu1 }
 0x137   :  { %v276_v62 = vadd.f32 %v275_v60, %v753_v30  ;;  %v316_v63 = vadd.f32 %v315_v61, %v753_v30  ;;  %v277_v0 = vpop.f32.mrb[7].mxu0  ;;  %v317_v1 = vpop.f32.mrb[7].mxu1 }
 0x138   :  { %v512_v2 = vpack.c.bf16 %v274_v58, %v272_v54  ;;  %v520_v3 = vpack.c.bf16 %v314_v59, %v312_v55  ;;  %v278_v4 = vadd.f32 %v277_v0, %v755_v31  ;;  %v318_v5 = vadd.f32 %v317_v1, %v755_v31 }
 0x13a   :  { %438 = vst [vmem:[#allocation8 + $0x10] sm:$0xff] %v512_v2  ;;  %446 = vst [vmem:[#allocation8 + $0x50] sm:$0xff] %v520_v3  ;;  %v513_v6 = vpack.c.bf16 %v278_v4, %v276_v62  ;;  %v521_v7 = vpack.c.bf16 %v318_v5, %v316_v63 }
 0x13c   :  { %439 = vst [vmem:[#allocation8 + $0x18] sm:$0xff] %v513_v6  ;;  %447 = vst [vmem:[#allocation8 + $0x58] sm:$0xff] %v521_v7  ;;  %v281_v8 = vpop.f32.mrb[8].mxu0  ;;  %v321_v9 = vpop.f32.mrb[8].mxu1 }
 0x13d   :  { %v282_v10 = vadd.f32 %v281_v8, %v753_v30  ;;  %v322_v11 = vadd.f32 %v321_v9, %v753_v30  ;;  %v283_v12 = vpop.f32.mrb[9].mxu0  ;;  %v323_v13 = vpop.f32.mrb[9].mxu1 }
 0x13e   :  { %v284_v14 = vadd.f32 %v283_v12, %v755_v31  ;;  %v324_v15 = vadd.f32 %v323_v13, %v755_v31  ;;  %v285_v16 = vpop.f32.mrb[10].mxu0  ;;  %v325_v17 = vpop.f32.mrb[10].mxu1 }
 0x13f   :  { %v286_v18 = vadd.f32 %v285_v16, %v753_v30  ;;  %v326_v19 = vadd.f32 %v325_v17, %v753_v30  ;;  %v287_v20 = vpop.f32.mrb[11].mxu0  ;;  %v327_v21 = vpop.f32.mrb[11].mxu1 }
 0x140   :  { %v514_v22 = vpack.c.bf16 %v284_v14, %v282_v10  ;;  %v522_v23 = vpack.c.bf16 %v324_v15, %v322_v11  ;;  %v288_v24 = vadd.f32 %v287_v20, %v755_v31  ;;  %v328_v25 = vadd.f32 %v327_v21, %v755_v31 }
 0x142   :  { %440 = vst [vmem:[#allocation8 + $0x20] sm:$0xff] %v514_v22  ;;  %448 = vst [vmem:[#allocation8 + $0x60] sm:$0xff] %v522_v23  ;;  %v515_v26 = vpack.c.bf16 %v288_v24, %v286_v18  ;;  %v523_v27 = vpack.c.bf16 %v328_v25, %v326_v19 }
 0x144   :  { %441 = vst [vmem:[#allocation8 + $0x28] sm:$0xff] %v515_v26  ;;  %449 = vst [vmem:[#allocation8 + $0x68] sm:$0xff] %v523_v27  ;;  %v291_v28 = vpop.f32.mrb[12].mxu0  ;;  %v331_v29 = vpop.f32.mrb[12].mxu1 }
 0x145   :  { %v292_v32 = vadd.f32 %v291_v28, %v753_v30  ;;  %v332_v33 = vadd.f32 %v331_v29, %v753_v30  ;;  %v293_v34 = vpop.f32.mrb[13].mxu0  ;;  %v333_v35 = vpop.f32.mrb[13].mxu1 }
 0x146   :  { %v294_v36 = vadd.f32 %v293_v34, %v755_v31  ;;  %v334_v37 = vadd.f32 %v333_v35, %v755_v31  ;;  %v295_v38 = vpop.f32.mrb[14].mxu0  ;;  %v335_v39 = vpop.f32.mrb[14].mxu1 }
 0x147   :  { %v296_v40 = vadd.f32 %v295_v38, %v753_v30  ;;  %v336_v41 = vadd.f32 %v335_v39, %v753_v30  ;;  %v297_v42 = vpop.f32.mrb[15].mxu0  ;;  %v337_v43 = vpop.f32.mrb[15].mxu1 }
 0x148   :  { %v516_v44 = vpack.c.bf16 %v294_v36, %v292_v32  ;;  %v524_v45 = vpack.c.bf16 %v334_v37, %v332_v33  ;;  %v298_v46 = vadd.f32 %v297_v42, %v755_v31  ;;  %v338_v47 = vadd.f32 %v337_v43, %v755_v31 }
 0x14a   :  { %442 = vst [vmem:[#allocation8 + $0x30] sm:$0xff] %v516_v44  ;;  %450 = vst [vmem:[#allocation8 + $0x70] sm:$0xff] %v524_v45  ;;  %v517_v48 = vpack.c.bf16 %v298_v46, %v296_v40  ;;  %v525_v49 = vpack.c.bf16 %v338_v47, %v336_v41 }
 0x14c   :  { %443 = vst [vmem:[#allocation8 + $0x38] sm:$0xff] %v517_v48  ;;  %451 = vst [vmem:[#allocation8 + $0x78] sm:$0xff] %v525_v49 }
 0x14d   :  { %660 = shalt.err (!%p657_p0)
}
 0x14e   :  { %s661_s29 = scalar_lea.hbm %s807_s3, 2048 }
 0x14f   :  { %p662_p1 = scmp.ne.s32.totalorder %s807_s3, %s661_s29  ;;  %p665_p2 = scmp.lt.u32.totalorder %s661_s29, %s807_s3 }
 0x151   :  { %p667_p3 = pnand %p665_p2, %p662_p1 }
 0x153   :  { %670 = shalt.err (!%p667_p3)
}
 0x154   :  { %463 = dma.vmem_to_hbm [thread:$0]  %s458_s25, 2048, %s807_s3, [#allocation4], %s678_s22, %s678_s22, %s679_s23  }
 0x155   :  { %675 = dma.done.wait [#allocation4], 2048  }
 0x156   :  { %676 = vsyncadd [#allocation4], 4294965248 }
 0x157   :  { %467 = vsyncpa [#allocation3], 1 }
 0x158   :  { %468 = vsyncpa [#allocation6], 1 }
 0x159   :  { %469 = vsyncpa [#allocation4], 1 }

// kernel: language_model_forward.7
= control target key start
LH: loop header
LB: loop body
LE: loop exit
PB: predicated region body
PF: predicated region fallthrough
CT: control target
= control target key end

     0   :  { %8 = vsyncpa [#allocation3], 0  ;;  %s1235_s0 = inlined_call_operand.hbm [shape: bf16[128,128], index: 0, kind: input, shape index: {}]   ;;  %s1236_s1 = inlined_call_operand.hbm [shape: bf16[128,512], index: 1, kind: input, shape index: {}]   ;;  %s1237_s2 = inlined_call_operand.hbm [shape: f32[1,512], index: 2, kind: input, shape index: {}]   ;;  %s1238_s3 = inlined_call_operand.hbm [shape: bf16[128,512], index: 3, kind: output, shape index: {}]  }
   0x1   :  { %9 = vsyncpa [#allocation6], 0 }
   0x2   :  { %10 = vsyncpa [#allocation4], 0  ;;  %s1064_s12 = smov [#allocation5]   ;;  %s970_s16 = scalar_lea.hbm %s1236_s1, 4096 }
   0x3   :  { %s28_s13 = sshll.u32 %s1064_s12, 4  ;;  %p971_p0 = scmp.ne.s32.totalorder %s1236_s1, %s970_s16  ;;  %s29_s13 = int_to_ptr.vmem [resolvable:$true] %s28_s13 }
   0x4   :  { %p974_p1 = scmp.lt.u32.totalorder %s970_s16, %s1236_s1 }
   0x6   :  { %p976_p2 = pnand %p974_p1, %p971_p0 }
   0x8   :  { %979 = shalt.err (!%p976_p2)
}
   0x9   :  { %s980_s21 = scalar_lea.vmem %s29_s13, 4096  ;;  %p985_p4 = scmp.lt.s32.totalorder %s29_s13, %s29_s13 }
   0xa   :  { %p981_p3 = scmp.ne.s32.totalorder %s29_s13, %s980_s21  ;;  %p986_p5 = scmp.lt.s32.totalorder %s980_s21, %s980_s21 }
   0xc   :  { %p987_p6 = por %p986_p5, %p985_p4 }
   0xe   :  { %p988_p7 = pnand %p987_p6, %p981_p3 }
  0x10   :  { %991 = shalt.err (!%p988_p7)
}
  0x11   :  { %s1065_s22 = smov 256   ;;  %s1066_s23 = smov 16  }
  0x12   :  { %34 = dma.hbm_to_vmem [thread:$0]  %s1236_s1, 4096, %s29_s13, [#allocation6], %s1065_s22, %s1065_s22, %s1066_s23  }
  0x13   :  { %s1067_s26 = smov [#allocation2]   ;;  %s992_s30 = scalar_lea.hbm %s1235_s0, 1024 }
  0x14   :  { %s16_s27 = sshll.u32 %s1067_s26, 4  ;;  %p993_p8 = scmp.ne.s32.totalorder %s1235_s0, %s992_s30  ;;  %s17_s27 = int_to_ptr.vmem [resolvable:$true] %s16_s27 }
  0x15   :  { %p996_p9 = scmp.lt.u32.totalorder %s992_s30, %s1235_s0 }
  0x17   :  { %p998_p10 = pnand %p996_p9, %p993_p8 }
  0x19   :  { %1001 = shalt.err (!%p998_p10)
}
  0x1a   :  { %s1002_s8 = scalar_lea.vmem %s17_s27, 1024  ;;  %p1007_p12 = scmp.lt.s32.totalorder %s17_s27, %s17_s27 }
  0x1b   :  { %p1003_p11 = scmp.ne.s32.totalorder %s17_s27, %s1002_s8  ;;  %p1008_p13 = scmp.lt.s32.totalorder %s1002_s8, %s1002_s8 }
  0x1d   :  { %p1009_p0 = por %p1008_p13, %p1007_p12 }
  0x1f   :  { %p1010_p1 = pnand %p1009_p0, %p1003_p11 }
  0x21   :  { %1013 = shalt.err (!%p1010_p1)
}
  0x22   :  { %s1068_s1 = smov 64   ;;  %s1069_s9 = smov 4  }
  0x23   :  { %22 = dma.hbm_to_vmem [thread:$0]  %s1235_s0, 1024, %s17_s27, [#allocation3], %s1068_s1, %s1068_s1, %s1069_s9  }
  0x24   :  { %s1070_s12 = smov [#allocation7]   ;;  %s1014_s16 = scalar_lea.hbm %s1237_s2, 64 }
  0x25   :  { %s41_s13 = sshll.u32 %s1070_s12, 4  ;;  %p1015_p2 = scmp.ne.s32.totalorder %s1237_s2, %s1014_s16  ;;  %s42_s13 = int_to_ptr.vmem [resolvable:$true] %s41_s13 }
  0x26   :  { %p1018_p3 = scmp.lt.u32.totalorder %s1014_s16, %s1237_s2 }
  0x28   :  { %p1020_p4 = pnand %p1018_p3, %p1015_p2 }
  0x2a   :  { %1023 = shalt.err (!%p1020_p4)
}
  0x2b   :  { %s1024_s21 = scalar_lea.vmem %s42_s13, 64  ;;  %p1029_p6 = scmp.lt.s32.totalorder %s42_s13, %s42_s13 }
  0x2c   :  { %p1025_p5 = scmp.ne.s32.totalorder %s42_s13, %s1024_s21  ;;  %p1030_p7 = scmp.lt.s32.totalorder %s1024_s21, %s1024_s21 }
  0x2e   :  { %p1031_p8 = por %p1030_p7, %p1029_p6 }
  0x30   :  { %p1032_p9 = pnand %p1031_p8, %p1025_p5 }
  0x32   :  { %1035 = shalt.err (!%p1032_p9)
}
  0x33   :  { %44 = dma.hbm_to_vmem [thread:$0]  %s1237_s2, 64, %s42_s13, [#allocation6]  }
  0x34   :  { %1058 = dma.done.wait [#allocation3], 1024  }
  0x35   :  { %1059 = vsyncadd [#allocation3], 4294966272 }
  0x36   :  { %1060 = dma.done.wait [#allocation6], 4160  }
  0x37   :  { %1061 = vsyncadd [#allocation6], 4294963136  ;;  %v1071_v0 = vmov 0   ;;  %v914_v1 = vld [vmem:[#allocation5 + $0x4] ss:$16 sps:$4 sm:$0xff]   ;;  %v963_v34 = vld [vmem:[#allocation2 + $0x8] sm:$0xff]   ;;  %v105_v41 = vlaneseq }
  0x38   :  { %365 = vmatprep.mubr.bf16.mxu0 %v1071_v0  ;;  %478 = vmatprep.mubr.bf16.mxu1 %v1071_v0  ;;  %v916_v2 = vld [vmem:[#allocation5 + $0xc] ss:$16 sps:$4 sm:$0xff]   ;;  %v918_v3 = vld [vmem:[#allocation5] ss:$16 sps:$4 sm:$0xff]   ;;  %v919_v4 = vld [vmem:[#allocation5 + $0x8] ss:$16 sps:$4 sm:$0xff]  }
  0x39   :  { %333 = vmatprep.subr.bf16.mxu0 %v914_v1  ;;  %446 = vmatprep.subr.bf16.mxu1 %v916_v2  ;;  %v920_v5 = vld [vmem:[#allocation5 + $0x24] ss:$16 sps:$4 sm:$0xff]   ;;  %v922_v6 = vld [vmem:[#allocation5 + $0x2c] ss:$16 sps:$4 sm:$0xff]   ;;  %v924_v7 = vld [vmem:[#allocation5 + $0x20] ss:$16 sps:$4 sm:$0xff]  }
  0x3a   :  { %334 = vmatpush1.bf16.msra.mxu0 %v918_v3  ;;  %447 = vmatpush1.bf16.msra.mxu1 %v919_v4  ;;  %v925_v8 = vld [vmem:[#allocation5 + $0x28] ss:$16 sps:$4 sm:$0xff]   ;;  %v926_v9 = vld [vmem:[#allocation5 + $0x44] ss:$16 sps:$4 sm:$0xff]   ;;  %v928_v10 = vld [vmem:[#allocation5 + $0x4c] ss:$16 sps:$4 sm:$0xff]  }
  0x3b   :  { %335 = vmatprep.subr.bf16.mxu0 %v920_v5  ;;  %448 = vmatprep.subr.bf16.mxu1 %v922_v6  ;;  %v930_v11 = vld [vmem:[#allocation5 + $0x40] ss:$16 sps:$4 sm:$0xff]   ;;  %v931_v12 = vld [vmem:[#allocation5 + $0x48] ss:$16 sps:$4 sm:$0xff]   ;;  %v932_v13 = vld [vmem:[#allocation5 + $0x64] ss:$16 sps:$4 sm:$0xff]  }
  0x3c   :  { %v934_v14 = vld [vmem:[#allocation5 + $0x6c] ss:$16 sps:$4 sm:$0xff]   ;;  %v936_v15 = vld [vmem:[#allocation5 + $0x60] ss:$16 sps:$4 sm:$0xff]   ;;  %v937_v16 = vld [vmem:[#allocation5 + $0x68] ss:$16 sps:$4 sm:$0xff]  }
  0x3d   :  { %v938_v17 = vld [vmem:[#allocation5 + $0x84] ss:$16 sps:$4 sm:$0xff]   ;;  %v940_v18 = vld [vmem:[#allocation5 + $0x8c] ss:$16 sps:$4 sm:$0xff]   ;;  %v942_v19 = vld [vmem:[#allocation5 + $0x80] ss:$16 sps:$4 sm:$0xff]  }
  0x3e   :  { %336 = vmatpush1.bf16.msra.mxu0 %v924_v7  ;;  %449 = vmatpush1.bf16.msra.mxu1 %v925_v8  ;;  %v943_v20 = vld [vmem:[#allocation5 + $0x88] ss:$16 sps:$4 sm:$0xff]   ;;  %v944_v21 = vld [vmem:[#allocation5 + $0xa4] ss:$16 sps:$4 sm:$0xff]   ;;  %v946_v22 = vld [vmem:[#allocation5 + $0xac] ss:$16 sps:$4 sm:$0xff]  }
  0x3f   :  { %337 = vmatprep.subr.bf16.mxu0 %v926_v9  ;;  %450 = vmatprep.subr.bf16.mxu1 %v928_v10  ;;  %v948_v23 = vld [vmem:[#allocation5 + $0xa0] ss:$16 sps:$4 sm:$0xff]   ;;  %v949_v24 = vld [vmem:[#allocation5 + $0xa8] ss:$16 sps:$4 sm:$0xff]   ;;  %v950_v25 = vld [vmem:[#allocation5 + $0xc4] ss:$16 sps:$4 sm:$0xff]  }
  0x40   :  { %v952_v26 = vld [vmem:[#allocation5 + $0xcc] ss:$16 sps:$4 sm:$0xff]   ;;  %v954_v27 = vld [vmem:[#allocation5 + $0xc0] ss:$16 sps:$4 sm:$0xff]   ;;  %v955_v28 = vld [vmem:[#allocation5 + $0xc8] ss:$16 sps:$4 sm:$0xff]  }
  0x41   :  { %v956_v29 = vld [vmem:[#allocation5 + $0xe4] ss:$16 sps:$4 sm:$0xff]   ;;  %v958_v30 = vld [vmem:[#allocation5 + $0xec] ss:$16 sps:$4 sm:$0xff]   ;;  %v960_v31 = vld [vmem:[#allocation5 + $0xe0] ss:$16 sps:$4 sm:$0xff]  }
  0x42   :  { %338 = vmatpush1.bf16.msra.mxu0 %v930_v11  ;;  %451 = vmatpush1.bf16.msra.mxu1 %v931_v12  ;;  %v961_v32 = vld [vmem:[#allocation5 + $0xe8] ss:$16 sps:$4 sm:$0xff]   ;;  %v962_v33 = vld [vmem:[#allocation2] sm:$0xff]   ;;  %v964_v35 = vld [vmem:[#allocation2 + $0x10] sm:$0xff]   ;;  %v106_v42 = vshrl.u32 %v105_v41, 7  ;;  %s1072_s2 = smov [#allocation8]  }
  0x43   :  { %339 = vmatprep.subr.bf16.mxu0 %v932_v13  ;;  %452 = vmatprep.subr.bf16.mxu1 %v934_v14  ;;  %v965_v36 = vld [vmem:[#allocation2 + $0x18] sm:$0xff]   ;;  %v966_v37 = vld [vmem:[#allocation2 + $0x20] sm:$0xff]   ;;  %v967_v38 = vld [vmem:[#allocation2 + $0x28] sm:$0xff]   ;;  %s788_s25 = sshll.u32 %s1072_s2, 4  ;;  %s789_s25 = int_to_ptr.vmem [resolvable:$true] %s788_s25 }
  0x44   :  { %v968_v39 = vld [vmem:[#allocation2 + $0x30] sm:$0xff]   ;;  %v969_v40 = vld [vmem:[#allocation2 + $0x38] sm:$0xff]   ;;  %v107_v43 = vsub.s32 0, %v106_v42  ;;  %v115_v44 = vsub.s32 2, %v106_v42  ;;  %v103_v45 = vld [vmem:[#allocation7] sm:$0xf]  ;;  %p1041_p11 = scmp.lt.s32.totalorder %s789_s25, %s789_s25 }
  0x45   :  { %v111_v46 = vsub.s32 1, %v106_v42  ;;  %v119_v47 = vsub.s32 3, %v106_v42  ;;  %s1036_s26 = scalar_lea.vmem %s789_s25, 4096 }
  0x46   :  { %340 = vmatpush1.bf16.msra.mxu0 %v936_v15  ;;  %453 = vmatpush1.bf16.msra.mxu1 %v937_v16  ;;  %v1148_v48 = vrot.slane %v103_v45, %v107_v43  ;;  %v1150_v49 = vrot.slane %v103_v45, %v115_v44  ;;  %p1037_p10 = scmp.ne.s32.totalorder %s789_s25, %s1036_s26  ;;  %p1042_p12 = scmp.lt.s32.totalorder %s1036_s26, %s1036_s26 }
  0x47   :  { %341 = vmatprep.subr.bf16.mxu0 %v938_v17  ;;  %454 = vmatprep.subr.bf16.mxu1 %v940_v18  ;;  %v1152_v50 = vrot.slane %v103_v45, %v111_v46  ;;  %v1154_v51 = vrot.slane %v103_v45, %v119_v47 }
  0x48   :  { %p1043_p13 = por %p1042_p12, %p1041_p11 }
  0x4a   :  { %342 = vmatpush1.bf16.msra.mxu0 %v942_v19  ;;  %455 = vmatpush1.bf16.msra.mxu1 %v943_v20  ;;  %p1044_p0 = pnand %p1043_p13, %p1037_p10 }
  0x4b   :  { %343 = vmatprep.subr.bf16.mxu0 %v944_v21  ;;  %456 = vmatprep.subr.bf16.mxu1 %v946_v22 }
  0x4e   :  { %344 = vmatpush1.bf16.msra.mxu0 %v948_v23  ;;  %457 = vmatpush1.bf16.msra.mxu1 %v949_v24 }
  0x4f   :  { %345 = vmatprep.subr.bf16.mxu0 %v950_v25  ;;  %458 = vmatprep.subr.bf16.mxu1 %v952_v26 }
  0x52   :  { %346 = vmatpush1.bf16.msra.mxu0 %v954_v27  ;;  %459 = vmatpush1.bf16.msra.mxu1 %v955_v28 }
  0x53   :  { %347 = vmatprep.subr.bf16.mxu0 %v956_v29  ;;  %460 = vmatprep.subr.bf16.mxu1 %v958_v30 }
  0x56   :  { %348 = vmatpush1.bf16.msra.mxu0 %v960_v31  ;;  %461 = vmatpush1.bf16.msra.mxu1 %v961_v32 }
  0x59   :  { %366 = vmatmul.mubr.bf16.vlgmr.msra.gmra.mrb[0].mxu0 %v962_v33  ;;  %479 = vmatmul.mubr.bf16.vlgmr.msra.gmra.mrb[0].mxu1 %v962_v33 }
  0x5a   :  { %375 = vmatprep.mubr.bf16.mxu0 %v1071_v0  ;;  %488 = vmatprep.mubr.bf16.mxu1 %v1071_v0 }
  0x61   :  { %376 = vmatmul.mubr.bf16.gmra.mrb[4].mxu0 %v963_v34  ;;  %489 = vmatmul.mubr.bf16.gmra.mrb[4].mxu1 %v963_v34 }
  0x62   :  { %385 = vmatprep.mubr.bf16.mxu0 %v1071_v0  ;;  %498 = vmatprep.mubr.bf16.mxu1 %v1071_v0 }
  0x69   :  { %386 = vmatmul.mubr.bf16.gmra.mrb[8].mxu0 %v964_v35  ;;  %499 = vmatmul.mubr.bf16.gmra.mrb[8].mxu1 %v964_v35 }
  0x6a   :  { %395 = vmatprep.mubr.bf16.mxu0 %v1071_v0  ;;  %508 = vmatprep.mubr.bf16.mxu1 %v1071_v0 }
  0x71   :  { %396 = vmatmul.mubr.bf16.gmra.mrb[12].mxu0 %v965_v36  ;;  %509 = vmatmul.mubr.bf16.gmra.mrb[12].mxu1 %v965_v36 }
  0x72   :  { %405 = vmatprep.mubr.bf16.mxu0 %v1071_v0  ;;  %518 = vmatprep.mubr.bf16.mxu1 %v1071_v0 }
  0x79   :  { %406 = vmatmul.mubr.bf16.gmra.mrb[16].mxu0 %v966_v37  ;;  %519 = vmatmul.mubr.bf16.gmra.mrb[16].mxu1 %v966_v37 }
  0x7a   :  { %415 = vmatprep.mubr.bf16.mxu0 %v1071_v0  ;;  %528 = vmatprep.mubr.bf16.mxu1 %v1071_v0 }
  0x81   :  { %416 = vmatmul.mubr.bf16.gmra.mrb[20].mxu0 %v967_v38  ;;  %529 = vmatmul.mubr.bf16.gmra.mrb[20].mxu1 %v967_v38 }
  0x82   :  { %425 = vmatprep.mubr.bf16.mxu0 %v1071_v0  ;;  %538 = vmatprep.mubr.bf16.mxu1 %v1071_v0 }
  0x89   :  { %426 = vmatmul.mubr.bf16.gmra.mrb[24].mxu0 %v968_v39  ;;  %539 = vmatmul.mubr.bf16.gmra.mrb[24].mxu1 %v968_v39 }
  0x8a   :  { %435 = vmatprep.mubr.bf16.mxu0 %v1071_v0  ;;  %548 = vmatprep.mubr.bf16.mxu1 %v1071_v0 }
  0x91   :  { %436 = vmatmul.mubr.bf16.gmra.mrb[28].mxu0 %v969_v40  ;;  %549 = vmatmul.mubr.bf16.gmra.mrb[28].mxu1 %v969_v40 }
 0x12c   :  { %v367_v52 = vpop.f32.mrb[0].mxu0  ;;  %v480_v53 = vpop.f32.mrb[0].mxu1 }
 0x12d   :  { %v368_v54 = vadd.f32 %v367_v52, %v1148_v48  ;;  %v481_v55 = vadd.f32 %v480_v53, %v1150_v49  ;;  %v369_v56 = vpop.f32.mrb[1].mxu0  ;;  %v482_v57 = vpop.f32.mrb[1].mxu1 }
 0x12e   :  { %v370_v58 = vadd.f32 %v369_v56, %v1152_v50  ;;  %v483_v59 = vadd.f32 %v482_v57, %v1154_v51  ;;  %v371_v60 = vpop.f32.mrb[2].mxu0  ;;  %v484_v61 = vpop.f32.mrb[2].mxu1 }
 0x12f   :  { %v372_v62 = vadd.f32 %v371_v60, %v1148_v48  ;;  %v485_v63 = vadd.f32 %v484_v61, %v1150_v49  ;;  %v373_v0 = vpop.f32.mrb[3].mxu0  ;;  %v486_v1 = vpop.f32.mrb[3].mxu1 }
 0x130   :  { %v873_v2 = vpack.c.bf16 %v370_v58, %v368_v54  ;;  %v874_v3 = vpack.c.bf16 %v483_v59, %v481_v55  ;;  %v374_v4 = vadd.f32 %v373_v0, %v1152_v50  ;;  %v487_v5 = vadd.f32 %v486_v1, %v1154_v51 }
 0x132   :  { %751 = vst [vmem:[#allocation8] sm:$0xff] %v873_v2  ;;  %752 = vst [vmem:[#allocation8 + $0x8] sm:$0xff] %v874_v3  ;;  %v875_v6 = vpack.c.bf16 %v374_v4, %v372_v62  ;;  %v876_v7 = vpack.c.bf16 %v487_v5, %v485_v63 }
 0x134   :  { %753 = vst [vmem:[#allocation8 + $0x10] sm:$0xff] %v875_v6  ;;  %754 = vst [vmem:[#allocation8 + $0x18] sm:$0xff] %v876_v7  ;;  %v377_v8 = vpop.f32.mrb[4].mxu0  ;;  %v490_v9 = vpop.f32.mrb[4].mxu1 }
 0x135   :  { %v378_v10 = vadd.f32 %v377_v8, %v1148_v48  ;;  %v491_v11 = vadd.f32 %v490_v9, %v1150_v49  ;;  %v379_v12 = vpop.f32.mrb[5].mxu0  ;;  %v492_v13 = vpop.f32.mrb[5].mxu1 }
 0x136   :  { %v380_v14 = vadd.f32 %v379_v12, %v1152_v50  ;;  %v493_v15 = vadd.f32 %v492_v13, %v1154_v51  ;;  %v381_v16 = vpop.f32.mrb[6].mxu0  ;;  %v494_v17 = vpop.f32.mrb[6].mxu1 }
 0x137   :  { %v382_v18 = vadd.f32 %v381_v16, %v1148_v48  ;;  %v495_v19 = vadd.f32 %v494_v17, %v1150_v49  ;;  %v383_v20 = vpop.f32.mrb[7].mxu0  ;;  %v496_v21 = vpop.f32.mrb[7].mxu1 }
 0x138   :  { %v877_v22 = vpack.c.bf16 %v380_v14, %v378_v10  ;;  %v878_v23 = vpack.c.bf16 %v493_v15, %v491_v11  ;;  %v384_v24 = vadd.f32 %v383_v20, %v1152_v50  ;;  %v497_v25 = vadd.f32 %v496_v21, %v1154_v51 }
 0x13a   :  { %755 = vst [vmem:[#allocation8 + $0x20] sm:$0xff] %v877_v22  ;;  %756 = vst [vmem:[#allocation8 + $0x28] sm:$0xff] %v878_v23  ;;  %v879_v26 = vpack.c.bf16 %v384_v24, %v382_v18  ;;  %v880_v27 = vpack.c.bf16 %v497_v25, %v495_v19 }
 0x13c   :  { %757 = vst [vmem:[#allocation8 + $0x30] sm:$0xff] %v879_v26  ;;  %758 = vst [vmem:[#allocation8 + $0x38] sm:$0xff] %v880_v27  ;;  %v387_v28 = vpop.f32.mrb[8].mxu0  ;;  %v500_v29 = vpop.f32.mrb[8].mxu1 }
 0x13d   :  { %v388_v30 = vadd.f32 %v387_v28, %v1148_v48  ;;  %v501_v31 = vadd.f32 %v500_v29, %v1150_v49  ;;  %v389_v32 = vpop.f32.mrb[9].mxu0  ;;  %v502_v33 = vpop.f32.mrb[9].mxu1 }
 0x13e   :  { %v390_v34 = vadd.f32 %v389_v32, %v1152_v50  ;;  %v503_v35 = vadd.f32 %v502_v33, %v1154_v51  ;;  %v391_v36 = vpop.f32.mrb[10].mxu0  ;;  %v504_v37 = vpop.f32.mrb[10].mxu1 }
 0x13f   :  { %v392_v38 = vadd.f32 %v391_v36, %v1148_v48  ;;  %v505_v39 = vadd.f32 %v504_v37, %v1150_v49  ;;  %v393_v40 = vpop.f32.mrb[11].mxu0  ;;  %v506_v41 = vpop.f32.mrb[11].mxu1 }
 0x140   :  { %v881_v42 = vpack.c.bf16 %v390_v34, %v388_v30  ;;  %v882_v43 = vpack.c.bf16 %v503_v35, %v501_v31  ;;  %v394_v44 = vadd.f32 %v393_v40, %v1152_v50  ;;  %v507_v45 = vadd.f32 %v506_v41, %v1154_v51 }
 0x142   :  { %759 = vst [vmem:[#allocation8 + $0x40] sm:$0xff] %v881_v42  ;;  %760 = vst [vmem:[#allocation8 + $0x48] sm:$0xff] %v882_v43  ;;  %v883_v46 = vpack.c.bf16 %v394_v44, %v392_v38  ;;  %v884_v47 = vpack.c.bf16 %v507_v45, %v505_v39 }
 0x144   :  { %761 = vst [vmem:[#allocation8 + $0x50] sm:$0xff] %v883_v46  ;;  %762 = vst [vmem:[#allocation8 + $0x58] sm:$0xff] %v884_v47  ;;  %v397_v52 = vpop.f32.mrb[12].mxu0  ;;  %v510_v53 = vpop.f32.mrb[12].mxu1 }
 0x145   :  { %v398_v54 = vadd.f32 %v397_v52, %v1148_v48  ;;  %v511_v55 = vadd.f32 %v510_v53, %v1150_v49  ;;  %v399_v56 = vpop.f32.mrb[13].mxu0  ;;  %v512_v57 = vpop.f32.mrb[13].mxu1 }
 0x146   :  { %v400_v58 = vadd.f32 %v399_v56, %v1152_v50  ;;  %v513_v59 = vadd.f32 %v512_v57, %v1154_v51  ;;  %v401_v60 = vpop.f32.mrb[14].mxu0  ;;  %v514_v61 = vpop.f32.mrb[14].mxu1 }
 0x147   :  { %v402_v62 = vadd.f32 %v401_v60, %v1148_v48  ;;  %v515_v63 = vadd.f32 %v514_v61, %v1150_v49  ;;  %v403_v0 = vpop.f32.mrb[15].mxu0  ;;  %v516_v1 = vpop.f32.mrb[15].mxu1 }
 0x148   :  { %v885_v2 = vpack.c.bf16 %v400_v58, %v398_v54  ;;  %v886_v3 = vpack.c.bf16 %v513_v59, %v511_v55  ;;  %v404_v4 = vadd.f32 %v403_v0, %v1152_v50  ;;  %v517_v5 = vadd.f32 %v516_v1, %v1154_v51 }
 0x14a   :  { %763 = vst [vmem:[#allocation8 + $0x60] sm:$0xff] %v885_v2  ;;  %764 = vst [vmem:[#allocation8 + $0x68] sm:$0xff] %v886_v3  ;;  %v887_v6 = vpack.c.bf16 %v404_v4, %v402_v62  ;;  %v888_v7 = vpack.c.bf16 %v517_v5, %v515_v63 }
 0x14c   :  { %765 = vst [vmem:[#allocation8 + $0x70] sm:$0xff] %v887_v6  ;;  %766 = vst [vmem:[#allocation8 + $0x78] sm:$0xff] %v888_v7  ;;  %v407_v8 = vpop.f32.mrb[16].mxu0  ;;  %v520_v9 = vpop.f32.mrb[16].mxu1 }
 0x14d   :  { %v408_v10 = vadd.f32 %v407_v8, %v1148_v48  ;;  %v521_v11 = vadd.f32 %v520_v9, %v1150_v49  ;;  %v409_v12 = vpop.f32.mrb[17].mxu0  ;;  %v522_v13 = vpop.f32.mrb[17].mxu1 }
 0x14e   :  { %v410_v14 = vadd.f32 %v409_v12, %v1152_v50  ;;  %v523_v15 = vadd.f32 %v522_v13, %v1154_v51  ;;  %v411_v16 = vpop.f32.mrb[18].mxu0  ;;  %v524_v17 = vpop.f32.mrb[18].mxu1 }
 0x14f   :  { %v412_v18 = vadd.f32 %v411_v16, %v1148_v48  ;;  %v525_v19 = vadd.f32 %v524_v17, %v1150_v49  ;;  %v413_v20 = vpop.f32.mrb[19].mxu0  ;;  %v526_v21 = vpop.f32.mrb[19].mxu1 }
 0x150   :  { %v889_v22 = vpack.c.bf16 %v410_v14, %v408_v10  ;;  %v890_v23 = vpack.c.bf16 %v523_v15, %v521_v11  ;;  %v414_v24 = vadd.f32 %v413_v20, %v1152_v50  ;;  %v527_v25 = vadd.f32 %v526_v21, %v1154_v51 }
 0x152   :  { %767 = vst [vmem:[#allocation8 + $0x80] sm:$0xff] %v889_v22  ;;  %768 = vst [vmem:[#allocation8 + $0x88] sm:$0xff] %v890_v23  ;;  %v891_v26 = vpack.c.bf16 %v414_v24, %v412_v18  ;;  %v892_v27 = vpack.c.bf16 %v527_v25, %v525_v19 }
 0x154   :  { %769 = vst [vmem:[#allocation8 + $0x90] sm:$0xff] %v891_v26  ;;  %770 = vst [vmem:[#allocation8 + $0x98] sm:$0xff] %v892_v27  ;;  %v417_v28 = vpop.f32.mrb[20].mxu0  ;;  %v530_v29 = vpop.f32.mrb[20].mxu1 }
 0x155   :  { %v418_v30 = vadd.f32 %v417_v28, %v1148_v48  ;;  %v531_v31 = vadd.f32 %v530_v29, %v1150_v49  ;;  %v419_v32 = vpop.f32.mrb[21].mxu0  ;;  %v532_v33 = vpop.f32.mrb[21].mxu1 }
 0x156   :  { %v420_v34 = vadd.f32 %v419_v32, %v1152_v50  ;;  %v533_v35 = vadd.f32 %v532_v33, %v1154_v51  ;;  %v421_v36 = vpop.f32.mrb[22].mxu0  ;;  %v534_v37 = vpop.f32.mrb[22].mxu1 }
 0x157   :  { %v422_v38 = vadd.f32 %v421_v36, %v1148_v48  ;;  %v535_v39 = vadd.f32 %v534_v37, %v1150_v49  ;;  %v423_v40 = vpop.f32.mrb[23].mxu0  ;;  %v536_v41 = vpop.f32.mrb[23].mxu1 }
 0x158   :  { %v893_v42 = vpack.c.bf16 %v420_v34, %v418_v30  ;;  %v894_v43 = vpack.c.bf16 %v533_v35, %v531_v31  ;;  %v424_v44 = vadd.f32 %v423_v40, %v1152_v50  ;;  %v537_v45 = vadd.f32 %v536_v41, %v1154_v51 }
 0x15a   :  { %771 = vst [vmem:[#allocation8 + $0xa0] sm:$0xff] %v893_v42  ;;  %772 = vst [vmem:[#allocation8 + $0xa8] sm:$0xff] %v894_v43  ;;  %v895_v46 = vpack.c.bf16 %v424_v44, %v422_v38  ;;  %v896_v47 = vpack.c.bf16 %v537_v45, %v535_v39 }
 0x15c   :  { %773 = vst [vmem:[#allocation8 + $0xb0] sm:$0xff] %v895_v46  ;;  %774 = vst [vmem:[#allocation8 + $0xb8] sm:$0xff] %v896_v47  ;;  %v427_v52 = vpop.f32.mrb[24].mxu0  ;;  %v540_v53 = vpop.f32.mrb[24].mxu1 }
 0x15d   :  { %v428_v54 = vadd.f32 %v427_v52, %v1148_v48  ;;  %v541_v55 = vadd.f32 %v540_v53, %v1150_v49  ;;  %v429_v56 = vpop.f32.mrb[25].mxu0  ;;  %v542_v57 = vpop.f32.mrb[25].mxu1 }
 0x15e   :  { %v430_v58 = vadd.f32 %v429_v56, %v1152_v50  ;;  %v543_v59 = vadd.f32 %v542_v57, %v1154_v51  ;;  %v431_v60 = vpop.f32.mrb[26].mxu0  ;;  %v544_v61 = vpop.f32.mrb[26].mxu1 }
 0x15f   :  { %v432_v62 = vadd.f32 %v431_v60, %v1148_v48  ;;  %v545_v63 = vadd.f32 %v544_v61, %v1150_v49  ;;  %v433_v0 = vpop.f32.mrb[27].mxu0  ;;  %v546_v1 = vpop.f32.mrb[27].mxu1 }
 0x160   :  { %v897_v2 = vpack.c.bf16 %v430_v58, %v428_v54  ;;  %v898_v3 = vpack.c.bf16 %v543_v59, %v541_v55  ;;  %v434_v4 = vadd.f32 %v433_v0, %v1152_v50  ;;  %v547_v5 = vadd.f32 %v546_v1, %v1154_v51 }
 0x162   :  { %775 = vst [vmem:[#allocation8 + $0xc0] sm:$0xff] %v897_v2  ;;  %776 = vst [vmem:[#allocation8 + $0xc8] sm:$0xff] %v898_v3  ;;  %v899_v6 = vpack.c.bf16 %v434_v4, %v432_v62  ;;  %v900_v7 = vpack.c.bf16 %v547_v5, %v545_v63 }
 0x164   :  { %777 = vst [vmem:[#allocation8 + $0xd0] sm:$0xff] %v899_v6  ;;  %778 = vst [vmem:[#allocation8 + $0xd8] sm:$0xff] %v900_v7  ;;  %v437_v8 = vpop.f32.mrb[28].mxu0  ;;  %v550_v9 = vpop.f32.mrb[28].mxu1 }
 0x165   :  { %v438_v10 = vadd.f32 %v437_v8, %v1148_v48  ;;  %v551_v11 = vadd.f32 %v550_v9, %v1150_v49  ;;  %v439_v12 = vpop.f32.mrb[29].mxu0  ;;  %v552_v13 = vpop.f32.mrb[29].mxu1 }
 0x166   :  { %v440_v14 = vadd.f32 %v439_v12, %v1152_v50  ;;  %v553_v15 = vadd.f32 %v552_v13, %v1154_v51  ;;  %v441_v16 = vpop.f32.mrb[30].mxu0  ;;  %v554_v17 = vpop.f32.mrb[30].mxu1 }
 0x167   :  { %v442_v18 = vadd.f32 %v441_v16, %v1148_v48  ;;  %v555_v19 = vadd.f32 %v554_v17, %v1150_v49  ;;  %v443_v20 = vpop.f32.mrb[31].mxu0  ;;  %v556_v21 = vpop.f32.mrb[31].mxu1 }
 0x168   :  { %v901_v22 = vpack.c.bf16 %v440_v14, %v438_v10  ;;  %v902_v23 = vpack.c.bf16 %v553_v15, %v551_v11  ;;  %v444_v24 = vadd.f32 %v443_v20, %v1152_v50  ;;  %v557_v25 = vadd.f32 %v556_v21, %v1154_v51 }
 0x16a   :  { %779 = vst [vmem:[#allocation8 + $0xe0] sm:$0xff] %v901_v22  ;;  %780 = vst [vmem:[#allocation8 + $0xe8] sm:$0xff] %v902_v23  ;;  %v903_v26 = vpack.c.bf16 %v444_v24, %v442_v18  ;;  %v904_v27 = vpack.c.bf16 %v557_v25, %v555_v19 }
 0x16c   :  { %781 = vst [vmem:[#allocation8 + $0xf0] sm:$0xff] %v903_v26  ;;  %782 = vst [vmem:[#allocation8 + $0xf8] sm:$0xff] %v904_v27 }
 0x16d   :  { %1047 = shalt.err (!%p1044_p0)
}
 0x16e   :  { %s1048_s29 = scalar_lea.hbm %s1238_s3, 4096 }
 0x16f   :  { %p1049_p1 = scmp.ne.s32.totalorder %s1238_s3, %s1048_s29  ;;  %p1052_p2 = scmp.lt.u32.totalorder %s1048_s29, %s1238_s3 }
 0x171   :  { %p1054_p3 = pnand %p1052_p2, %p1049_p1 }
 0x173   :  { %1057 = shalt.err (!%p1054_p3)
}
 0x174   :  { %794 = dma.vmem_to_hbm [thread:$0]  %s789_s25, 4096, %s1238_s3, [#allocation4], %s1065_s22, %s1065_s22, %s1066_s23  }
 0x175   :  { %1062 = dma.done.wait [#allocation4], 4096  }
 0x176   :  { %1063 = vsyncadd [#allocation4], 4294963200 }
 0x177   :  { %798 = vsyncpa [#allocation3], 1 }
 0x178   :  { %799 = vsyncpa [#allocation6], 1 }
 0x179   :  { %800 = vsyncpa [#allocation4], 1 }

// kernel: language_model_forward.8
= control target key start
LH: loop header
LB: loop body
LE: loop exit
PB: predicated region body
PF: predicated region fallthrough
CT: control target
= control target key end

     0   :  { %s3292_s0 = inlined_call_operand.hbm [shape: bf16[8,16,512], index: 0, kind: input, shape index: {}]   ;;  %s3293_s1 = inlined_call_operand.hbm [shape: f32[16,128], index: 1, kind: input, shape index: {}, may-alias: {1,2}]   ;;  %s3294_s2 = inlined_call_operand.hbm [shape: f32[16,128], index: 2, kind: input, shape index: {}, may-alias: {1,2}]   ;;  %s3295_s3 = inlined_call_operand.hbm [shape: bf16[128,512], index: 3, kind: input, shape index: {}]   ;;  %s3296_s4 = inlined_call_operand.hbm [shape: bf16[8,16,128], index: 4, kind: output, shape index: {0}]   ;;  %s3297_s5 = inlined_call_operand.hbm [shape: f32[16,128], index: 5, kind: output, shape index: {1}]   ;;  %s3298_s6 = inlined_call_operand.hbm [shape: f32[16,128], index: 6, kind: output, shape index: {2}]  }
   0x1   :  { %3319 = sst [smem:[#allocation28_spill]] %s3292_s0 }
   0x2   :  { %3320 = sst [smem:[#allocation29_spill]] %s3293_s1 }
   0x3   :  { %3321 = sst [smem:[#allocation30_spill]] %s3296_s4 }
   0x4   :  { %3322 = sst [smem:[#allocation31_spill]] %s3298_s6 }
   0x5   :  { %12 = vsyncpa [#allocation5], 0 }
   0x6   :  { %14 = vsyncpa [#allocation5 + $0x1], 0 }
   0x7   :  { %15 = vsyncpa [#allocation8], 0 }
   0x8   :  { %17 = vsyncpa [#allocation8 + $0x1], 0 }
   0x9   :  { %18 = vsyncpa [#allocation11], 0 }
   0xa   :  { %19 = vsyncpa [#allocation6], 0 }
   0xb   :  { %21 = vsyncpa [#allocation6 + $0x1], 0 }
   0xc   :  { %22 = vsyncpa [#allocation14], 0 }
   0xd   :  { %24 = vsyncpa [#allocation14 + $0x1], 0  ;;  %s2549_s21 = smov 0   ;;  %s2551_s22 = smov 0  }
   0xe   :  { %s2553_s23 = smov 0   ;;  %s2555_s24 = smov 0  }
   0xf   :  { %s2557_s25 = smov 0   ;;  %s2559_s26 = smov 0  }
  0x10 LB: > { %3323 = sst [smem:[#allocation21_spill]] %s2478_s21  ;;  %s42_s27 = sadd.s32 1, %s2494_s25  ;;  %s2498_s26 = sphi %s2559_s26, %s30_s26   ;;  %s2494_s25 = sphi %s2557_s25, %s3360_s25   ;;  %s2490_s24 = sphi %s2555_s24, %s3359_s24   ;;  %s2486_s23 = sphi %s2553_s23, %s3358_s23   ;;  %s2482_s22 = sphi %s2551_s22, %s3362_s22   ;;  %s2478_s21 = sphi %s2549_s21, %s3361_s21  }
  0x11   : > { %3324 = sst [smem:[#allocation22_spill]] %s2486_s23  ;;  %s51_s28 = sadd.s32 1, %s2486_s23 }
  0x12   : > { %3325 = sst [smem:[#allocation23_spill]] %s2494_s25  ;;  %p44_p0 = scmp.ge.s32.totalorder %s42_s27, 2 }
  0x13   : > { %3326 = sst [smem:[#allocation24_spill]] %s2498_s26  ;;  %p3300_p1 = scmp.ne.s32.totalorder %s2486_s23, %s2482_s22 }
  0x14   : > { %p59_p2 = scmp.eq.s32.totalorder %s2498_s26, 0  ;;  %s3364_s27 = smov (%p44_p0, %s42_s27), 0 }
  0x15   : > { %3327 = sst [smem:[#allocation25_spill]] %s3364_s27  ;;  %p1963_p5 = scmp.lt.s32.totalorder %s2498_s26, 2 }
  0x16   : > { %p60_p4 = por %p59_p2, %p3300_p1  ;;  %s47_s29 = ssub.s32 %s2494_s25, %s3364_s27 }
  0x17   : > { %s2594_s30 = sand.u32 1, %s2486_s23   ;;  %p49_p6 = scmp.eq.s32.totalorder %s47_s29, 0 }
  0x18   : > { %s1821_s7 = sshll.u32 %s2594_s30, 7  ;;  %p2597_p7 = pnand %p1963_p5, %p60_p4 }
  0x19   : > { %s2602_s9 = scalar_select %p49_p6, %s2486_s23, %s51_s28  }
  0x1a   : > { %s3328_s8 = scalar_select %p2597_p7, 1, 0 }
  0x1b   : > { %3329 = sst [smem:[#allocation26_spill]] %s2602_s9  ;;  %s258_s10 = scalar_lea.vmem [#allocation4], %s1821_s7 }
  0x1c   : > { %s268_s11 = sshll.u32 %s258_s10, 4  ;;  %s278_s12 = sand.u32 1, %s2498_s26   ;;  %s2605_s11 = int_to_ptr.vmem [resolvable:$true] %s268_s11 }
  0x1d   : > { %s3299_s13 = sshll.u32 %s2594_s30, 3  ;;  %s1825_s14 = sshll.u32 %s2494_s25, 7 }
  0x1e   : > { %s3330_s1 = sld [smem:[#allocation29_spill]]  ;;  %s282_s18 = scalar_lea.vmem [#allocation7], %s3299_s13 }
  0x1f   : > { %s289_s19 = sshll.u32 %s282_s18, 4  ;;  %s2621_s29 = scalar_lea.hbm %s3294_s2, %s1825_s14  ;;  %s2616_s19 = int_to_ptr.vmem [resolvable:$true] %s289_s19 }
  0x20   : > { %s2623_s7 = scalar_lea.sflag [#allocation8], %s278_s12  ;;  %p2629_p9 = pneg %p2597_p7 }
  0x22   : > { %s3331_s15 = scalar_select %p2629_p9, 1, 0 }
  0x24   : > { %s2612_s17 = scalar_lea.hbm %s3330_s1, %s1825_s14  ;;  %s2235_s13 = scalar_lea.hbm %s3330_s1, 256 }
  0x25   : > { %s2230_s10 = scalar_lea.hbm %s2612_s17, 128  ;;  %p2236_p12 = scmp.lt.u32.totalorder %s2612_s17, %s3330_s1 }
  0x26   : > { %p2231_p8 = scmp.ne.s32.totalorder %s2612_s17, %s2230_s10  ;;  %p2237_p13 = scmp.lt.u32.totalorder %s2235_s13, %s2230_s10 }
  0x27   : > { %p2239_p2 = scmp.lt.u32.totalorder %s2230_s10, %s2612_s17 }
  0x28   : > { %p2233_p10 = pnand %p2629_p9, %p2231_p8  ;;  %p2238_p0 = por %p2237_p13, %p2236_p12 }
  0x2a   : > { %p2234_p11 = pneg %p2233_p10  ;;  %p2240_p4 = por %p2239_p2, %p2238_p0 }
  0x2c   : > { %p2241_p5 = pnand %p2240_p4, %p2234_p11 }
  0x2e   : > { %2244 = shalt.err (!%p2241_p5)
}
  0x2f   : > { %s2245_s12 = scalar_lea.vmem %s2616_s19, 128  ;;  %s2500_s28 = smov [#allocation7]  }
  0x30   : > { %p2246_p6 = scmp.ne.s32.totalorder %s2616_s19, %s2245_s12  ;;  %s2250_s16 = sshll.u32 %s2500_s28, 4  ;;  %s2251_s16 = int_to_ptr.vmem [resolvable:$false] %s2250_s16 }
  0x31   : > { %s2252_s18 = scalar_lea.vmem %s2251_s16, 256  ;;  %p2253_p3 = scmp.lt.s32.totalorder %s2616_s19, %s2251_s16 }
  0x32   : > { %p2248_p8 = pnand %p2246_p6, %p2629_p9  ;;  %p2254_p1 = scmp.lt.s32.totalorder %s2252_s18, %s2245_s12 }
  0x34   : > { %p2249_p10 = pneg %p2248_p8  ;;  %p2255_p12 = por %p2254_p1, %p2253_p3 }
  0x36   : > { %p2256_p13 = pnand %p2255_p12, %p2249_p10 }
  0x38   : > { %2259 = shalt.err (!%p2256_p13)
}
  0x39   : > { %1948 = dma.hbm_to_vmem [thread:$0]  (!%p2597_p7), %s2612_s17, 128, %s2616_s19, %s2623_s7  }
  0x3a   : > { %s2654_s13 = sadd.s32 4294967295, %s2498_s26   ;;  %s3301_s10 = sadd.s32 4294967294, %s2498_s26  }
  0x3b   : > { %p64_p1 = scmp.ne.s32.totalorder %s2482_s22, %s2478_s21  ;;  %p3309_p3 = scmp.eq.s32.totalorder %s2654_s13, 0 }
  0x3c   : > { %p163_p11 = scmp.eq.s32.totalorder %s2654_s13, 1  ;;  %p169_p0 = scmp.eq.s32.totalorder %s3301_s10, 1 }
  0x3d   : > { %p2665_p2 = por %p3309_p3, %p64_p1  ;;  %p1818_p4 = scmp.ge.s32.totalorder %s2498_s26, 1 }
  0x3e   : > { %p3333_p5 = scmp.ne.s32.totalorder %s2486_s23, %s2482_s22  ;;  %p2677_p8 = por %p169_p0, %p64_p1 }
  0x3f   : > { %s3332_s20 = scalar_select %p2665_p2, 1, 0 }
  0x40   : > { %p2673_p6 = por %p163_p11, %p3333_p5  ;;  %p228_p10 = scmp.lt.s32.totalorder %s2498_s26, 3 }
  0x41   : > { %s3335_s19 = scalar_select %p2677_p8, 1, 0 }
  0x42   : > { %s3334_s17 = scalar_select %p2673_p6, 1, 0 }
  0x43   : > { %3336 = sst [smem:[#allocation27_spill]] %s3335_s19  ;;  %p2682_p12 = pnand %p1818_p4, %p228_p10 }
  0x44   : > { %s2501_s12 = smov [#allocation10]   ;;  %s1921_s16 = sshll.u32 %s2494_s25, 8 }
  0x45   : > { %s3337_s14 = scalar_select %p2682_p12, 1, 0 }
  0x46   : > { %s240_s28 = sshll.u32 %s2501_s12, 4  ;;  %p1938_p13 = pneg %p2682_p12  ;;  %s2686_s28 = int_to_ptr.vmem [resolvable:$true] %s240_s28 }
  0x47   : > { %s3338_s0 = sld [smem:[#allocation28_spill]]  ;;  %s3340_s12 = sshll.u32 %s2594_s30, 3 }
  0x48   : > { %p2698_p1 = pnand %p1938_p13, %p3309_p3  ;;  %s2704_s9 = scalar_lea.vmem [#allocation9], %s3340_s12 }
  0x49   : > { %s307_s23 = sshll.u32 %s2704_s9, 4  ;;  %s255_s25 = scalar_lea.sflag [#allocation5], %s2594_s30  ;;  %s2733_s23 = int_to_ptr.vmem [resolvable:$true] %s307_s23 }
  0x4a   : > { %s3339_s27 = scalar_select %p2698_p1, 1, 0 }
  0x4d   : > { %s2694_s1 = scalar_lea.hbm %s3338_s0, %s1921_s16  ;;  %s2265_s18 = scalar_lea.hbm %s3338_s0, 4096 }
  0x4e   : > { %s2260_s26 = scalar_lea.hbm %s2694_s1, 2048  ;;  %p2266_p5 = scmp.lt.u32.totalorder %s2694_s1, %s3338_s0 }
  0x4f   : > { %p2261_p11 = scmp.ne.s32.totalorder %s2694_s1, %s2260_s26  ;;  %p2267_p10 = scmp.lt.u32.totalorder %s2265_s18, %s2260_s26 }
  0x50   : > { %p2269_p3 = scmp.lt.u32.totalorder %s2260_s26, %s2694_s1 }
  0x51   : > { %p2263_p0 = pnand %p2261_p11, %p2629_p9  ;;  %p2268_p13 = por %p2267_p10, %p2266_p5 }
  0x53   : > { %p2264_p4 = pneg %p2263_p0  ;;  %p2270_p8 = por %p2269_p3, %p2268_p13 }
  0x55   : > { %p2271_p6 = pnand %p2270_p8, %p2264_p4 }
  0x57   : > { %2274 = shalt.err (!%p2271_p6)
}
  0x58   : > { %s2275_s12 = scalar_lea.vmem %s2605_s11, 2048  ;;  %s2502_s10 = smov [#allocation4]  }
  0x59   : > { %p2276_p11 = scmp.ne.s32.totalorder %s2605_s11, %s2275_s12  ;;  %s2280_s16 = sshll.u32 %s2502_s10, 4  ;;  %s2281_s16 = int_to_ptr.vmem [resolvable:$false] %s2280_s16 }
  0x5a   : > { %s2282_s21 = scalar_lea.vmem %s2281_s16, 4096  ;;  %p2283_p12 = scmp.lt.s32.totalorder %s2605_s11, %s2281_s16 }
  0x5b   : > { %p2278_p0 = pnand %p2276_p11, %p2629_p9  ;;  %p2284_p1 = scmp.lt.s32.totalorder %s2282_s21, %s2275_s12 }
  0x5d   : > { %p2279_p2 = pneg %p2278_p0  ;;  %p2285_p5 = por %p2284_p1, %p2283_p12 }
  0x5f   : > { %p2286_p10 = pnand %p2285_p5, %p2279_p2 }
  0x61   : > { %2289 = shalt.err (!%p2286_p10)
}
  0x62   : > { %s2503_s26 = smov 512   ;;  %s2504_s19 = smov 256  }
  0x63   : > { %s2505_s18 = smov 16   ;;  %s2290_s16 = scalar_lea.hbm %s3295_s3, 4096 }
  0x64   : > { %1945 = dma.hbm_to_vmem [thread:$0]  (!%p2597_p7), %s2694_s1, 2048, %s2605_s11, %s255_s25, %s2503_s26, %s2504_s19, %s2505_s18  }
  0x65   : > { %p2291_p3 = scmp.ne.s32.totalorder %s3295_s3, %s2290_s16  ;;  %p3341_p2 = scmp.ne.s32.totalorder %s3339_s27, 0 }
  0x66   : > { %p2297_p1 = scmp.lt.u32.totalorder %s2290_s16, %s3295_s3 }
  0x67   : > { %p2292_p6 = pneg %p3341_p2 }
  0x69   : > { %p2293_p8 = pnand %p2292_p6, %p2291_p3 }
  0x6b   : > { %p2294_p12 = pneg %p2293_p8 }
  0x6d   : > { %p2299_p4 = pnand %p2297_p1, %p2294_p12 }
  0x6f   : > { %2302 = shalt.err (!%p2299_p4)
}
  0x70   : > { %s2303_s1 = scalar_lea.vmem %s2686_s28, 4096  ;;  %p2311_p5 = scmp.lt.s32.totalorder %s2686_s28, %s2686_s28 }
  0x71   : > { %p2304_p13 = scmp.ne.s32.totalorder %s2686_s28, %s2303_s1  ;;  %p2312_p10 = scmp.lt.s32.totalorder %s2303_s1, %s2303_s1 }
  0x73   : > { %p2306_p11 = pnand %p2304_p13, %p2292_p6  ;;  %p2313_p7 = por %p2312_p10, %p2311_p5 }
  0x75   : > { %p2307_p0 = pneg %p2306_p11 }
  0x77   : > { %p2314_p9 = pnand %p2313_p7, %p2307_p0 }
  0x79   : > { %2317 = shalt.err (!%p2314_p9)
}
  0x7a   : > { %1941 = dma.hbm_to_vmem [thread:$0]  (!%p3341_p2), %s3295_s3, 4096, %s2686_s28, [#allocation11], %s2504_s19, %s2504_s19, %s2505_s18  }
  0x7b   : > { %s2318_s6 = scalar_lea.hbm %s2621_s29, 128  ;;  %p3342_p6 = scmp.ne.s32.totalorder %s3331_s15, 0 }
  0x7c   : > { %p2319_p3 = scmp.ne.s32.totalorder %s2621_s29, %s2318_s6  ;;  %s2323_s9 = scalar_lea.hbm %s3294_s2, 256 }
  0x7d   : > { %p2324_p7 = scmp.lt.u32.totalorder %s2621_s29, %s3294_s2  ;;  %p2325_p9 = scmp.lt.u32.totalorder %s2323_s9, %s2318_s6 }
  0x7e   : > { %p2321_p8 = pnand %p2319_p3, %p3342_p6  ;;  %p2327_p4 = scmp.lt.u32.totalorder %s2318_s6, %s2621_s29 }
  0x7f   : > { %p2326_p1 = por %p2325_p9, %p2324_p7 }
  0x80   : > { %p2322_p12 = pneg %p2321_p8 }
  0x81   : > { %p2328_p13 = por %p2327_p4, %p2326_p1 }
  0x83   : > { %p2329_p11 = pnand %p2328_p13, %p2322_p12 }
  0x85   : > { %2332 = shalt.err (!%p2329_p11)
}
  0x86   : > { %s2333_s28 = scalar_lea.vmem %s2733_s23, 128  ;;  %s2506_s26 = smov [#allocation9]  }
  0x87   : > { %p2334_p2 = scmp.ne.s32.totalorder %s2733_s23, %s2333_s28  ;;  %s2338_s19 = sshll.u32 %s2506_s26, 4  ;;  %s2339_s19 = int_to_ptr.vmem [resolvable:$false] %s2338_s19 }
  0x88   : > { %s2340_s18 = scalar_lea.vmem %s2339_s19, 256  ;;  %p2341_p10 = scmp.lt.s32.totalorder %s2733_s23, %s2339_s19 }
  0x89   : > { %p2336_p0 = pnand %p2334_p2, %p3342_p6  ;;  %p2342_p3 = scmp.lt.s32.totalorder %s2340_s18, %s2333_s28 }
  0x8b   : > { %p2337_p5 = pneg %p2336_p0  ;;  %p2343_p8 = por %p2342_p3, %p2341_p10 }
  0x8d   : > { %p2344_p7 = pnand %p2343_p8, %p2337_p5 }
  0x8f   : > { %2347 = shalt.err (!%p2344_p7)
}
  0x90   : > { %p3343_p12 = scmp.ne.s32.totalorder %s3328_s8, 0  ;;  %p3344_p9 = scmp.ne.s32.totalorder %s3337_s14, 0 }
  0x91   : > { %s2781_s15 = sand.u32 (!%p3344_p9), 1, %s2482_s22   ;;  %p3345_p6 = scmp.ne.s32.totalorder (!%p3344_p9), %s3332_s20, 0 }
  0x92   : > { %1951 = dma.hbm_to_vmem [thread:$0]  (!%p3343_p12), %s2621_s29, 128, %s2733_s23, %s2623_s7  }
  0x93   : > { %316 = sbr.rel (%p3344_p9) target bundleno = 2334 (0x91e), region = 36  ;;  %s1829_s10 = sshll.u32 (!%p3344_p9), %s2781_s15, 7 }
  0x94   : > { %s319_s12 = scalar_lea.sflag (!%p3344_p9), [#allocation5], %s2781_s15  ;;  %s2785_s16 = scalar_lea.vmem (!%p3344_p9), [#allocation4], %s1829_s10 }
  0x9a   : > { %2457 = dma.done.wait (%p3345_p6), %s319_s12, 2048  }
  0x9b   : > { %2459 = vsyncadd (%p3345_p6), %s319_s12, 4294965248  ;;  %s327_s23 = sand.u32 1, %s2654_s13   ;;  %s2793_s8 = sshll.u32 %s2781_s15, 3 }
  0x9c   : > { %s328_s29 = scalar_lea.sflag [#allocation8], %s327_s23  ;;  %s331_s7 = scalar_lea.vmem [#allocation7], %s2793_s8 }
  0x9d   : > { %2461 = dma.done.wait (%p3345_p6), %s328_s29, 256  }
  0x9e   : > { %2463 = vsyncadd (%p3345_p6), %s328_s29, 4294967040  ;;  %s340_s14 = scalar_lea.vmem [#allocation9], %s2793_s8  ;;  %p3346_p1 = scmp.eq.s32.totalorder %s2654_s13, 0 }
  0xa0   : > { %2465 = dma.done.wait (%p3346_p1), [#allocation11], 4096   ;;  %p3347_p4 = pmov %p3346_p1 }
  0xa1   : > { %v2507_v0 = vmov 0   ;;  %v2809_v1 = vld [vmem:[#allocation10 + $0x4] ss:$16 sps:$4 sm:$0xff]   ;;  %v2811_v2 = vld [vmem:[#allocation10] ss:$16 sps:$4 sm:$0xff]   ;;  %v439_v39 = vld [vmem:[%s2785_s16 + $0x8] sm:$0xff] }
  0xa2   : > { %2467 = vsyncadd (%p3347_p4), [#allocation11], 4294963200  ;;  %637 = vmatprep.mubr.bf16.mxu0 %v2507_v0  ;;  %678 = vmatprep.mubr.bf16.mxu1 %v2507_v0  ;;  %v2814_v3 = vld [vmem:[#allocation10 + $0x24] ss:$16 sps:$4 sm:$0xff]   ;;  %v2817_v4 = vld [vmem:[#allocation10 + $0x20] ss:$16 sps:$4 sm:$0xff]   ;;  %v443_v46 = vunpack.c.h.bf16 %v439_v39  ;;  %v442_v52 = vunpack.c.l.bf16 %v439_v39 }
  0xa3   : > { %605 = vmatprep.subr.bf16.mxu0 %v2809_v1  ;;  %v2820_v5 = vld [vmem:[#allocation10 + $0x44] ss:$16 sps:$4 sm:$0xff]   ;;  %v2822_v6 = vld [vmem:[#allocation10 + $0xc] ss:$16 sps:$4 sm:$0xff]   ;;  %v2824_v7 = vld [vmem:[#allocation10 + $0x8] ss:$16 sps:$4 sm:$0xff]  }
  0xa4   : > { %606 = vmatpush1.bf16.msra.mxu0 %v2811_v2  ;;  %v2827_v8 = vld [vmem:[#allocation10 + $0x40] ss:$16 sps:$4 sm:$0xff]   ;;  %646 = vmatprep.subr.bf16.mxu1 %v2822_v6  ;;  %v2831_v9 = vld [vmem:[#allocation10 + $0x64] ss:$16 sps:$4 sm:$0xff]   ;;  %v2834_v10 = vld [vmem:[#allocation10 + $0x2c] ss:$16 sps:$4 sm:$0xff]  }
  0xa5   : > { %607 = vmatprep.subr.bf16.mxu0 %v2814_v3  ;;  %647 = vmatpush1.bf16.msra.mxu1 %v2824_v7  ;;  %v2836_v11 = vld [vmem:[#allocation10 + $0x28] ss:$16 sps:$4 sm:$0xff]   ;;  %v2840_v12 = vld [vmem:[#allocation10 + $0x60] ss:$16 sps:$4 sm:$0xff]   ;;  %v2842_v13 = vld [vmem:[#allocation10 + $0x84] ss:$16 sps:$4 sm:$0xff]  }
  0xa6   : > { %648 = vmatprep.subr.bf16.mxu1 %v2834_v10  ;;  %v2844_v14 = vld [vmem:[#allocation10 + $0x4c] ss:$16 sps:$4 sm:$0xff]   ;;  %v2848_v15 = vld [vmem:[#allocation10 + $0x48] ss:$16 sps:$4 sm:$0xff]   ;;  %v2854_v17 = vld [vmem:[#allocation10 + $0x80] ss:$16 sps:$4 sm:$0xff]  }
  0xa7   : > { %v2851_v16 = vld [vmem:[#allocation10 + $0x6c] ss:$16 sps:$4 sm:$0xff]   ;;  %v2857_v18 = vld [vmem:[#allocation10 + $0xa4] ss:$16 sps:$4 sm:$0xff]   ;;  %v2860_v19 = vld [vmem:[#allocation10 + $0x68] ss:$16 sps:$4 sm:$0xff]  }
  0xa8   : > { %608 = vmatpush1.bf16.msra.mxu0 %v2817_v4  ;;  %v2863_v20 = vld [vmem:[#allocation10 + $0x8c] ss:$16 sps:$4 sm:$0xff]   ;;  %v2865_v21 = vld [vmem:[#allocation10 + $0xa0] ss:$16 sps:$4 sm:$0xff]   ;;  %v2868_v22 = vld [vmem:[#allocation10 + $0xc4] ss:$16 sps:$4 sm:$0xff]  }
  0xa9   : > { %609 = vmatprep.subr.bf16.mxu0 %v2820_v5  ;;  %649 = vmatpush1.bf16.msra.mxu1 %v2836_v11  ;;  %v2872_v23 = vld [vmem:[#allocation10 + $0x88] ss:$16 sps:$4 sm:$0xff]   ;;  %v2875_v24 = vld [vmem:[#allocation10 + $0xac] ss:$16 sps:$4 sm:$0xff]   ;;  %v2878_v25 = vld [vmem:[#allocation10 + $0xc0] ss:$16 sps:$4 sm:$0xff]  }
  0xaa   : > { %650 = vmatprep.subr.bf16.mxu1 %v2844_v14  ;;  %v2881_v26 = vld [vmem:[#allocation10 + $0xe4] ss:$16 sps:$4 sm:$0xff]   ;;  %v2884_v27 = vld [vmem:[#allocation10 + $0xa8] ss:$16 sps:$4 sm:$0xff]   ;;  %v2887_v28 = vld [vmem:[#allocation10 + $0xcc] ss:$16 sps:$4 sm:$0xff]  }
  0xab   : > { %v2890_v29 = vld [vmem:[#allocation10 + $0xe0] ss:$16 sps:$4 sm:$0xff]   ;;  %v2896_v31 = vld [vmem:[#allocation10 + $0xc8] ss:$16 sps:$4 sm:$0xff]   ;;  %v2899_v32 = vld [vmem:[#allocation10 + $0xec] ss:$16 sps:$4 sm:$0xff]  }
  0xac   : > { %610 = vmatpush1.bf16.msra.mxu0 %v2827_v8  ;;  %v400_v30 = vld [vmem:[%s331_s7] sm:$0xff]  ;;  %v402_v62 = vld [vmem:[%s340_s14] sm:$0xff]  ;;  %s1833_s20 = sshll.u32 %s2781_s15, 5  ;;  %s392_s1 = scalar_lea.vmem [#allocation15], %s2793_s8 }
  0xad   : > { %611 = vmatprep.subr.bf16.mxu0 %v2831_v9  ;;  %651 = vmatpush1.bf16.msra.mxu1 %v2848_v15  ;;  %v444_v33 = vpack.c.bf16 %v400_v30, %v400_v30  ;;  %v2903_v34 = vld [vmem:[#allocation10 + $0xe8] ss:$16 sps:$4 sm:$0xff]   ;;  %v438_v35 = vld [vmem:[%s2785_s16] sm:$0xff]  ;;  %s2951_s21 = scalar_lea.vmem [#allocation12], %s1833_s20  ;;  %s1917_s4 = sshll.u32 %s2490_s24, 7 }
  0xae   : > { %652 = vmatprep.subr.bf16.mxu1 %v2851_v16  ;;  %v440_v36 = vunpack.c.l.bf16 %v438_v35  ;;  %v441_v37 = vunpack.c.h.bf16 %v438_v35  ;;  %s1590_s0 = sshll.u32 %s2951_s21, 4  ;;  %s385_s6 = scalar_lea.vmem [#allocation13], %s2793_s8  ;;  %s3171_s0 = int_to_ptr.vmem [resolvable:$true] %s1590_s0 }
  0xaf   : > { %s1606_s25 = sshll.u32 %s385_s6, 4  ;;  %s1916_s30 = sshll.u32 %s2490_s24, 6  ;;  %s3180_s25 = int_to_ptr.vmem [resolvable:$true] %s1606_s25 }
  0xb0   : > { %612 = vmatpush1.bf16.msra.mxu0 %v2840_v12  ;;  %s3178_s11 = scalar_lea.hbm %s3297_s5, %s1917_s4  ;;  %s1619_s28 = sshll.u32 %s392_s1, 4  ;;  %s3192_s28 = int_to_ptr.vmem [resolvable:$true] %s1619_s28 }
  0xb1   : > { %613 = vmatprep.subr.bf16.mxu0 %v2842_v13  ;;  %653 = vmatpush1.bf16.msra.mxu1 %v2860_v19  ;;  %s3348_s18 = sld [smem:[#allocation31_spill]]  ;;  %s3196_s29 = scalar_lea.sflag [#allocation14], %s327_s23 }
  0xb2   : > { %654 = vmatprep.subr.bf16.mxu1 %v2863_v20  ;;  %s2348_s7 = scalar_lea.vmem %s3180_s25, 128  ;;  %p3350_p11 = scmp.ne.s32.totalorder %s3334_s17, 0 }
  0xb3   : > { %p2349_p13 = scmp.ne.s32.totalorder %s3180_s25, %s2348_s7  ;;  %s2508_s14 = smov [#allocation13]  }
  0xb4   : > { %614 = vmatpush1.bf16.msra.mxu0 %v2854_v17  ;;  %s2352_s20 = sshll.u32 %s2508_s14, 4  ;;  %s2353_s20 = int_to_ptr.vmem [resolvable:$false] %s2352_s20 }
  0xb5   : > { %615 = vmatprep.subr.bf16.mxu0 %v2857_v18  ;;  %655 = vmatpush1.bf16.msra.mxu1 %v2872_v23  ;;  %p2350_p2 = pnand %p2349_p13, %p3350_p11  ;;  %p2355_p5 = scmp.lt.s32.totalorder %s3180_s25, %s2353_s20 }
  0xb6   : > { %656 = vmatprep.subr.bf16.mxu1 %v2875_v24 }
  0xb7   : > { %s3185_s10 = scalar_lea.hbm %s3348_s18, %s1917_s4  ;;  %p2351_p0 = pneg %p2350_p2 }
  0xb8   : > { %616 = vmatpush1.bf16.msra.mxu0 %v2865_v21 }
  0xb9   : > { %617 = vmatprep.subr.bf16.mxu0 %v2868_v22  ;;  %657 = vmatpush1.bf16.msra.mxu1 %v2884_v27 }
  0xba   : > { %658 = vmatprep.subr.bf16.mxu1 %v2887_v28 }
  0xbc   : > { %618 = vmatpush1.bf16.msra.mxu0 %v2878_v25 }
  0xbd   : > { %619 = vmatprep.subr.bf16.mxu0 %v2881_v26  ;;  %659 = vmatpush1.bf16.msra.mxu1 %v2896_v31 }
  0xbe   : > { %660 = vmatprep.subr.bf16.mxu1 %v2899_v32 }
  0xc0   : > { %620 = vmatpush1.bf16.msra.mxu0 %v2890_v29 }
  0xc1   : > { %724 = vmatprep.subr.bf16.mxu0 %v2809_v1  ;;  %661 = vmatpush1.bf16.msra.mxu1 %v2903_v34 }
  0xc2   : > { %765 = vmatprep.subr.bf16.mxu1 %v2822_v6 }
  0xc3   : > { %638 = vmatmul.mubr.bf16.vlgmr.msra.gmra.mrb[0].mxu0 %v444_v33 }
  0xc4   : > { %725 = vmatpush1.bf16.msra.mxu0 %v2811_v2  ;;  %756 = vmatprep.mubr.bf16.mxu0 %v2507_v0 }
  0xc5   : > { %726 = vmatprep.subr.bf16.mxu0 %v2814_v3  ;;  %679 = vmatmul.mubr.bf16.vlgmr.msra.gmra.mrb[0].mxu1 %v444_v33 }
  0xc6   : > { %766 = vmatpush1.bf16.msra.mxu1 %v2824_v7  ;;  %797 = vmatprep.mubr.bf16.mxu1 %v2507_v0 }
  0xc7   : > { %767 = vmatprep.subr.bf16.mxu1 %v2834_v10 }
  0xc8   : > { %727 = vmatpush1.bf16.msra.mxu0 %v2817_v4 }
  0xc9   : > { %728 = vmatprep.subr.bf16.mxu0 %v2820_v5 }
  0xca   : > { %768 = vmatpush1.bf16.msra.mxu1 %v2836_v11 }
  0xcb   : > { %769 = vmatprep.subr.bf16.mxu1 %v2844_v14 }
  0xcc   : > { %729 = vmatpush1.bf16.msra.mxu0 %v2827_v8 }
  0xcd   : > { %730 = vmatprep.subr.bf16.mxu0 %v2831_v9 }
  0xce   : > { %770 = vmatpush1.bf16.msra.mxu1 %v2848_v15 }
  0xcf   : > { %771 = vmatprep.subr.bf16.mxu1 %v2851_v16 }
  0xd0   : > { %731 = vmatpush1.bf16.msra.mxu0 %v2840_v12 }
  0xd1   : > { %732 = vmatprep.subr.bf16.mxu0 %v2842_v13 }
  0xd2   : > { %772 = vmatpush1.bf16.msra.mxu1 %v2860_v19 }
  0xd3   : > { %773 = vmatprep.subr.bf16.mxu1 %v2863_v20 }
  0xd4   : > { %733 = vmatpush1.bf16.msra.mxu0 %v2854_v17 }
  0xd5   : > { %734 = vmatprep.subr.bf16.mxu0 %v2857_v18 }
  0xd6   : > { %774 = vmatpush1.bf16.msra.mxu1 %v2872_v23 }
  0xd7   : > { %775 = vmatprep.subr.bf16.mxu1 %v2875_v24 }
  0xd8   : > { %735 = vmatpush1.bf16.msra.mxu0 %v2865_v21 }
  0xd9   : > { %736 = vmatprep.subr.bf16.mxu0 %v2868_v22 }
  0xda   : > { %776 = vmatpush1.bf16.msra.mxu1 %v2884_v27 }
  0xdb   : > { %777 = vmatprep.subr.bf16.mxu1 %v2887_v28 }
  0xdc   : > { %737 = vmatpush1.bf16.msra.mxu0 %v2878_v25 }
  0xdd   : > { %738 = vmatprep.subr.bf16.mxu0 %v2881_v26 }
  0xde   : > { %778 = vmatpush1.bf16.msra.mxu1 %v2896_v31 }
  0xdf   : > { %779 = vmatprep.subr.bf16.mxu1 %v2899_v32 }
  0xe0   : > { %739 = vmatpush1.bf16.msra.mxu0 %v2890_v29 }
  0xe1   : > { %844 = vmatprep.subr.bf16.mxu0 %v2809_v1 }
  0xe2   : > { %780 = vmatpush1.bf16.msra.mxu1 %v2903_v34 }
  0xe3   : > { %885 = vmatprep.subr.bf16.mxu1 %v2822_v6 }
 0x196   : > { %v639_v38 = vpop.f32.mrb[0].mxu0 }
 0x197   : > { %v687_v40 = vadd.f32 %v639_v38, %v440_v36  ;;  %v641_v41 = vpop.f32.mrb[1].mxu0 }
 0x198   : > { %v688_v42 = vadd.f32 %v641_v41, %v441_v37  ;;  %v643_v43 = vpop.f32.mrb[2].mxu0  ;;  %v680_v48 = vpop.f32.mrb[0].mxu1 }
 0x199   : > { %v1868_v44 = vmul.f32 -1.442695, %v687_v40  ;;  %v644_v45 = vpop.f32.mrb[3].mxu0  ;;  %v682_v49 = vpop.f32.mrb[1].mxu1  ;;  %v689_v55 = vadd.f32 %v680_v48, %v442_v52  ;;  %v1872_v48 = vld [vmem:[%s2785_s16 + $0x18] sm:$0xff] }
 0x19a   : > { %v1869_v47 = vmul.f32 -1.442695, %v688_v42  ;;  %v690_v50 = vadd.f32 %v682_v49, %v443_v46  ;;  %v684_v51 = vpop.f32.mrb[2].mxu1  ;;  %v1871_v42 = vld [vmem:[%s2785_s16 + $0x10] sm:$0xff] }
 0x19b   : > { %2070 = vpow2.f32 %v1868_v44  ;;  %v685_v53 = vpop.f32.mrb[3].mxu1  ;;  %v720_v43 = vunpack.c.l.bf16 %v1871_v42  ;;  %v721_v44 = vunpack.c.h.bf16 %v1871_v42 }
 0x19c   : > { %2072 = vpow2.f32 %v1869_v47  ;;  %v1870_v54 = vmul.f32 -1.442695, %v690_v50 }
 0x19e   : > { %2074 = vpow2.f32 %v1870_v54 }
 0x19f   : > { %2076 = vtanh.f32 %v689_v55 }
 0x1a5   : > { %v2071_v56 = vpop.eup %2070 }
 0x1a6   : > { %v2073_v57 = vpop.eup %2072  ;;  %v694_v58 = vadd.f32 1.0, %v2071_v56 }
 0x1a7   : > { %v700_v59 = vadd.f32 1.0, %v2073_v57 }
 0x1a8   : > { %2078 = vrcp.f32 %v694_v58  ;;  %v2075_v60 = vpop.eup %2074  ;;  %v723_v58 = vunpack.c.h.bf16 %v1872_v48 }
 0x1a9   : > { %2080 = vrcp.f32 %v700_v59  ;;  %v2077_v61 = vpop.eup %2076  ;;  %v707_v30 = vadd.f32 1.0, %v2075_v60  ;;  %v722_v60 = vunpack.c.l.bf16 %v1872_v48 }
 0x1ab   : > { %2082 = vrcp.f32 %v707_v30 }
 0x1b2   : > { %v2079_v63 = vpop.eup %2078 }
 0x1b3   : > { %v2081_v33 = vpop.eup %2080  ;;  %v711_v35 = vmul.f32 %v2079_v63, %v2077_v61 }
 0x1b4   : > { %v710_v36 = vmul.f32 %v2081_v33, %v402_v62 }
 0x1b5   : > { %v2083_v38 = vpop.eup %2082 }
 0x1b6   : > { %v2947_v37 = vadd.f32 %v711_v35, %v710_v36 }
 0x1b8   : > { %2084 = vtanh.f32 %v2947_v37 }
 0x1c2   : > { %v2085_v39 = vpop.eup %2084 }
 0x1c3   : > { %v714_v40 = vmul.f32 %v2085_v39, %v2083_v38 }
 0x1c5   : > { %v715_v41 = vpack.c.bf16 %v714_v40, %v714_v40 }
 0x1c7   : > { %716 = vst [vmem:[%s2951_s21] sm:$0xf] %v715_v41  ;;  %757 = vmatmul.mubr.bf16.vlgmr.msra.gmra.mrb[4].mxu0 %v715_v41  ;;  %798 = vmatmul.mubr.bf16.vlgmr.msra.gmra.mrb[4].mxu1 %v715_v41 }
 0x1c8   : > { %845 = vmatpush1.bf16.msra.mxu0 %v2811_v2  ;;  %886 = vmatpush1.bf16.msra.mxu1 %v2824_v7 }
 0x1c9   : > { %846 = vmatprep.subr.bf16.mxu0 %v2814_v3  ;;  %887 = vmatprep.subr.bf16.mxu1 %v2834_v10 }
 0x1ca   : > { %876 = vmatprep.mubr.bf16.mxu0 %v2507_v0  ;;  %917 = vmatprep.mubr.bf16.mxu1 %v2507_v0 }
 0x1cc   : > { %847 = vmatpush1.bf16.msra.mxu0 %v2817_v4  ;;  %888 = vmatpush1.bf16.msra.mxu1 %v2836_v11 }
 0x1cd   : > { %848 = vmatprep.subr.bf16.mxu0 %v2820_v5  ;;  %889 = vmatprep.subr.bf16.mxu1 %v2844_v14 }
 0x1d0   : > { %849 = vmatpush1.bf16.msra.mxu0 %v2827_v8  ;;  %890 = vmatpush1.bf16.msra.mxu1 %v2848_v15 }
 0x1d1   : > { %850 = vmatprep.subr.bf16.mxu0 %v2831_v9  ;;  %891 = vmatprep.subr.bf16.mxu1 %v2851_v16 }
 0x1d4   : > { %851 = vmatpush1.bf16.msra.mxu0 %v2840_v12  ;;  %892 = vmatpush1.bf16.msra.mxu1 %v2860_v19 }
 0x1d5   : > { %852 = vmatprep.subr.bf16.mxu0 %v2842_v13  ;;  %893 = vmatprep.subr.bf16.mxu1 %v2863_v20 }
 0x1d8   : > { %853 = vmatpush1.bf16.msra.mxu0 %v2854_v17  ;;  %894 = vmatpush1.bf16.msra.mxu1 %v2872_v23 }
 0x1d9   : > { %854 = vmatprep.subr.bf16.mxu0 %v2857_v18  ;;  %895 = vmatprep.subr.bf16.mxu1 %v2875_v24 }
 0x1dc   : > { %855 = vmatpush1.bf16.msra.mxu0 %v2865_v21  ;;  %896 = vmatpush1.bf16.msra.mxu1 %v2884_v27 }
 0x1dd   : > { %856 = vmatprep.subr.bf16.mxu0 %v2868_v22  ;;  %897 = vmatprep.subr.bf16.mxu1 %v2887_v28 }
 0x1e0   : > { %857 = vmatpush1.bf16.msra.mxu0 %v2878_v25  ;;  %898 = vmatpush1.bf16.msra.mxu1 %v2896_v31 }
 0x1e1   : > { %858 = vmatprep.subr.bf16.mxu0 %v2881_v26  ;;  %899 = vmatprep.subr.bf16.mxu1 %v2899_v32 }
 0x1e4   : > { %859 = vmatpush1.bf16.msra.mxu0 %v2890_v29  ;;  %900 = vmatpush1.bf16.msra.mxu1 %v2903_v34 }
 0x1e5   : > { %964 = vmatprep.subr.bf16.mxu0 %v2809_v1  ;;  %1005 = vmatprep.subr.bf16.mxu1 %v2822_v6 }
 0x29a   : > { %v758_v45 = vpop.f32.mrb[4].mxu0  ;;  %v799_v46 = vpop.f32.mrb[4].mxu1 }
 0x29b   : > { %v806_v47 = vadd.f32 %v758_v45, %v720_v43  ;;  %v760_v49 = vpop.f32.mrb[5].mxu0  ;;  %v801_v50 = vpop.f32.mrb[5].mxu1  ;;  %v808_v62 = vadd.f32 %v799_v46, %v722_v60 }
 0x29c   : > { %v807_v51 = vadd.f32 %v760_v49, %v721_v44  ;;  %v762_v52 = vpop.f32.mrb[6].mxu0  ;;  %v803_v53 = vpop.f32.mrb[6].mxu1  ;;  %v809_v59 = vadd.f32 %v801_v50, %v723_v58 }
 0x29d   : > { %v1873_v54 = vmul.f32 -1.442695, %v806_v47  ;;  %v763_v55 = vpop.f32.mrb[7].mxu0  ;;  %v804_v56 = vpop.f32.mrb[7].mxu1 }
 0x29e   : > { %v1874_v57 = vmul.f32 -1.442695, %v807_v51  ;;  %v1875_v61 = vmul.f32 -1.442695, %v809_v59 }
 0x29f   : > { %2086 = vpow2.f32 %v1873_v54  ;;  %v1878_v54 = vld [vmem:[%s2785_s16 + $0x28] sm:$0xff] }
 0x2a0   : > { %2088 = vpow2.f32 %v1874_v57 }
 0x2a1   : > { %2090 = vpow2.f32 %v1875_v61 }
 0x2a2   : > { %2092 = vtanh.f32 %v808_v62 }
 0x2a9   : > { %v2087_v63 = vpop.eup %2086 }
 0x2aa   : > { %v2089_v30 = vpop.eup %2088  ;;  %v813_v33 = vadd.f32 1.0, %v2087_v63 }
 0x2ab   : > { %v819_v35 = vadd.f32 1.0, %v2089_v30  ;;  %v2091_v36 = vpop.eup %2090  ;;  %v843_v30 = vunpack.c.h.bf16 %v1878_v54 }
 0x2ac   : > { %2094 = vrcp.f32 %v813_v33  ;;  %v2093_v38 = vpop.eup %2092  ;;  %v826_v42 = vadd.f32 1.0, %v2091_v36 }
 0x2ad   : > { %2096 = vrcp.f32 %v819_v35  ;;  %v842_v35 = vunpack.c.l.bf16 %v1878_v54 }
 0x2ae   : > { %2098 = vrcp.f32 %v826_v42 }
 0x2b6   : > { %v2095_v39 = vpop.eup %2094 }
 0x2b7   : > { %v2097_v40 = vpop.eup %2096  ;;  %v830_v41 = vmul.f32 %v2095_v39, %v2093_v38 }
 0x2b8   : > { %v829_v43 = vmul.f32 %v2097_v40, %v2947_v37  ;;  %v2099_v45 = vpop.eup %2098  ;;  %v1877_v37 = vld [vmem:[%s2785_s16 + $0x20] sm:$0xff] }
 0x2b9   : > { %v840_v49 = vunpack.c.l.bf16 %v1877_v37  ;;  %v841_v50 = vunpack.c.h.bf16 %v1877_v37 }
 0x2ba   : > { %v2991_v44 = vadd.f32 %v830_v41, %v829_v43 }
 0x2bc   : > { %2100 = vtanh.f32 %v2991_v44 }
 0x2c6   : > { %v2101_v46 = vpop.eup %2100 }
 0x2c7   : > { %v833_v47 = vmul.f32 %v2101_v46, %v2099_v45 }
 0x2c9   : > { %v834_v48 = vpack.c.bf16 %v833_v47, %v833_v47 }
 0x2cb   : > { %1876 = vst [vmem:[%s2951_s21 + $0x4] sm:$0xf] %v834_v48  ;;  %877 = vmatmul.mubr.bf16.vlgmr.msra.gmra.mrb[8].mxu0 %v834_v48  ;;  %918 = vmatmul.mubr.bf16.vlgmr.msra.gmra.mrb[8].mxu1 %v834_v48 }
 0x2cc   : > { %965 = vmatpush1.bf16.msra.mxu0 %v2811_v2  ;;  %1006 = vmatpush1.bf16.msra.mxu1 %v2824_v7 }
 0x2cd   : > { %966 = vmatprep.subr.bf16.mxu0 %v2814_v3  ;;  %1007 = vmatprep.subr.bf16.mxu1 %v2834_v10 }
 0x2ce   : > { %996 = vmatprep.mubr.bf16.mxu0 %v2507_v0  ;;  %1037 = vmatprep.mubr.bf16.mxu1 %v2507_v0 }
 0x2d0   : > { %967 = vmatpush1.bf16.msra.mxu0 %v2817_v4  ;;  %1008 = vmatpush1.bf16.msra.mxu1 %v2836_v11 }
 0x2d1   : > { %968 = vmatprep.subr.bf16.mxu0 %v2820_v5  ;;  %1009 = vmatprep.subr.bf16.mxu1 %v2844_v14 }
 0x2d4   : > { %969 = vmatpush1.bf16.msra.mxu0 %v2827_v8  ;;  %1010 = vmatpush1.bf16.msra.mxu1 %v2848_v15 }
 0x2d5   : > { %970 = vmatprep.subr.bf16.mxu0 %v2831_v9  ;;  %1011 = vmatprep.subr.bf16.mxu1 %v2851_v16 }
 0x2d8   : > { %971 = vmatpush1.bf16.msra.mxu0 %v2840_v12  ;;  %1012 = vmatpush1.bf16.msra.mxu1 %v2860_v19 }
 0x2d9   : > { %972 = vmatprep.subr.bf16.mxu0 %v2842_v13  ;;  %1013 = vmatprep.subr.bf16.mxu1 %v2863_v20 }
 0x2dc   : > { %973 = vmatpush1.bf16.msra.mxu0 %v2854_v17  ;;  %1014 = vmatpush1.bf16.msra.mxu1 %v2872_v23 }
 0x2dd   : > { %974 = vmatprep.subr.bf16.mxu0 %v2857_v18  ;;  %1015 = vmatprep.subr.bf16.mxu1 %v2875_v24 }
 0x2e0   : > { %975 = vmatpush1.bf16.msra.mxu0 %v2865_v21  ;;  %1016 = vmatpush1.bf16.msra.mxu1 %v2884_v27 }
 0x2e1   : > { %976 = vmatprep.subr.bf16.mxu0 %v2868_v22  ;;  %1017 = vmatprep.subr.bf16.mxu1 %v2887_v28 }
 0x2e4   : > { %977 = vmatpush1.bf16.msra.mxu0 %v2878_v25  ;;  %1018 = vmatpush1.bf16.msra.mxu1 %v2896_v31 }
 0x2e5   : > { %978 = vmatprep.subr.bf16.mxu0 %v2881_v26  ;;  %1019 = vmatprep.subr.bf16.mxu1 %v2899_v32 }
 0x2e8   : > { %979 = vmatpush1.bf16.msra.mxu0 %v2890_v29  ;;  %1020 = vmatpush1.bf16.msra.mxu1 %v2903_v34 }
 0x2e9   : > { %1084 = vmatprep.subr.bf16.mxu0 %v2809_v1  ;;  %1125 = vmatprep.subr.bf16.mxu1 %v2822_v6 }
 0x39e   : > { %v878_v51 = vpop.f32.mrb[8].mxu0  ;;  %v919_v52 = vpop.f32.mrb[8].mxu1 }
 0x39f   : > { %v926_v53 = vadd.f32 %v878_v51, %v840_v49  ;;  %v880_v55 = vpop.f32.mrb[9].mxu0  ;;  %v921_v56 = vpop.f32.mrb[9].mxu1  ;;  %v928_v38 = vadd.f32 %v919_v52, %v842_v35 }
 0x3a0   : > { %v927_v57 = vadd.f32 %v880_v55, %v841_v50  ;;  %v882_v58 = vpop.f32.mrb[10].mxu0  ;;  %v923_v59 = vpop.f32.mrb[10].mxu1  ;;  %v929_v33 = vadd.f32 %v921_v56, %v843_v30 }
 0x3a1   : > { %v1879_v60 = vmul.f32 -1.442695, %v926_v53  ;;  %v883_v61 = vpop.f32.mrb[11].mxu0  ;;  %v924_v62 = vpop.f32.mrb[11].mxu1 }
 0x3a2   : > { %v1880_v63 = vmul.f32 -1.442695, %v927_v57  ;;  %v1881_v36 = vmul.f32 -1.442695, %v929_v33 }
 0x3a3   : > { %2102 = vpow2.f32 %v1879_v60  ;;  %v1884_v60 = vld [vmem:[%s2785_s16 + $0x38] sm:$0xff] }
 0x3a4   : > { %2104 = vpow2.f32 %v1880_v63 }
 0x3a5   : > { %2106 = vpow2.f32 %v1881_v36 }
 0x3a6   : > { %2108 = vtanh.f32 %v928_v38 }
 0x3ad   : > { %v2103_v39 = vpop.eup %2102 }
 0x3ae   : > { %v2105_v40 = vpop.eup %2104  ;;  %v933_v41 = vadd.f32 1.0, %v2103_v39 }
 0x3af   : > { %v939_v42 = vadd.f32 1.0, %v2105_v40  ;;  %v2107_v43 = vpop.eup %2106  ;;  %v963_v40 = vunpack.c.h.bf16 %v1884_v60 }
 0x3b0   : > { %2110 = vrcp.f32 %v933_v41  ;;  %v2109_v45 = vpop.eup %2108  ;;  %v946_v37 = vadd.f32 1.0, %v2107_v43 }
 0x3b1   : > { %2112 = vrcp.f32 %v939_v42  ;;  %v962_v42 = vunpack.c.l.bf16 %v1884_v60 }
 0x3b2   : > { %2114 = vrcp.f32 %v946_v37 }
 0x3ba   : > { %v2111_v46 = vpop.eup %2110 }
 0x3bb   : > { %v2113_v47 = vpop.eup %2112  ;;  %v950_v48 = vmul.f32 %v2111_v46, %v2109_v45 }
 0x3bc   : > { %v949_v49 = vmul.f32 %v2113_v47, %v2991_v44  ;;  %v2115_v51 = vpop.eup %2114  ;;  %v1883_v44 = vld [vmem:[%s2785_s16 + $0x30] sm:$0xff] }
 0x3bd   : > { %v960_v55 = vunpack.c.l.bf16 %v1883_v44  ;;  %v961_v56 = vunpack.c.h.bf16 %v1883_v44 }
 0x3be   : > { %v3032_v50 = vadd.f32 %v950_v48, %v949_v49 }
 0x3c0   : > { %2116 = vtanh.f32 %v3032_v50 }
 0x3ca   : > { %v2117_v52 = vpop.eup %2116 }
 0x3cb   : > { %v953_v53 = vmul.f32 %v2117_v52, %v2115_v51 }
 0x3cd   : > { %v954_v54 = vpack.c.bf16 %v953_v53, %v953_v53 }
 0x3cf   : > { %1882 = vst [vmem:[%s2951_s21 + $0x8] sm:$0xf] %v954_v54  ;;  %997 = vmatmul.mubr.bf16.vlgmr.msra.gmra.mrb[12].mxu0 %v954_v54  ;;  %1038 = vmatmul.mubr.bf16.vlgmr.msra.gmra.mrb[12].mxu1 %v954_v54 }
 0x3d0   : > { %1085 = vmatpush1.bf16.msra.mxu0 %v2811_v2  ;;  %1126 = vmatpush1.bf16.msra.mxu1 %v2824_v7 }
 0x3d1   : > { %1086 = vmatprep.subr.bf16.mxu0 %v2814_v3  ;;  %1127 = vmatprep.subr.bf16.mxu1 %v2834_v10 }
 0x3d2   : > { %1116 = vmatprep.mubr.bf16.mxu0 %v2507_v0  ;;  %1157 = vmatprep.mubr.bf16.mxu1 %v2507_v0 }
 0x3d4   : > { %1087 = vmatpush1.bf16.msra.mxu0 %v2817_v4  ;;  %1128 = vmatpush1.bf16.msra.mxu1 %v2836_v11 }
 0x3d5   : > { %1088 = vmatprep.subr.bf16.mxu0 %v2820_v5  ;;  %1129 = vmatprep.subr.bf16.mxu1 %v2844_v14 }
 0x3d8   : > { %1089 = vmatpush1.bf16.msra.mxu0 %v2827_v8  ;;  %1130 = vmatpush1.bf16.msra.mxu1 %v2848_v15 }
 0x3d9   : > { %1090 = vmatprep.subr.bf16.mxu0 %v2831_v9  ;;  %1131 = vmatprep.subr.bf16.mxu1 %v2851_v16 }
 0x3dc   : > { %1091 = vmatpush1.bf16.msra.mxu0 %v2840_v12  ;;  %1132 = vmatpush1.bf16.msra.mxu1 %v2860_v19 }
 0x3dd   : > { %1092 = vmatprep.subr.bf16.mxu0 %v2842_v13  ;;  %1133 = vmatprep.subr.bf16.mxu1 %v2863_v20 }
 0x3e0   : > { %1093 = vmatpush1.bf16.msra.mxu0 %v2854_v17  ;;  %1134 = vmatpush1.bf16.msra.mxu1 %v2872_v23 }
 0x3e1   : > { %1094 = vmatprep.subr.bf16.mxu0 %v2857_v18  ;;  %1135 = vmatprep.subr.bf16.mxu1 %v2875_v24 }
 0x3e4   : > { %1095 = vmatpush1.bf16.msra.mxu0 %v2865_v21  ;;  %1136 = vmatpush1.bf16.msra.mxu1 %v2884_v27 }
 0x3e5   : > { %1096 = vmatprep.subr.bf16.mxu0 %v2868_v22  ;;  %1137 = vmatprep.subr.bf16.mxu1 %v2887_v28 }
 0x3e8   : > { %1097 = vmatpush1.bf16.msra.mxu0 %v2878_v25  ;;  %1138 = vmatpush1.bf16.msra.mxu1 %v2896_v31 }
 0x3e9   : > { %1098 = vmatprep.subr.bf16.mxu0 %v2881_v26  ;;  %1139 = vmatprep.subr.bf16.mxu1 %v2899_v32 }
 0x3ec   : > { %1099 = vmatpush1.bf16.msra.mxu0 %v2890_v29  ;;  %1140 = vmatpush1.bf16.msra.mxu1 %v2903_v34 }
 0x3ed   : > { %1204 = vmatprep.subr.bf16.mxu0 %v2809_v1  ;;  %1245 = vmatprep.subr.bf16.mxu1 %v2822_v6 }
 0x4a2   : > { %v998_v57 = vpop.f32.mrb[12].mxu0  ;;  %v1039_v58 = vpop.f32.mrb[12].mxu1 }
 0x4a3   : > { %v1046_v59 = vadd.f32 %v998_v57, %v960_v55  ;;  %v1000_v61 = vpop.f32.mrb[13].mxu0  ;;  %v1041_v62 = vpop.f32.mrb[13].mxu1  ;;  %v1048_v45 = vadd.f32 %v1039_v58, %v962_v42 }
 0x4a4   : > { %v1047_v63 = vadd.f32 %v1000_v61, %v961_v56  ;;  %v1002_v30 = vpop.f32.mrb[14].mxu0  ;;  %v1043_v33 = vpop.f32.mrb[14].mxu1  ;;  %v1049_v41 = vadd.f32 %v1041_v62, %v963_v40 }
 0x4a5   : > { %v1885_v35 = vmul.f32 -1.442695, %v1046_v59  ;;  %v1003_v36 = vpop.f32.mrb[15].mxu0  ;;  %v1044_v38 = vpop.f32.mrb[15].mxu1  ;;  %v1890_v33 = vld [vmem:[%s2785_s16 + $0x48] sm:$0xff] }
 0x4a6   : > { %v1886_v39 = vmul.f32 -1.442695, %v1047_v63  ;;  %v1887_v43 = vmul.f32 -1.442695, %v1049_v41 }
 0x4a7   : > { %2118 = vpow2.f32 %v1885_v35 }
 0x4a8   : > { %2120 = vpow2.f32 %v1886_v39 }
 0x4a9   : > { %2122 = vpow2.f32 %v1887_v43 }
 0x4aa   : > { %2124 = vtanh.f32 %v1048_v45 }
 0x4b1   : > { %v2119_v46 = vpop.eup %2118 }
 0x4b2   : > { %v2121_v47 = vpop.eup %2120  ;;  %v1053_v48 = vadd.f32 1.0, %v2119_v46  ;;  %v1083_v46 = vunpack.c.h.bf16 %v1890_v33 }
 0x4b3   : > { %v1059_v37 = vadd.f32 1.0, %v2121_v47  ;;  %v2123_v49 = vpop.eup %2122 }
 0x4b4   : > { %2126 = vrcp.f32 %v1053_v48  ;;  %v2125_v51 = vpop.eup %2124  ;;  %v1066_v44 = vadd.f32 1.0, %v2123_v49 }
 0x4b5   : > { %2128 = vrcp.f32 %v1059_v37 }
 0x4b6   : > { %2130 = vrcp.f32 %v1066_v44 }
 0x4be   : > { %v2127_v52 = vpop.eup %2126 }
 0x4bf   : > { %v2129_v53 = vpop.eup %2128  ;;  %v1070_v54 = vmul.f32 %v2127_v52, %v2125_v51 }
 0x4c0   : > { %v1069_v55 = vmul.f32 %v2129_v53, %v3032_v50  ;;  %v2131_v57 = vpop.eup %2130 }
 0x4c2   : > { %v3073_v56 = vadd.f32 %v1070_v54, %v1069_v55 }
 0x4c4   : > { %2132 = vtanh.f32 %v3073_v56 }
 0x4ce   : > { %v2133_v58 = vpop.eup %2132 }
 0x4cf   : > { %v1073_v59 = vmul.f32 %v2133_v58, %v2131_v57 }
 0x4d1   : > { %v1074_v60 = vpack.c.bf16 %v1073_v59, %v1073_v59 }
 0x4d3   : > { %1888 = vst [vmem:[%s2951_s21 + $0xc] sm:$0xf] %v1074_v60  ;;  %1117 = vmatmul.mubr.bf16.vlgmr.msra.gmra.mrb[16].mxu0 %v1074_v60  ;;  %1158 = vmatmul.mubr.bf16.vlgmr.msra.gmra.mrb[16].mxu1 %v1074_v60 }
 0x4d4   : > { %1205 = vmatpush1.bf16.msra.mxu0 %v2811_v2  ;;  %1246 = vmatpush1.bf16.msra.mxu1 %v2824_v7  ;;  %v1889_v2 = vld [vmem:[%s2785_s16 + $0x40] sm:$0xff] }
 0x4d5   : > { %1206 = vmatprep.subr.bf16.mxu0 %v2814_v3  ;;  %1247 = vmatprep.subr.bf16.mxu1 %v2834_v10  ;;  %v1080_v50 = vunpack.c.l.bf16 %v1889_v2  ;;  %v1081_v61 = vunpack.c.h.bf16 %v1889_v2 }
 0x4d6   : > { %1236 = vmatprep.mubr.bf16.mxu0 %v2507_v0  ;;  %1277 = vmatprep.mubr.bf16.mxu1 %v2507_v0 }
 0x4d8   : > { %1207 = vmatpush1.bf16.msra.mxu0 %v2817_v4  ;;  %1248 = vmatpush1.bf16.msra.mxu1 %v2836_v11 }
 0x4d9   : > { %1208 = vmatprep.subr.bf16.mxu0 %v2820_v5  ;;  %1249 = vmatprep.subr.bf16.mxu1 %v2844_v14 }
 0x4dc   : > { %1209 = vmatpush1.bf16.msra.mxu0 %v2827_v8  ;;  %1250 = vmatpush1.bf16.msra.mxu1 %v2848_v15 }
 0x4dd   : > { %1210 = vmatprep.subr.bf16.mxu0 %v2831_v9  ;;  %1251 = vmatprep.subr.bf16.mxu1 %v2851_v16 }
 0x4e0   : > { %1211 = vmatpush1.bf16.msra.mxu0 %v2840_v12  ;;  %1252 = vmatpush1.bf16.msra.mxu1 %v2860_v19 }
 0x4e1   : > { %1212 = vmatprep.subr.bf16.mxu0 %v2842_v13  ;;  %1253 = vmatprep.subr.bf16.mxu1 %v2863_v20 }
 0x4e4   : > { %1213 = vmatpush1.bf16.msra.mxu0 %v2854_v17  ;;  %1254 = vmatpush1.bf16.msra.mxu1 %v2872_v23 }
 0x4e5   : > { %1214 = vmatprep.subr.bf16.mxu0 %v2857_v18  ;;  %1255 = vmatprep.subr.bf16.mxu1 %v2875_v24 }
 0x4e8   : > { %1215 = vmatpush1.bf16.msra.mxu0 %v2865_v21  ;;  %1256 = vmatpush1.bf16.msra.mxu1 %v2884_v27 }
 0x4e9   : > { %1216 = vmatprep.subr.bf16.mxu0 %v2868_v22  ;;  %1257 = vmatprep.subr.bf16.mxu1 %v2887_v28 }
 0x4ec   : > { %1217 = vmatpush1.bf16.msra.mxu0 %v2878_v25  ;;  %1258 = vmatpush1.bf16.msra.mxu1 %v2896_v31 }
 0x4ed   : > { %1218 = vmatprep.subr.bf16.mxu0 %v2881_v26  ;;  %1259 = vmatprep.subr.bf16.mxu1 %v2899_v32 }
 0x4f0   : > { %1219 = vmatpush1.bf16.msra.mxu0 %v2890_v29  ;;  %1260 = vmatpush1.bf16.msra.mxu1 %v2903_v34 }
 0x4f1   : > { %1324 = vmatprep.subr.bf16.mxu0 %v2809_v1  ;;  %1365 = vmatprep.subr.bf16.mxu1 %v2822_v6  ;;  %v1082_v6 = vunpack.c.l.bf16 %v1890_v33 }
 0x5a6   : > { %v1118_v62 = vpop.f32.mrb[16].mxu0  ;;  %v1159_v63 = vpop.f32.mrb[16].mxu1 }
 0x5a7   : > { %v1166_v30 = vadd.f32 %v1118_v62, %v1080_v50  ;;  %v1120_v35 = vpop.f32.mrb[17].mxu0  ;;  %v1161_v36 = vpop.f32.mrb[17].mxu1  ;;  %v1168_v48 = vadd.f32 %v1159_v63, %v1082_v6  ;;  %v3118_v63 = vld [vmem:[#allocation10] ss:$16 sps:$4 sm:$0xff]   ;;  %v2205_v6 = vld [vmem:[#allocation10 + $0x28] ss:$16 sps:$4 sm:$0xff]  }
 0x5a8   : > { %v1167_v38 = vadd.f32 %v1120_v35, %v1081_v61  ;;  %v1122_v39 = vpop.f32.mrb[18].mxu0  ;;  %v1163_v40 = vpop.f32.mrb[18].mxu1  ;;  %v1169_v1 = vadd.f32 %v1161_v36, %v1083_v46  ;;  %v2203_v46 = vld [vmem:[#allocation10 + $0x2c] ss:$16 sps:$4 sm:$0xff]  }
 0x5a9   : > { %v1891_v41 = vmul.f32 -1.442695, %v1166_v30  ;;  %v1123_v42 = vpop.f32.mrb[19].mxu0  ;;  %v1164_v43 = vpop.f32.mrb[19].mxu1 }
 0x5aa   : > { %v1892_v45 = vmul.f32 -1.442695, %v1167_v38  ;;  %v1893_v47 = vmul.f32 -1.442695, %v1169_v1  ;;  %v2201_v43 = vld [vmem:[#allocation10 + $0x8] ss:$16 sps:$4 sm:$0xff]  }
 0x5ab   : > { %2134 = vpow2.f32 %v1891_v41  ;;  %v2204_v1 = vld [vmem:[#allocation10 + $0x20] ss:$16 sps:$4 sm:$0xff]  }
 0x5ac   : > { %2136 = vpow2.f32 %v1892_v45  ;;  %v2202_v45 = vld [vmem:[#allocation10 + $0x24] ss:$16 sps:$4 sm:$0xff]  }
 0x5ad   : > { %2138 = vpow2.f32 %v1893_v47  ;;  %v2206_v47 = vld [vmem:[#allocation10 + $0x44] ss:$16 sps:$4 sm:$0xff]  }
 0x5ae   : > { %2140 = vtanh.f32 %v1168_v48  ;;  %v2207_v48 = vld [vmem:[#allocation10 + $0x4c] ss:$16 sps:$4 sm:$0xff]  }
 0x5b5   : > { %v2135_v37 = vpop.eup %2134 }
 0x5b6   : > { %v2137_v49 = vpop.eup %2136  ;;  %v1173_v51 = vadd.f32 1.0, %v2135_v37  ;;  %v2208_v37 = vld [vmem:[#allocation10 + $0x40] ss:$16 sps:$4 sm:$0xff]  }
 0x5b7   : > { %v1179_v52 = vadd.f32 1.0, %v2137_v49  ;;  %v2139_v53 = vpop.eup %2138  ;;  %v2209_v49 = vld [vmem:[#allocation10 + $0x48] ss:$16 sps:$4 sm:$0xff]  }
 0x5b8   : > { %2142 = vrcp.f32 %v1173_v51  ;;  %v2141_v54 = vpop.eup %2140  ;;  %v1186_v58 = vadd.f32 1.0, %v2139_v53  ;;  %v2210_v51 = vld [vmem:[#allocation10 + $0x64] ss:$16 sps:$4 sm:$0xff]   ;;  %v2212_v53 = vld [vmem:[#allocation10 + $0x60] ss:$16 sps:$4 sm:$0xff]  }
 0x5b9   : > { %2144 = vrcp.f32 %v1179_v52  ;;  %v2211_v52 = vld [vmem:[#allocation10 + $0x6c] ss:$16 sps:$4 sm:$0xff]  }
 0x5ba   : > { %2146 = vrcp.f32 %v1186_v58  ;;  %v2218_v58 = vld [vmem:[#allocation10 + $0xa4] ss:$16 sps:$4 sm:$0xff]  }
 0x5c2   : > { %v2143_v44 = vpop.eup %2142 }
 0x5c3   : > { %v2145_v55 = vpop.eup %2144  ;;  %v1190_v57 = vmul.f32 %v2143_v44, %v2141_v54  ;;  %v2213_v54 = vld [vmem:[#allocation10 + $0x68] ss:$16 sps:$4 sm:$0xff]   ;;  %v2215_v44 = vld [vmem:[#allocation10 + $0x8c] ss:$16 sps:$4 sm:$0xff]  }
 0x5c4   : > { %v1189_v59 = vmul.f32 %v2145_v55, %v3073_v56  ;;  %v2147_v2 = vpop.eup %2146  ;;  %v2216_v55 = vld [vmem:[#allocation10 + $0x80] ss:$16 sps:$4 sm:$0xff]  }
 0x5c6   : > { %v3114_v60 = vadd.f32 %v1190_v57, %v1189_v59  ;;  %v2217_v57 = vld [vmem:[#allocation10 + $0x88] ss:$16 sps:$4 sm:$0xff]   ;;  %v2219_v59 = vld [vmem:[#allocation10 + $0xac] ss:$16 sps:$4 sm:$0xff]  }
 0x5c8   : > { %2148 = vtanh.f32 %v3114_v60 }
 0x5d2   : > { %v2149_v50 = vpop.eup %2148 }
 0x5d3   : > { %v1193_v61 = vmul.f32 %v2149_v50, %v2147_v2  ;;  %v2221_v2 = vld [vmem:[#allocation10 + $0xa8] ss:$16 sps:$4 sm:$0xff]   ;;  %v2222_v50 = vld [vmem:[#allocation10 + $0xc4] ss:$16 sps:$4 sm:$0xff]  }
 0x5d5   : > { %v1194_v62 = vpack.c.bf16 %v1193_v61, %v1193_v61  ;;  %v2223_v61 = vld [vmem:[#allocation10 + $0xcc] ss:$16 sps:$4 sm:$0xff]  }
 0x5d7   : > { %1894 = vst [vmem:[%s2951_s21 + $0x10] sm:$0xf] %v1194_v62  ;;  %1237 = vmatmul.mubr.bf16.vlgmr.msra.gmra.mrb[20].mxu0 %v1194_v62  ;;  %1278 = vmatmul.mubr.bf16.vlgmr.msra.gmra.mrb[20].mxu1 %v1194_v62  ;;  %v2224_v62 = vld [vmem:[#allocation10 + $0xc0] ss:$16 sps:$4 sm:$0xff]  }
 0x5d8   : > { %1325 = vmatpush1.bf16.msra.mxu0 %v3118_v63  ;;  %1366 = vmatpush1.bf16.msra.mxu1 %v2824_v7 }
 0x5d9   : > { %1326 = vmatprep.subr.bf16.mxu0 %v2814_v3  ;;  %1367 = vmatprep.subr.bf16.mxu1 %v2834_v10  ;;  %v2199_v3 = vld [vmem:[#allocation10 + $0x4] ss:$16 sps:$4 sm:$0xff]  }
 0x5da   : > { %1356 = vmatprep.mubr.bf16.mxu0 %v2507_v0  ;;  %1397 = vmatprep.mubr.bf16.mxu1 %v2507_v0 }
 0x5dc   : > { %1327 = vmatpush1.bf16.msra.mxu0 %v2817_v4  ;;  %1368 = vmatpush1.bf16.msra.mxu1 %v2836_v11  ;;  %v2200_v4 = vld [vmem:[#allocation10 + $0xc] ss:$16 sps:$4 sm:$0xff]  }
 0x5dd   : > { %1328 = vmatprep.subr.bf16.mxu0 %v2820_v5  ;;  %1369 = vmatprep.subr.bf16.mxu1 %v2844_v14  ;;  %v1895_v5 = vld [vmem:[%s2785_s16 + $0x50] sm:$0xff] }
 0x5de   : > { %v1200_v7 = vunpack.c.l.bf16 %v1895_v5 }
 0x5e0   : > { %1329 = vmatpush1.bf16.msra.mxu0 %v2827_v8  ;;  %1370 = vmatpush1.bf16.msra.mxu1 %v2848_v15  ;;  %v1201_v8 = vunpack.c.h.bf16 %v1895_v5  ;;  %v2228_v5 = vld [vmem:[#allocation10 + $0xe0] ss:$16 sps:$4 sm:$0xff]  }
 0x5e1   : > { %1330 = vmatprep.subr.bf16.mxu0 %v2831_v9  ;;  %1371 = vmatprep.subr.bf16.mxu1 %v2851_v16 }
 0x5e4   : > { %1331 = vmatpush1.bf16.msra.mxu0 %v2840_v12  ;;  %1372 = vmatpush1.bf16.msra.mxu1 %v2860_v19  ;;  %v1896_v12 = vld [vmem:[%s2785_s16 + $0x58] sm:$0xff] }
 0x5e5   : > { %1332 = vmatprep.subr.bf16.mxu0 %v2842_v13  ;;  %1373 = vmatprep.subr.bf16.mxu1 %v2863_v20 }
 0x5e8   : > { %1333 = vmatpush1.bf16.msra.mxu0 %v2854_v17  ;;  %1374 = vmatpush1.bf16.msra.mxu1 %v2872_v23 }
 0x5e9   : > { %1334 = vmatprep.subr.bf16.mxu0 %v2857_v18  ;;  %1375 = vmatprep.subr.bf16.mxu1 %v2875_v24  ;;  %v1202_v24 = vunpack.c.l.bf16 %v1896_v12 }
 0x5ec   : > { %1335 = vmatpush1.bf16.msra.mxu0 %v2865_v21  ;;  %1376 = vmatpush1.bf16.msra.mxu1 %v2884_v27 }
 0x5ed   : > { %1336 = vmatprep.subr.bf16.mxu0 %v2868_v22  ;;  %1377 = vmatprep.subr.bf16.mxu1 %v2887_v28  ;;  %v1203_v22 = vunpack.c.h.bf16 %v1896_v12 }
 0x5f0   : > { %1337 = vmatpush1.bf16.msra.mxu0 %v2878_v25  ;;  %1378 = vmatpush1.bf16.msra.mxu1 %v2896_v31 }
 0x5f1   : > { %1338 = vmatprep.subr.bf16.mxu0 %v2881_v26  ;;  %1379 = vmatprep.subr.bf16.mxu1 %v2899_v32 }
 0x5f4   : > { %1339 = vmatpush1.bf16.msra.mxu0 %v2890_v29  ;;  %1380 = vmatpush1.bf16.msra.mxu1 %v2903_v34 }
 0x5f5   : > { %1444 = vmatprep.subr.bf16.mxu0 %v2199_v3  ;;  %1485 = vmatprep.subr.bf16.mxu1 %v2200_v4  ;;  %v2226_v3 = vld [vmem:[#allocation10 + $0xe4] ss:$16 sps:$4 sm:$0xff]   ;;  %v2227_v4 = vld [vmem:[#allocation10 + $0xec] ss:$16 sps:$4 sm:$0xff]  }
 0x6aa   : > { %v1238_v9 = vpop.f32.mrb[20].mxu0  ;;  %v1279_v10 = vpop.f32.mrb[20].mxu1 }
 0x6ab   : > { %v1286_v11 = vadd.f32 %v1238_v9, %v1200_v7  ;;  %v1240_v13 = vpop.f32.mrb[21].mxu0  ;;  %v1281_v14 = vpop.f32.mrb[21].mxu1  ;;  %v1288_v26 = vadd.f32 %v1279_v10, %v1202_v24  ;;  %v2229_v7 = vld [vmem:[#allocation10 + $0xe8] ss:$16 sps:$4 sm:$0xff]  }
 0x6ac   : > { %v1287_v15 = vadd.f32 %v1240_v13, %v1201_v8  ;;  %v1242_v16 = vpop.f32.mrb[22].mxu0  ;;  %v1283_v17 = vpop.f32.mrb[22].mxu1  ;;  %v1289_v23 = vadd.f32 %v1281_v14, %v1203_v22  ;;  %v1901_v8 = vld [vmem:[%s2785_s16 + $0x60] sm:$0xff]  ;;  %v1902_v14 = vld [vmem:[%s2785_s16 + $0x68] sm:$0xff] }
 0x6ad   : > { %v1897_v18 = vmul.f32 -1.442695, %v1286_v11  ;;  %v1243_v19 = vpop.f32.mrb[23].mxu0  ;;  %v1284_v20 = vpop.f32.mrb[23].mxu1  ;;  %v1320_v9 = vunpack.c.l.bf16 %v1901_v8  ;;  %v1321_v10 = vunpack.c.h.bf16 %v1901_v8  ;;  %v1323_v24 = vunpack.c.h.bf16 %v1902_v14 }
 0x6ae   : > { %v1898_v21 = vmul.f32 -1.442695, %v1287_v15  ;;  %v1899_v25 = vmul.f32 -1.442695, %v1289_v23 }
 0x6af   : > { %2150 = vpow2.f32 %v1897_v18 }
 0x6b0   : > { %2152 = vpow2.f32 %v1898_v21 }
 0x6b1   : > { %2154 = vpow2.f32 %v1899_v25 }
 0x6b2   : > { %2156 = vtanh.f32 %v1288_v26  ;;  %v1322_v26 = vunpack.c.l.bf16 %v1902_v14 }
 0x6b9   : > { %v2151_v27 = vpop.eup %2150 }
 0x6ba   : > { %v2153_v28 = vpop.eup %2152  ;;  %v1293_v29 = vadd.f32 1.0, %v2151_v27 }
 0x6bb   : > { %v1299_v31 = vadd.f32 1.0, %v2153_v28  ;;  %v2155_v32 = vpop.eup %2154 }
 0x6bc   : > { %2158 = vrcp.f32 %v1293_v29  ;;  %v2157_v34 = vpop.eup %2156  ;;  %v1306_v35 = vadd.f32 1.0, %v2155_v32 }
 0x6bd   : > { %2160 = vrcp.f32 %v1299_v31 }
 0x6be   : > { %2162 = vrcp.f32 %v1306_v35 }
 0x6c6   : > { %v2159_v56 = vpop.eup %2158 }
 0x6c7   : > { %v2161_v30 = vpop.eup %2160  ;;  %v1310_v33 = vmul.f32 %v2159_v56, %v2157_v34 }
 0x6c8   : > { %v1309_v36 = vmul.f32 %v2161_v30, %v3114_v60  ;;  %v2163_v39 = vpop.eup %2162  ;;  %v2220_v60 = vld [vmem:[#allocation10 + $0xa0] ss:$16 sps:$4 sm:$0xff]  }
 0x6ca   : > { %v3155_v38 = vadd.f32 %v1310_v33, %v1309_v36 }
 0x6cc   : > { %2164 = vtanh.f32 %v3155_v38 }
 0x6d6   : > { %v2165_v40 = vpop.eup %2164 }
 0x6d7   : > { %v1313_v41 = vmul.f32 %v2165_v40, %v2163_v39 }
 0x6d9   : > { %v1314_v42 = vpack.c.bf16 %v1313_v41, %v1313_v41 }
 0x6db   : > { %1900 = vst [vmem:[%s2951_s21 + $0x14] sm:$0xf] %v1314_v42  ;;  %1357 = vmatmul.mubr.bf16.vlgmr.msra.gmra.mrb[24].mxu0 %v1314_v42  ;;  %1398 = vmatmul.mubr.bf16.vlgmr.msra.gmra.mrb[24].mxu1 %v1314_v42 }
 0x6dc   : > { %1445 = vmatpush1.bf16.msra.mxu0 %v3118_v63  ;;  %1486 = vmatpush1.bf16.msra.mxu1 %v2201_v43  ;;  %v2225_v63 = vld [vmem:[#allocation10 + $0xc8] ss:$16 sps:$4 sm:$0xff]  }
 0x6dd   : > { %1446 = vmatprep.subr.bf16.mxu0 %v2202_v45  ;;  %1487 = vmatprep.subr.bf16.mxu1 %v2203_v46 }
 0x6de   : > { %1476 = vmatprep.mubr.bf16.mxu0 %v2507_v0  ;;  %1517 = vmatprep.mubr.bf16.mxu1 %v2507_v0  ;;  %v2214_v0 = vld [vmem:[#allocation10 + $0x84] ss:$16 sps:$4 sm:$0xff]  }
 0x6e0   : > { %1447 = vmatpush1.bf16.msra.mxu0 %v2204_v1  ;;  %1488 = vmatpush1.bf16.msra.mxu1 %v2205_v6  ;;  %v1907_v1 = vld [vmem:[%s2785_s16 + $0x70] sm:$0xff] }
 0x6e1   : > { %1448 = vmatprep.subr.bf16.mxu0 %v2206_v47  ;;  %1489 = vmatprep.subr.bf16.mxu1 %v2207_v48  ;;  %v1440_v6 = vunpack.c.l.bf16 %v1907_v1  ;;  %v1441_v47 = vunpack.c.h.bf16 %v1907_v1 }
 0x6e4   : > { %1449 = vmatpush1.bf16.msra.mxu0 %v2208_v37  ;;  %1490 = vmatpush1.bf16.msra.mxu1 %v2209_v49 }
 0x6e5   : > { %1450 = vmatprep.subr.bf16.mxu0 %v2210_v51  ;;  %1491 = vmatprep.subr.bf16.mxu1 %v2211_v52  ;;  %v1908_v51 = vld [vmem:[%s2785_s16 + $0x78] sm:$0xff]  ;;  %s3349_s16 = sld [smem:[#allocation30_spill]] }
 0x6e8   : > { %1451 = vmatpush1.bf16.msra.mxu0 %v2212_v53  ;;  %1492 = vmatpush1.bf16.msra.mxu1 %v2213_v54 }
 0x6e9   : > { %1452 = vmatprep.subr.bf16.mxu0 %v2214_v0  ;;  %1493 = vmatprep.subr.bf16.mxu1 %v2215_v44 }
 0x6eb   : > { %s3190_s8 = scalar_lea.hbm %s3349_s16, %s1916_s30 }
 0x6ec   : > { %1453 = vmatpush1.bf16.msra.mxu0 %v2216_v55  ;;  %1494 = vmatpush1.bf16.msra.mxu1 %v2217_v57 }
 0x6ed   : > { %1454 = vmatprep.subr.bf16.mxu0 %v2218_v58  ;;  %1495 = vmatprep.subr.bf16.mxu1 %v2219_v59  ;;  %v1443_v59 = vunpack.c.h.bf16 %v1908_v51 }
 0x6f0   : > { %1455 = vmatpush1.bf16.msra.mxu0 %v2220_v60  ;;  %1496 = vmatpush1.bf16.msra.mxu1 %v2221_v2  ;;  %v1442_v2 = vunpack.c.l.bf16 %v1908_v51 }
 0x6f1   : > { %1456 = vmatprep.subr.bf16.mxu0 %v2222_v50  ;;  %1497 = vmatprep.subr.bf16.mxu1 %v2223_v61 }
 0x6f4   : > { %1457 = vmatpush1.bf16.msra.mxu0 %v2224_v62  ;;  %1498 = vmatpush1.bf16.msra.mxu1 %v2225_v63 }
 0x6f5   : > { %1458 = vmatprep.subr.bf16.mxu0 %v2226_v3  ;;  %1499 = vmatprep.subr.bf16.mxu1 %v2227_v4 }
 0x6f8   : > { %1459 = vmatpush1.bf16.msra.mxu0 %v2228_v5  ;;  %1500 = vmatpush1.bf16.msra.mxu1 %v2229_v7 }
 0x7ae   : > { %v1358_v11 = vpop.f32.mrb[24].mxu0  ;;  %v1399_v12 = vpop.f32.mrb[24].mxu1 }
 0x7af   : > { %v1406_v13 = vadd.f32 %v1358_v11, %v1320_v9  ;;  %v1360_v15 = vpop.f32.mrb[25].mxu0  ;;  %v1401_v16 = vpop.f32.mrb[25].mxu1  ;;  %v1408_v28 = vadd.f32 %v1399_v12, %v1322_v26 }
 0x7b0   : > { %v1407_v17 = vadd.f32 %v1360_v15, %v1321_v10  ;;  %v1362_v18 = vpop.f32.mrb[26].mxu0  ;;  %v1403_v19 = vpop.f32.mrb[26].mxu1  ;;  %v1409_v25 = vadd.f32 %v1401_v16, %v1323_v24 }
 0x7b1   : > { %v1903_v20 = vmul.f32 -1.442695, %v1406_v13  ;;  %v1363_v21 = vpop.f32.mrb[27].mxu0  ;;  %v1404_v22 = vpop.f32.mrb[27].mxu1 }
 0x7b2   : > { %v1904_v23 = vmul.f32 -1.442695, %v1407_v17  ;;  %v1905_v27 = vmul.f32 -1.442695, %v1409_v25 }
 0x7b3   : > { %2166 = vpow2.f32 %v1903_v20 }
 0x7b4   : > { %2168 = vpow2.f32 %v1904_v23 }
 0x7b5   : > { %2170 = vpow2.f32 %v1905_v27 }
 0x7b6   : > { %2172 = vtanh.f32 %v1408_v28 }
 0x7bd   : > { %v2167_v29 = vpop.eup %2166 }
 0x7be   : > { %v2169_v31 = vpop.eup %2168  ;;  %v1413_v32 = vadd.f32 1.0, %v2167_v29 }
 0x7bf   : > { %v1419_v34 = vadd.f32 1.0, %v2169_v31  ;;  %v2171_v56 = vpop.eup %2170 }
 0x7c0   : > { %2174 = vrcp.f32 %v1413_v32  ;;  %v2173_v30 = vpop.eup %2172  ;;  %v1426_v39 = vadd.f32 1.0, %v2171_v56 }
 0x7c1   : > { %2176 = vrcp.f32 %v1419_v34 }
 0x7c2   : > { %2178 = vrcp.f32 %v1426_v39 }
 0x7ca   : > { %v2175_v33 = vpop.eup %2174 }
 0x7cb   : > { %v2177_v35 = vpop.eup %2176  ;;  %v1430_v36 = vmul.f32 %v2175_v33, %v2173_v30 }
 0x7cc   : > { %v1429_v40 = vmul.f32 %v2177_v35, %v3155_v38  ;;  %v2179_v42 = vpop.eup %2178 }
 0x7ce   : > { %v1431_v41 = vadd.f32 %v1430_v36, %v1429_v40 }
 0x7d0   : > { %2180 = vtanh.f32 %v1431_v41 }
 0x7da   : > { %v2181_v43 = vpop.eup %2180 }
 0x7db   : > { %v1433_v45 = vmul.f32 %v2181_v43, %v2179_v42 }
 0x7dd   : > { %v1434_v46 = vpack.c.bf16 %v1433_v45, %v1433_v45 }
 0x7df   : > { %1906 = vst [vmem:[%s2951_s21 + $0x18] sm:$0xf] %v1434_v46  ;;  %1477 = vmatmul.mubr.bf16.vlgmr.msra.gmra.mrb[28].mxu0 %v1434_v46  ;;  %1518 = vmatmul.mubr.bf16.vlgmr.msra.gmra.mrb[28].mxu1 %v1434_v46 }
 0x8b2   : > { %v1478_v48 = vpop.f32.mrb[28].mxu0  ;;  %v1519_v37 = vpop.f32.mrb[28].mxu1 }
 0x8b3   : > { %v1526_v49 = vadd.f32 %v1478_v48, %v1440_v6  ;;  %v1480_v52 = vpop.f32.mrb[29].mxu0  ;;  %v1521_v38 = vpop.f32.mrb[29].mxu1  ;;  %v1528_v61 = vadd.f32 %v1519_v37, %v1442_v2 }
 0x8b4   : > { %v1527_v53 = vadd.f32 %v1480_v52, %v1441_v47  ;;  %v1482_v54 = vpop.f32.mrb[30].mxu0  ;;  %v1523_v0 = vpop.f32.mrb[30].mxu1  ;;  %v1529_v60 = vadd.f32 %v1521_v38, %v1443_v59 }
 0x8b5   : > { %v1909_v44 = vmul.f32 -1.442695, %v1526_v49  ;;  %v1483_v55 = vpop.f32.mrb[31].mxu0  ;;  %v1524_v57 = vpop.f32.mrb[31].mxu1 }
 0x8b6   : > { %v1910_v58 = vmul.f32 -1.442695, %v1527_v53  ;;  %v1911_v50 = vmul.f32 -1.442695, %v1529_v60 }
 0x8b7   : > { %2182 = vpow2.f32 %v1909_v44 }
 0x8b8   : > { %2184 = vpow2.f32 %v1910_v58 }
 0x8b9   : > { %2186 = vpow2.f32 %v1911_v50 }
 0x8ba   : > { %2188 = vtanh.f32 %v1528_v61 }
 0x8c1   : > { %v2183_v62 = vpop.eup %2182 }
 0x8c2   : > { %v2185_v63 = vpop.eup %2184  ;;  %v1533_v3 = vadd.f32 1.0, %v2183_v62 }
 0x8c3   : > { %v1539_v4 = vadd.f32 1.0, %v2185_v63  ;;  %v2187_v5 = vpop.eup %2186 }
 0x8c4   : > { %2190 = vrcp.f32 %v1533_v3  ;;  %v2189_v7 = vpop.eup %2188  ;;  %v1546_v11 = vadd.f32 1.0, %v2187_v5 }
 0x8c5   : > { %2192 = vrcp.f32 %v1539_v4 }
 0x8c6   : > { %2194 = vrcp.f32 %v1546_v11 }
 0x8ce   : > { %v2191_v8 = vpop.eup %2190 }
 0x8cf   : > { %v2193_v9 = vpop.eup %2192  ;;  %v1550_v10 = vmul.f32 %v2191_v8, %v2189_v7 }
 0x8d0   : > { %v1549_v12 = vmul.f32 %v2193_v9, %v1431_v41  ;;  %v2195_v14 = vpop.eup %2194 }
 0x8d2   : > { %v1551_v13 = vadd.f32 %v1550_v10, %v1549_v12 }
 0x8d4   : > { %2196 = vtanh.f32 %v1551_v13  ;;  %1563 = vst [vmem:[%s392_s1] sm:$0xff] %v1551_v13  ;;  %s2354_s1 = scalar_lea.vmem %s2353_s20, 256 }
 0x8d5   : > { %p2356_p10 = scmp.lt.s32.totalorder %s2354_s1, %s2348_s7 }
 0x8d7   : > { %p2357_p3 = por %p2356_p10, %p2355_p5 }
 0x8d9   : > { %p2358_p8 = pnand %p2357_p3, %p2351_p0 }
 0x8de   : > { %v2197_v15 = vpop.eup %2196 }
 0x8df   : > { %v1553_v16 = vmul.f32 %v2197_v15, %v2195_v14 }
 0x8e1   : > { %v1554_v17 = vpack.c.bf16 %v1553_v16, %v1553_v16  ;;  %1562 = vst [vmem:[%s385_s6] sm:$0xff] %v1553_v16 }
 0x8e2   : > { %2361 = shalt.err (!%p2358_p8)
}
 0x8e3   : > { %s2362_s13 = scalar_lea.hbm %s3178_s11, 128  ;;  %s2366_s6 = scalar_lea.hbm %s3297_s5, 256 }
 0x8e4   : > { %p2363_p7 = scmp.ne.s32.totalorder %s3178_s11, %s2362_s13  ;;  %p2367_p6 = scmp.lt.u32.totalorder %s3178_s11, %s3297_s5 }
 0x8e5   : > { %p2368_p1 = scmp.lt.u32.totalorder %s2366_s6, %s2362_s13  ;;  %p2370_p13 = scmp.lt.u32.totalorder %s2362_s13, %s3178_s11 }
 0x8e6   : > { %p2364_p12 = pnand %p2363_p7, %p3350_p11 }
 0x8e7   : > { %p2369_p4 = por %p2368_p1, %p2367_p6 }
 0x8e8   : > { %p2365_p9 = pneg %p2364_p12 }
 0x8e9   : > { %p2371_p2 = por %p2370_p13, %p2369_p4 }
 0x8eb   : > { %p2372_p0 = pnand %p2371_p2, %p2365_p9 }
 0x8ed   : > { %2375 = shalt.err (!%p2372_p0)
}
 0x8ee   : > { %1933 = dma.vmem_to_hbm [thread:$0]  (%p3350_p11), %s3180_s25, 128, %s3178_s11, %s3196_s29   ;;  %1912 = vst [vmem:[%s2951_s21 + $0x1c] sm:$0xf] %v1554_v17 }
 0x8ef   : > { %s2376_s27 = scalar_lea.vmem %s3192_s28, 128  ;;  %s2509_s26 = smov [#allocation15]  }
 0x8f0   : > { %p2377_p5 = scmp.ne.s32.totalorder %s3192_s28, %s2376_s27  ;;  %s2380_s19 = sshll.u32 %s2509_s26, 4  ;;  %s2381_s19 = int_to_ptr.vmem [resolvable:$false] %s2380_s19 }
 0x8f1   : > { %s2382_s24 = scalar_lea.vmem %s2381_s19, 256  ;;  %p2383_p8 = scmp.lt.s32.totalorder %s3192_s28, %s2381_s19 }
 0x8f2   : > { %p2378_p10 = pnand %p2377_p5, %p3350_p11  ;;  %p2384_p7 = scmp.lt.s32.totalorder %s2382_s24, %s2376_s27 }
 0x8f4   : > { %p2379_p3 = pneg %p2378_p10  ;;  %p2385_p12 = por %p2384_p7, %p2383_p8 }
 0x8f6   : > { %p2386_p9 = pnand %p2385_p12, %p2379_p3 }
 0x8f8   : > { %2389 = shalt.err (!%p2386_p9)
}
 0x8f9   : > { %s2390_s21 = scalar_lea.hbm %s3185_s10, 128  ;;  %s2394_s12 = scalar_lea.hbm %s3348_s18, 256 }
 0x8fa   : > { %p2391_p6 = scmp.ne.s32.totalorder %s3185_s10, %s2390_s21  ;;  %p2395_p13 = scmp.lt.u32.totalorder %s3185_s10, %s3348_s18 }
 0x8fb   : > { %p2396_p2 = scmp.lt.u32.totalorder %s2394_s12, %s2390_s21  ;;  %p2398_p5 = scmp.lt.u32.totalorder %s2390_s21, %s3185_s10 }
 0x8fc   : > { %p2392_p1 = pnand %p2391_p6, %p3350_p11 }
 0x8fd   : > { %p2397_p0 = por %p2396_p2, %p2395_p13 }
 0x8fe   : > { %p2393_p4 = pneg %p2392_p1 }
 0x8ff   : > { %p2399_p10 = por %p2398_p5, %p2397_p0 }
 0x901   : > { %p2400_p3 = pnand %p2399_p10, %p2393_p4 }
 0x903   : > { %2403 = shalt.err (!%p2400_p3)
}
 0x904   : > { %1934 = dma.vmem_to_hbm [thread:$0]  (%p3350_p11), %s3192_s28, 128, %s3185_s10, %s3196_s29  }
 0x905   : > { %s1565_s20 = scalar_lea.sflag [#allocation6], %s2781_s15  ;;  %s2404_s1 = scalar_lea.vmem %s3171_s0, 512 }
 0x906   : > { %p2405_p8 = scmp.ne.s32.totalorder %s3171_s0, %s2404_s1  ;;  %s2510_s13 = smov [#allocation12]  }
 0x907   : > { %s2408_s23 = sshll.u32 %s2510_s13, 4  ;;  %s2409_s23 = int_to_ptr.vmem [resolvable:$false] %s2408_s23 }
 0x908   : > { %p2406_p7 = pnand %p2405_p8, %p3350_p11  ;;  %s2410_s4 = scalar_lea.vmem %s2409_s23, 1024 }
 0x909   : > { %p2411_p9 = scmp.lt.s32.totalorder %s3171_s0, %s2409_s23  ;;  %p2412_p6 = scmp.lt.s32.totalorder %s2410_s4, %s2404_s1 }
 0x90a   : > { %p2407_p12 = pneg %p2406_p7 }
 0x90b   : > { %p2413_p1 = por %p2412_p6, %p2411_p9 }
 0x90d   : > { %p2414_p4 = pnand %p2413_p1, %p2407_p12 }
 0x90f   : > { %2417 = shalt.err (!%p2414_p4)
}
 0x910   : > { %s2418_s28 = scalar_lea.hbm %s3190_s8, 512  ;;  %s2422_s6 = scalar_lea.hbm %s3349_s16, 1024 }
 0x911   : > { %p2419_p13 = scmp.ne.s32.totalorder %s3190_s8, %s2418_s28  ;;  %p2423_p5 = scmp.lt.u32.totalorder %s3190_s8, %s3349_s16 }
 0x912   : > { %p2424_p10 = scmp.lt.u32.totalorder %s2422_s6, %s2418_s28  ;;  %p2426_p8 = scmp.lt.u32.totalorder %s2418_s28, %s3190_s8 }
 0x913   : > { %p2420_p2 = pnand %p2419_p13, %p3350_p11 }
 0x914   : > { %p2425_p3 = por %p2424_p10, %p2423_p5 }
 0x915   : > { %p2421_p0 = pneg %p2420_p2 }
 0x916   : > { %p2427_p7 = por %p2426_p8, %p2425_p3 }
 0x918   : > { %p2428_p12 = pnand %p2427_p7, %p2421_p0 }
 0x91a   : > { %2431 = shalt.err (!%p2428_p12)
}
 0x91b   : > { %s2511_s27 = smov 64   ;;  %s2512_s26 = smov 128  }
 0x91c   : > { %s2513_s19 = smov 4  }
 0x91d   : > { %1932 = dma.vmem_to_hbm [thread:$0]  (%p3350_p11), %s3171_s0, 512, %s3190_s8, %s1565_s20, %s2511_s27, %s2512_s26, %s2513_s19  }
 0x91e PF: > { %s3351_s24 = sld [smem:[#allocation21_spill]]  ;;  %s3352_s21 = sld [smem:[#allocation27_spill]] }
 0x91f   : > { %s3353_s25 = sld [smem:[#allocation24_spill]] }
 0x924   : > { %s1631_s11 = sand.u32 1, %s3351_s24   ;;  %p3354_p9 = scmp.ne.s32.totalorder %s3352_s21, 0 }
 0x925   : > { %p3355_p6 = scmp.ge.s32.totalorder %s3353_s25, 2  ;;  %s1632_s12 = scalar_lea.sflag [#allocation6], %s1631_s11 }
 0x927   : > { %p1953_p1 = pnand %p3355_p6, %p3354_p9 }
 0x929   : > { %2469 = dma.done.wait (!%p1953_p1), %s1632_s12, 512  }
 0x92a   : > { %2471 = vsyncadd (!%p1953_p1), %s1632_s12, 4294966784  ;;  %s3356_s7 = sadd.s32 4294967294, %s3353_s25  }
 0x92b   : > { %s1640_s14 = sand.u32 1, %s3356_s7  }
 0x92c   : > { %s1641_s1 = scalar_lea.sflag [#allocation14], %s1640_s14 }
 0x92d   : > { %2473 = dma.done.wait (!%p1953_p1), %s1641_s1, 256  }
 0x92e   : > { %2475 = vsyncadd (!%p1953_p1), %s1641_s1, 4294967040  ;;  %s30_s26 = sadd.s32 1, %s3353_s25   ;;  %s3357_s17 = sld [smem:[#allocation22_spill]] }
 0x92f   : > { %p27_p11 = scmp.ge.s32.totalorder %s30_s26, 4   ;;  %s3358_s23 = sld [smem:[#allocation26_spill]] }
 0x930   : > { %s3359_s24 = sld [smem:[#allocation23_spill]]  ;;  %s3360_s25 = sld [smem:[#allocation25_spill]] }
 0x931   : > { %s3361_s21 = smov %s2482_s22  ;;  %29 = sbr.rel (!%p27_p11) target bundleno = 16 (0x10), region = 163 }
 0x934   : > { %s3362_s22 = smov %s3357_s17 }
 0x938   :  { %1655 = vsyncpa [#allocation5], 1 }
 0x939   :  { %1657 = vsyncpa [#allocation5 + $0x1], 1 }
 0x93a   :  { %1658 = vsyncpa [#allocation8], 1 }
 0x93b   :  { %1660 = vsyncpa [#allocation8 + $0x1], 1 }
 0x93c   :  { %1661 = vsyncpa [#allocation11], 1 }
 0x93d   :  { %1662 = vsyncpa [#allocation6], 1 }
 0x93e   :  { %1664 = vsyncpa [#allocation6 + $0x1], 1 }
 0x93f   :  { %1665 = vsyncpa [#allocation14], 1 }
 0x940   :  { %1667 = vsyncpa [#allocation14 + $0x1], 1 }

</bundles_post_ra>
